<compile_context>
chip_gen: v7x
topology: tpu7x:2x2x1
jax: 0.10.0
libtpu: 0.0.40
codegen_flags: <defaults>
</compile_context>

<pallas_src>
import functools

import jax
import jax.numpy as jnp
from jax.experimental import pallas as pl
from jax.experimental.pallas import tpu as pltpu

_LANES = 128
_NEG_BIG = -1e30       # finite "minus infinity" for masked softmax lanes


def _gamenet_kernel(x_ref,
                    w1_ref, b1_ref, w2_ref, b2_ref, w3_ref, b3_ref, w4_ref, b4_ref,
                    wh1_ref, bh1_ref, w2f_ref, b2f_ref,
                    out_ref, *, num_actions):
    def linear(h, w_ref, b_ref):
        # bf16 x bf16 MXU matmul with f32 accumulation; bias add stays in f32.
        return jnp.dot(h.astype(w_ref.dtype), w_ref[...],
                       preferred_element_type=jnp.float32) + b_ref[...]

    def linear_relu(h, w_ref, b_ref):
        # bf16 ReLU epilogue: relu commutes with the bf16 round, so this equals
        # relu-in-f32 followed by the bf16 cast the next matmul needs anyway.
        return jnp.maximum(linear(h, w_ref, b_ref).astype(jnp.bfloat16), 0.0)

    x = x_ref[...]                      # already bf16 (pad + cast fused in wrapper)

    # ---- shared trunk: 4x (Linear + ReLU) ----
    h = linear_relu(x, w1_ref, b1_ref)
    # TODO(synk): nn.Dropout(0.2) is a no-op at inference; training-mode dropout not implemented.
    h = linear_relu(h, w2_ref, b2_ref)
    h = linear_relu(h, w3_ref, b3_ref)
    h = linear_relu(h, w4_ref, b4_ref)

    # ---- fused head first layers: lanes [0:64] = value hidden, [64:128] = policy hidden
    hh = linear_relu(h, wh1_ref, bh1_ref)

    # ---- fused head second layers (ONE 128x128 MXU op):
    #   lanes [0:num_actions]   -> policy logits
    #   lanes [num_actions:128] -> value logit (replicated)
    logits = linear(hh, w2f_ref, b2f_ref)                       # [tile, 128] f32
    lane = jax.lax.broadcasted_iota(jnp.int32, logits.shape, 1)
    is_policy = lane < num_actions

    # softmax over the real action lanes only (others forced to -1e30 -> exp == 0)
    p_logits = jnp.where(is_policy, logits, _NEG_BIG)
    m = jnp.max(p_logits, axis=-1, keepdims=True)
    e = jnp.exp(p_logits - m)
    probs = e / jnp.sum(e, axis=-1, keepdims=True)              # exact divide -> rows sum to 1

    # sigmoid(value) on the value lanes (policy lanes fed 0 -> discarded below)
    v_in = jnp.where(is_policy, 0.0, logits)
    val = pl.reciprocal(1.0 + jnp.exp(-v_in), approx=True)

    # single lane-dense output: policy probs in [0:num_actions], sigmoid(value) elsewhere
    out_ref[...] = jnp.where(is_policy, probs, val).astype(out_ref.dtype)


def init_params(board_size, key):
    """Deterministic init mimicking nn.Linear shapes (stored as W[in,out], b[1,out])."""
    input_dim = board_size ** 2 * 2 + 1
    num_actions = board_size ** 2 * 3
    layer_dims = [
        (input_dim, 256), (256, 512), (512, 256), (256, 128),   # shared trunk
        (128, 64), (64, 1),                                     # value head
        (128, 64), (64, num_actions),                           # policy head
    ]
    params = []
    for (fan_in, fan_out) in layer_dims:
        key, kw, kb = jax.random.split(key, 3)
        bound = 1.0 / jnp.sqrt(jnp.float32(fan_in))
        w = jax.random.uniform(kw, (fan_in, fan_out), jnp.float32, -bound, bound)
        b = jax.random.uniform(kb, (1, fan_out), jnp.float32, -bound, bound)
        params.append((w, b))
    return params


def pack_params(params, board_size):
    """Pack/fuse/pad the raw params into the kernel's bf16 weight layout."""
    input_dim = board_size ** 2 * 2 + 1
    num_actions = board_size ** 2 * 3
    assert num_actions < _LANES, "fused head layout needs num_actions < 128"
    in_pad = -(-input_dim // 64) * 64          # 51 -> 64 (clean contraction dim)

    (w1, b1), (w2, b2), (w3, b3), (w4, b4), \
        (wv1, bv1), (wv2, bv2), (wp1, bp1), (wp2, bp2) = params

    wdt = jnp.bfloat16

    # first trunk layer: zero-pad input rows 51 -> 64
    w1p = jnp.zeros((in_pad, w1.shape[1]), jnp.float32).at[:input_dim, :].set(w1)

    # fused head first layers -> single [128, 128] matmul
    wh1 = jnp.concatenate([wv1, wp1], axis=1)              # [128, 128]
    bh1 = jnp.concatenate([bv1, bp1], axis=1)              # [1, 128]

    # fused head second layers -> single [128, 128] matmul
    #   rows 64:128, lanes [0:num_actions]   = wp2 (policy)
    #   rows  0:64,  lanes [num_actions:128] = wv2 replicated (value)
    w2f = jnp.zeros((_LANES, _LANES), jnp.float32)
    w2f = w2f.at[64:, :num_actions].set(wp2)
    w2f = w2f.at[:64, num_actions:].set(jnp.tile(wv2, (1, _LANES - num_actions)))
    b2f = jnp.zeros((1, _LANES), jnp.float32)
    b2f = b2f.at[:, :num_actions].set(bp2)
    b2f = b2f.at[:, num_actions:].set(bv2)                  # broadcast (1,1) across value lanes

    return [
        w1p.astype(wdt), b1,
        w2.astype(wdt), b2,
        w3.astype(wdt), b3,
        w4.astype(wdt), b4,
        wh1.astype(wdt), bh1,
        w2f.astype(wdt), b2f,
    ]


def _pick_batch_tile(B, *, max_tile=512):
    """Batch tile: as large as possible (amortize per-step overhead + MXU weight
    pushes), multiple of 128 (MXU rows), but keep >=2 grid steps when the batch
    allows so v7x's two TensorCores can split the ("parallel",) grid axis."""
    b128 = pl.cdiv(B, 128) * 128
    if b128 <= 128:
        return 128
    half = (b128 // 2) // 128 * 128        # largest 128-multiple <= b128/2
    return int(min(max_tile, max(128, half)))


def game_network_forward(x, packed, num_actions, *, max_batch_tile=512):
    """x: [B, input_dim] f32.  packed: result of pack_params.
    Returns (value [B, 1], policy [B, num_actions])."""
    B, in_dim = x.shape
    in_pad = packed[0].shape[0]

    batch_tile = _pick_batch_tile(B, max_tile=max_batch_tile)
    Bp = pl.cdiv(B, batch_tile) * batch_tile

    # Pad features (51 -> 64) + batch, and cast to bf16 in one wrapper-side pass
    # (halves the per-tile x HBM->VMEM DMA; kernel consumes bf16 directly).
    x_p = jnp.pad(x, ((0, Bp - B), (0, in_pad - in_dim))).astype(jnp.bfloat16)

    x_spec = pl.BlockSpec((batch_tile, in_pad), lambda i: (i, 0))
    # Weights/biases: full-array blocks with constant index_map -> DMA'd once,
    # VMEM-resident across all batch grid steps.
    w_specs = [pl.BlockSpec(a.shape, lambda i: (0, 0)) for a in packed]
    out_spec = pl.BlockSpec((batch_tile, _LANES), lambda i: (i, 0))

    out = pl.pallas_call(
        functools.partial(_gamenet_kernel, num_actions=num_actions),
        out_shape=jax.ShapeDtypeStruct((Bp, _LANES), jnp.float32),
        grid_spec=pltpu.PrefetchScalarGridSpec(
            num_scalar_prefetch=0,
            grid=(Bp // batch_tile,),
            in_specs=[x_spec] + w_specs,
            out_specs=out_spec),
        compiler_params=pltpu.CompilerParams(
            dimension_semantics=("parallel",),
            vmem_limit_bytes=32 * 1024 * 1024),   # headroom for large tiles (esp. v5e 16 MiB default)
    )(x_p, *packed)

    value = out[:B, num_actions:num_actions + 1]
    policy = out[:B, :num_actions]
    return value, policy


def reference_forward(x, params):
    """Pure-JAX reference mirroring the kernel's bf16-weight / f32-accumulate math."""
    def lin(h, w, b):
        return jnp.dot(h.astype(jnp.bfloat16), w.astype(jnp.bfloat16),
                       preferred_element_type=jnp.float32) + b
    h = x
    for (w, b) in params[:4]:
        h = jnp.maximum(lin(h, w, b), 0.0)
    v = jnp.maximum(lin(h, params[4][0], params[4][1]), 0.0)
    v = jax.nn.sigmoid(lin(v, params[5][0], params[5][1]))
    p = jnp.maximum(lin(h, params[6][0], params[6][1]), 0.0)
    p = jax.nn.softmax(lin(p, params[7][0], params[7][1]), axis=-1)
    return v, p


if __name__ == "__main__":
    board_size = 5                       # input_dim = 51, num_actions = 75
    batch = 512                          # -> batch_tile 256, 2 "parallel" grid steps
                                         #    (both v7x TensorCores get one tile)

    input_dim = board_size ** 2 * 2 + 1
    num_actions = board_size ** 2 * 3

    key = jax.random.PRNGKey(0)
    key, kx = jax.random.split(key)
    params = init_params(board_size, key)
    packed = pack_params(params, board_size)

    x = jax.random.normal(kx, (batch, input_dim), jnp.float32)

    value, policy = game_network_forward(x, packed, num_actions)
    value = jax.block_until_ready(value)
    policy = jax.block_until_ready(policy)

    # sanity check against pure-JAX reference (same bf16 weight quantization)
    v_ref, p_ref = reference_forward(x, params)
    assert value.shape == (batch, 1)
    assert policy.shape == (batch, num_actions)
    # bf16 weights + approx reciprocal in sigmoid -> compare at 5e-3
    assert jnp.allclose(value, v_ref, atol=5e-3, rtol=5e-3)
    assert jnp.allclose(policy, p_ref, atol=5e-3, rtol=5e-3)
    assert jnp.allclose(jnp.sum(policy, axis=-1), 1.0, atol=5e-3)

    print("KERNEL_OK")
</pallas_src>

<mosaic_0001>
module attributes {stable_mosaic.version = 11 : i64} {
  func.func @_gamenet_kernel(%arg0: i32, %arg1: memref<256x64xbf16, #tpu.memory_space<vmem>>, %arg2: memref<64x256xbf16, #tpu.memory_space<vmem>>, %arg3: memref<1x256xf32, #tpu.memory_space<vmem>>, %arg4: memref<256x512xbf16, #tpu.memory_space<vmem>>, %arg5: memref<1x512xf32, #tpu.memory_space<vmem>>, %arg6: memref<512x256xbf16, #tpu.memory_space<vmem>>, %arg7: memref<1x256xf32, #tpu.memory_space<vmem>>, %arg8: memref<256x128xbf16, #tpu.memory_space<vmem>>, %arg9: memref<1x128xf32, #tpu.memory_space<vmem>>, %arg10: memref<128x128xbf16, #tpu.memory_space<vmem>>, %arg11: memref<1x128xf32, #tpu.memory_space<vmem>>, %arg12: memref<128x128xbf16, #tpu.memory_space<vmem>>, %arg13: memref<1x128xf32, #tpu.memory_space<vmem>>, %arg14: memref<256x128xf32, #tpu.memory_space<vmem>>) attributes {dimension_semantics = [#tpu.dimension_semantics<parallel>], iteration_bounds = array<i64: 2>, scalar_prefetch = 0 : i64, scratch_operands = 0 : i64, tpu.core_type = #tpu.core_type<tc>, window_params = [{transform_indices = @transform_0, window_bounds = array<i64: 256, 64>}, {pipeline_mode = #tpu.pipeline_mode<synchronous>, transform_indices = @transform_1, window_bounds = array<i64: 64, 256>}, {pipeline_mode = #tpu.pipeline_mode<synchronous>, transform_indices = @transform_2, window_bounds = array<i64: 1, 256>}, {pipeline_mode = #tpu.pipeline_mode<synchronous>, transform_indices = @transform_3, window_bounds = array<i64: 256, 512>}, {pipeline_mode = #tpu.pipeline_mode<synchronous>, transform_indices = @transform_4, window_bounds = array<i64: 1, 512>}, {pipeline_mode = #tpu.pipeline_mode<synchronous>, transform_indices = @transform_5, window_bounds = array<i64: 512, 256>}, {pipeline_mode = #tpu.pipeline_mode<synchronous>, transform_indices = @transform_6, window_bounds = array<i64: 1, 256>}, {pipeline_mode = #tpu.pipeline_mode<synchronous>, transform_indices = @transform_7, window_bounds = array<i64: 256, 128>}, {pipeline_mode = #tpu.pipeline_mode<synchronous>, transform_indices = @transform_8, window_bounds = array<i64: 1, 128>}, {pipeline_mode = #tpu.pipeline_mode<synchronous>, transform_indices = @transform_9, window_bounds = array<i64: 128, 128>}, {pipeline_mode = #tpu.pipeline_mode<synchronous>, transform_indices = @transform_10, window_bounds = array<i64: 1, 128>}, {pipeline_mode = #tpu.pipeline_mode<synchronous>, transform_indices = @transform_11, window_bounds = array<i64: 128, 128>}, {pipeline_mode = #tpu.pipeline_mode<synchronous>, transform_indices = @transform_12, window_bounds = array<i64: 1, 128>}, {transform_indices = @transform_13, window_bounds = array<i64: 256, 128>}]} {
    %c0 = arith.constant 0 : index
    %c0_0 = arith.constant 0 : index
    %0 = vector.load %arg1[%c0, %c0_0] : memref<256x64xbf16, #tpu.memory_space<vmem>>, vector<256x64xbf16>
    %c0_1 = arith.constant 0 : index
    %c0_2 = arith.constant 0 : index
    %1 = vector.load %arg2[%c0_1, %c0_2] : memref<64x256xbf16, #tpu.memory_space<vmem>>, vector<64x256xbf16>
    %cst = arith.constant dense<0.000000e+00> : vector<256x256xf32>
    %2 = tpu.matmul %0, %1, %cst {dimension_numbers = #tpu.dot_dimension_numbers<[1], [0], [0], [1], [0, 0, 1, 1], [], []>} : vector<256x64xbf16>, vector<64x256xbf16>, vector<256x256xf32> -> vector<256x256xf32>
    %c0_3 = arith.constant 0 : index
    %c0_4 = arith.constant 0 : index
    %3 = vector.load %arg3[%c0_3, %c0_4] : memref<1x256xf32, #tpu.memory_space<vmem>>, vector<1x256xf32>
    %4 = vector.broadcast %3 : vector<1x256xf32> to vector<256x256xf32>
    %5 = arith.addf %2, %4 : vector<256x256xf32>
    %6 = arith.truncf %5 : vector<256x256xf32> to vector<256x256xbf16>
    %cst_5 = arith.constant 0.000000e+00 : bf16
    %7 = vector.broadcast %cst_5 : bf16 to vector<256x256xbf16>
    %8 = arith.maximumf %6, %7 : vector<256x256xbf16>
    %c0_6 = arith.constant 0 : index
    %c0_7 = arith.constant 0 : index
    %9 = vector.load %arg4[%c0_6, %c0_7] : memref<256x512xbf16, #tpu.memory_space<vmem>>, vector<256x512xbf16>
    %cst_8 = arith.constant dense<0.000000e+00> : vector<256x512xf32>
    %10 = tpu.matmul %8, %9, %cst_8 {dimension_numbers = #tpu.dot_dimension_numbers<[1], [0], [0], [1], [0, 0, 1, 1], [], []>} : vector<256x256xbf16>, vector<256x512xbf16>, vector<256x512xf32> -> vector<256x512xf32>
    %c0_9 = arith.constant 0 : index
    %c0_10 = arith.constant 0 : index
    %11 = vector.load %arg5[%c0_9, %c0_10] : memref<1x512xf32, #tpu.memory_space<vmem>>, vector<1x512xf32>
    %12 = vector.broadcast %11 : vector<1x512xf32> to vector<256x512xf32>
    %13 = arith.addf %10, %12 : vector<256x512xf32>
    %14 = arith.truncf %13 : vector<256x512xf32> to vector<256x512xbf16>
    %cst_11 = arith.constant 0.000000e+00 : bf16
    %15 = vector.broadcast %cst_11 : bf16 to vector<256x512xbf16>
    %16 = arith.maximumf %14, %15 : vector<256x512xbf16>
    %c0_12 = arith.constant 0 : index
    %c0_13 = arith.constant 0 : index
    %17 = vector.load %arg6[%c0_12, %c0_13] : memref<512x256xbf16, #tpu.memory_space<vmem>>, vector<512x256xbf16>
    %cst_14 = arith.constant dense<0.000000e+00> : vector<256x256xf32>
    %18 = tpu.matmul %16, %17, %cst_14 {dimension_numbers = #tpu.dot_dimension_numbers<[1], [0], [0], [1], [0, 0, 1, 1], [], []>} : vector<256x512xbf16>, vector<512x256xbf16>, vector<256x256xf32> -> vector<256x256xf32>
    %c0_15 = arith.constant 0 : index
    %c0_16 = arith.constant 0 : index
    %19 = vector.load %arg7[%c0_15, %c0_16] : memref<1x256xf32, #tpu.memory_space<vmem>>, vector<1x256xf32>
    %20 = vector.broadcast %19 : vector<1x256xf32> to vector<256x256xf32>
    %21 = arith.addf %18, %20 : vector<256x256xf32>
    %22 = arith.truncf %21 : vector<256x256xf32> to vector<256x256xbf16>
    %cst_17 = arith.constant 0.000000e+00 : bf16
    %23 = vector.broadcast %cst_17 : bf16 to vector<256x256xbf16>
    %24 = arith.maximumf %22, %23 : vector<256x256xbf16>
    %c0_18 = arith.constant 0 : index
    %c0_19 = arith.constant 0 : index
    %25 = vector.load %arg8[%c0_18, %c0_19] : memref<256x128xbf16, #tpu.memory_space<vmem>>, vector<256x128xbf16>
    %cst_20 = arith.constant dense<0.000000e+00> : vector<256x128xf32>
    %26 = tpu.matmul %24, %25, %cst_20 {dimension_numbers = #tpu.dot_dimension_numbers<[1], [0], [0], [1], [0, 0, 1, 1], [], []>} : vector<256x256xbf16>, vector<256x128xbf16>, vector<256x128xf32> -> vector<256x128xf32>
    %c0_21 = arith.constant 0 : index
    %c0_22 = arith.constant 0 : index
    %27 = vector.load %arg9[%c0_21, %c0_22] : memref<1x128xf32, #tpu.memory_space<vmem>>, vector<1x128xf32>
    %28 = vector.broadcast %27 : vector<1x128xf32> to vector<256x128xf32>
    %29 = arith.addf %26, %28 : vector<256x128xf32>
    %30 = arith.truncf %29 : vector<256x128xf32> to vector<256x128xbf16>
    %cst_23 = arith.constant 0.000000e+00 : bf16
    %31 = vector.broadcast %cst_23 : bf16 to vector<256x128xbf16>
    %32 = arith.maximumf %30, %31 : vector<256x128xbf16>
    %c0_24 = arith.constant 0 : index
    %c0_25 = arith.constant 0 : index
    %33 = vector.load %arg10[%c0_24, %c0_25] : memref<128x128xbf16, #tpu.memory_space<vmem>>, vector<128x128xbf16>
    %cst_26 = arith.constant dense<0.000000e+00> : vector<256x128xf32>
    %34 = tpu.matmul %32, %33, %cst_26 {dimension_numbers = #tpu.dot_dimension_numbers<[1], [0], [0], [1], [0, 0, 1, 1], [], []>} : vector<256x128xbf16>, vector<128x128xbf16>, vector<256x128xf32> -> vector<256x128xf32>
    %c0_27 = arith.constant 0 : index
    %c0_28 = arith.constant 0 : index
    %35 = vector.load %arg11[%c0_27, %c0_28] : memref<1x128xf32, #tpu.memory_space<vmem>>, vector<1x128xf32>
    %36 = vector.broadcast %35 : vector<1x128xf32> to vector<256x128xf32>
    %37 = arith.addf %34, %36 : vector<256x128xf32>
    %38 = arith.truncf %37 : vector<256x128xf32> to vector<256x128xbf16>
    %cst_29 = arith.constant 0.000000e+00 : bf16
    %39 = vector.broadcast %cst_29 : bf16 to vector<256x128xbf16>
    %40 = arith.maximumf %38, %39 : vector<256x128xbf16>
    %c0_30 = arith.constant 0 : index
    %c0_31 = arith.constant 0 : index
    %41 = vector.load %arg12[%c0_30, %c0_31] : memref<128x128xbf16, #tpu.memory_space<vmem>>, vector<128x128xbf16>
    %cst_32 = arith.constant dense<0.000000e+00> : vector<256x128xf32>
    %42 = tpu.matmul %40, %41, %cst_32 {dimension_numbers = #tpu.dot_dimension_numbers<[1], [0], [0], [1], [0, 0, 1, 1], [], []>} : vector<256x128xbf16>, vector<128x128xbf16>, vector<256x128xf32> -> vector<256x128xf32>
    %c0_33 = arith.constant 0 : index
    %c0_34 = arith.constant 0 : index
    %43 = vector.load %arg13[%c0_33, %c0_34] : memref<1x128xf32, #tpu.memory_space<vmem>>, vector<1x128xf32>
    %44 = vector.broadcast %43 : vector<1x128xf32> to vector<256x128xf32>
    %45 = arith.addf %42, %44 : vector<256x128xf32>
    %46 = tpu.iota {dimensions = array<i32: 1>} : vector<256x128xi32>
    %c75_i32 = arith.constant 75 : i32
    %47 = vector.broadcast %c75_i32 : i32 to vector<256x128xi32>
    %48 = arith.cmpi slt, %46, %47 : vector<256x128xi32>
    %cst_35 = arith.constant -1.000000e+30 : f32
    %49 = vector.broadcast %cst_35 : f32 to vector<256x128xf32>
    %50 = arith.select %48, %45, %49 : vector<256x128xi1>, vector<256x128xf32>
    %cst_36 = arith.constant dense<0xFF800000> : vector<256xf32>
    %51 = vector.multi_reduction <maximumf>, %50, %cst_36 [1] : vector<256x128xf32> to vector<256xf32>
    %52 = vector.shape_cast %51 : vector<256xf32> to vector<256x1xf32>
    %53 = vector.broadcast %52 : vector<256x1xf32> to vector<256x128xf32>
    %54 = arith.subf %50, %53 : vector<256x128xf32>
    %55 = math.exp %54 : vector<256x128xf32>
    %cst_37 = arith.constant dense<0.000000e+00> : vector<256xf32>
    %56 = vector.multi_reduction <add>, %55, %cst_37 [1] : vector<256x128xf32> to vector<256xf32>
    %57 = vector.shape_cast %56 : vector<256xf32> to vector<256x1xf32>
    %58 = vector.broadcast %57 : vector<256x1xf32> to vector<256x128xf32>
    %59 = arith.divf %55, %58 : vector<256x128xf32>
    %cst_38 = arith.constant 0.000000e+00 : f32
    %60 = vector.broadcast %cst_38 : f32 to vector<256x128xf32>
    %61 = arith.select %48, %60, %45 : vector<256x128xi1>, vector<256x128xf32>
    %cst_39 = arith.constant 0.000000e+00 : f32
    %62 = vector.broadcast %cst_39 : f32 to vector<256x128xf32>
    %63 = arith.subf %62, %61 : vector<256x128xf32>
    %64 = math.exp %63 : vector<256x128xf32>
    %cst_40 = arith.constant 1.000000e+00 : f32
    %65 = vector.broadcast %cst_40 : f32 to vector<256x128xf32>
    %66 = arith.addf %65, %64 : vector<256x128xf32>
    %67 = tpu.reciprocal %66 {approx = true} : vector<256x128xf32> -> vector<256x128xf32>
    %68 = arith.select %48, %59, %67 : vector<256x128xi1>, vector<256x128xf32>
    %c0_41 = arith.constant 0 : index
    %c0_42 = arith.constant 0 : index
    %69 = vector.load %arg14[%c0_41, %c0_42] : memref<256x128xf32, #tpu.memory_space<vmem>>, vector<256x128xf32>
    tpu.vector_store %arg14[%c0_41, %c0_42], %68 {strides = array<i32>} : memref<256x128xf32, #tpu.memory_space<vmem>>, vector<256x128xf32>,
    return
  }
  func.func @transform_0(%arg0: i32) -> (i32, i32) {
    %c0_i32 = arith.constant 0 : i32
    %c0_i32_0 = arith.constant 0 : i32
    return %arg0, %c0_i32 : i32, i32
  }
  func.func @transform_1(%arg0: i32) -> (i32, i32) {
    %c0_i32 = arith.constant 0 : i32
    %c0_i32_0 = arith.constant 0 : i32
    %c0_i32_1 = arith.constant 0 : i32
    return %c0_i32, %c0_i32_0 : i32, i32
  }
  func.func @transform_2(%arg0: i32) -> (i32, i32) {
    %c0_i32 = arith.constant 0 : i32
    %c0_i32_0 = arith.constant 0 : i32
    %c0_i32_1 = arith.constant 0 : i32
    return %c0_i32, %c0_i32_0 : i32, i32
  }
  func.func @transform_3(%arg0: i32) -> (i32, i32) {
    %c0_i32 = arith.constant 0 : i32
    %c0_i32_0 = arith.constant 0 : i32
    %c0_i32_1 = arith.constant 0 : i32
    return %c0_i32, %c0_i32_0 : i32, i32
  }
  func.func @transform_4(%arg0: i32) -> (i32, i32) {
    %c0_i32 = arith.constant 0 : i32
    %c0_i32_0 = arith.constant 0 : i32
    %c0_i32_1 = arith.constant 0 : i32
    return %c0_i32, %c0_i32_0 : i32, i32
  }
  func.func @transform_5(%arg0: i32) -> (i32, i32) {
    %c0_i32 = arith.constant 0 : i32
    %c0_i32_0 = arith.constant 0 : i32
    %c0_i32_1 = arith.constant 0 : i32
    return %c0_i32, %c0_i32_0 : i32, i32
  }
  func.func @transform_6(%arg0: i32) -> (i32, i32) {
    %c0_i32 = arith.constant 0 : i32
    %c0_i32_0 = arith.constant 0 : i32
    %c0_i32_1 = arith.constant 0 : i32
    return %c0_i32, %c0_i32_0 : i32, i32
  }
  func.func @transform_7(%arg0: i32) -> (i32, i32) {
    %c0_i32 = arith.constant 0 : i32
    %c0_i32_0 = arith.constant 0 : i32
    %c0_i32_1 = arith.constant 0 : i32
    return %c0_i32, %c0_i32_0 : i32, i32
  }
  func.func @transform_8(%arg0: i32) -> (i32, i32) {
    %c0_i32 = arith.constant 0 : i32
    %c0_i32_0 = arith.constant 0 : i32
    %c0_i32_1 = arith.constant 0 : i32
    return %c0_i32, %c0_i32_0 : i32, i32
  }
  func.func @transform_9(%arg0: i32) -> (i32, i32) {
    %c0_i32 = arith.constant 0 : i32
    %c0_i32_0 = arith.constant 0 : i32
    %c0_i32_1 = arith.constant 0 : i32
    return %c0_i32, %c0_i32_0 : i32, i32
  }
  func.func @transform_10(%arg0: i32) -> (i32, i32) {
    %c0_i32 = arith.constant 0 : i32
    %c0_i32_0 = arith.constant 0 : i32
    %c0_i32_1 = arith.constant 0 : i32
    return %c0_i32, %c0_i32_0 : i32, i32
  }
  func.func @transform_11(%arg0: i32) -> (i32, i32) {
    %c0_i32 = arith.constant 0 : i32
    %c0_i32_0 = arith.constant 0 : i32
    %c0_i32_1 = arith.constant 0 : i32
    return %c0_i32, %c0_i32_0 : i32, i32
  }
  func.func @transform_12(%arg0: i32) -> (i32, i32) {
    %c0_i32 = arith.constant 0 : i32
    %c0_i32_0 = arith.constant 0 : i32
    %c0_i32_1 = arith.constant 0 : i32
    return %c0_i32, %c0_i32_0 : i32, i32
  }
  func.func @transform_13(%arg0: i32) -> (i32, i32) {
    %c0_i32 = arith.constant 0 : i32
    %c0_i32_0 = arith.constant 0 : i32
    return %arg0, %c0_i32 : i32, i32
  }
}

</mosaic_0001>

<bundles_post_ra>
// kernel: tpu_custom_call.1
= control target key start
LH: loop header
LB: loop body
LE: loop exit
PB: predicated region body
PF: predicated region fallthrough
CT: control target
= control target key end

     0   :  { %s7441_s0 = inlined_call_operand.vmem [shape: bf16[512,64], index: 0, kind: input, shape index: {}]   ;;  %s7442_s1 = inlined_call_operand.vmem [shape: bf16[64,256], index: 1, kind: input, shape index: {}]   ;;  %s7443_s2 = inlined_call_operand.vmem [shape: f32[1,256], index: 2, kind: input, shape index: {}]   ;;  %s7444_s3 = inlined_call_operand.hbm [shape: bf16[256,512], index: 3, kind: input, shape index: {}]   ;;  %s7445_s4 = inlined_call_operand.vmem [shape: f32[1,512], index: 4, kind: input, shape index: {}]   ;;  %s7446_s5 = inlined_call_operand.hbm [shape: bf16[512,256], index: 5, kind: input, shape index: {}]   ;;  %s7447_s6 = inlined_call_operand.vmem [shape: f32[1,256], index: 6, kind: input, shape index: {}]   ;;  %s7448_s7 = inlined_call_operand.vmem [shape: bf16[256,128], index: 7, kind: input, shape index: {}]   ;;  %s7449_s8 = inlined_call_operand.vmem [shape: f32[1,128], index: 8, kind: input, shape index: {}]   ;;  %s7450_s9 = inlined_call_operand.vmem [shape: bf16[128,128], index: 9, kind: input, shape index: {}]   ;;  %s7451_s10 = inlined_call_operand.vmem [shape: f32[1,128], index: 10, kind: input, shape index: {}]   ;;  %s7452_s11 = inlined_call_operand.vmem [shape: bf16[128,128], index: 11, kind: input, shape index: {}]   ;;  %s7453_s12 = inlined_call_operand.vmem [shape: f32[1,128], index: 12, kind: input, shape index: {}]   ;;  %s7454_s13 = inlined_call_operand.hbm [shape: f32[512,128], index: 13, kind: output, shape index: {}]  }
   0x1   :  { %7503 = sst [smem:[#allocation38_spill]] %s7454_s13 }
   0x2   :  { %18 = vsyncpa [#allocation3], 0 }
   0x3   :  { %19 = vsyncpa [#allocation6], 0 }
   0x4   :  { %20 = vsyncpa [#allocation4], 0 }
   0x5   :  { %22 = vsyncpa [#allocation4 + $0x1], 0  ;;  %s5621_s25 = smov 0   ;;  %s5623_s26 = smov 0  }
   0x6   :  { %s5625_s27 = smov 0   ;;  %s5627_s28 = smov 0  }
   0x7 LB: > { %7504 = sst [smem:[#allocation11_spill]] %s5527_s25  ;;  %s5642_s29 = sadd.s32 4294967295, %s5539_s28   ;;  %s5539_s28 = sphi %s5627_s28, %s7626_s28   ;;  %s5535_s27 = sphi %s5625_s27, %s7628_s27   ;;  %s5531_s26 = sphi %s5623_s26, %s7630_s26   ;;  %s5527_s25 = sphi %s5621_s25, %s7629_s25  }
   0x8   : > { %7505 = sst [smem:[#allocation12_spill]] %s5535_s27  ;;  %s4218_s30 = sadd.s32 4294967294, %s5539_s28  }
   0x9   : > { %7506 = sst [smem:[#allocation13_spill]] %s5539_s28  ;;  %s5646_s14 = sadd.s32 1, %s5539_s28  }
   0xa   : > { %7507 = sst [smem:[#allocation14_spill]] %s5646_s14  ;;  %s313_s15 = sadd.s32 1, %s5535_s27 }
   0xb   : > { %s310_s16 = ssub.s32 %s5539_s28, %s5646_s14  ;;  %p323_p0 = scmp.ne.s32.totalorder %s5535_s27, %s5531_s26 }
   0xc   : > { %p311_p1 = scmp.eq.s32.totalorder %s310_s16, 0  ;;  %p324_p2 = scmp.eq.s32.totalorder %s5642_s29, 1 }
   0xd   : > { %p329_p3 = scmp.ne.s32.totalorder %s5531_s26, %s5527_s25  ;;  %p330_p4 = scmp.eq.s32.totalorder %s4218_s30, 1 }
   0xe   : > { %s5657_s17 = scalar_select %p311_p1, %s5535_s27, %s313_s15  }
   0xf   : > { %p5659_p5 = por %p324_p2, %p323_p0  ;;  %p5663_p6 = por %p330_p4, %p329_p3 }
  0x10   : > { %7508 = sst [smem:[#allocation15_spill]] %s5657_s17  ;;  %p4219_p7 = scmp.ge.s32.totalorder %s5539_s28, 1 }
  0x11   : > { %s7509_s18 = scalar_select %p5659_p5, 1, 0 }
  0x12   : > { %s7510_s19 = scalar_select %p5663_p6, 1, 0 }
  0x13   : > { %p337_p8 = scmp.lt.s32.totalorder %s5539_s28, 3  ;;  %p7459_p9 = scmp.eq.s32.totalorder %s5642_s29, 0 }
  0x14   : > { %7511 = sst [smem:[#allocation16_spill]] %s7510_s19  ;;  %s5541_s21 = smov [#allocation2]  }
  0x15   : > { %p5670_p10 = pnand %p4219_p7, %p337_p8  ;;  %s355_s22 = sshll.u32 %s5541_s21, 4  ;;  %s356_s22 = int_to_ptr.vmem [resolvable:$true] %s355_s22 }
  0x16   : > { %s5542_s24 = smov [#allocation5]   ;;  %s5413_s17 = scalar_lea.hbm %s7444_s3, 8192 }
  0x17   : > { %s7512_s20 = scalar_select %p5670_p10, 1, 0 }
  0x18   : > { %p4848_p11 = pneg %p5670_p10  ;;  %s371_s30 = sshll.u32 %s5542_s24, 4  ;;  %s5682_s30 = int_to_ptr.vmem [resolvable:$true] %s371_s30 }
  0x19   : > { %p5414_p13 = scmp.ne.s32.totalorder %s7444_s3, %s5413_s17  ;;  %p5420_p3 = scmp.lt.u32.totalorder %s5413_s17, %s7444_s3 }
  0x1a   : > { %p5678_p12 = pnand %p7459_p9, %p4848_p11 }
  0x1c   : > { %p5415_p0 = pneg %p5678_p12 }
  0x1e   : > { %p5416_p1 = pnand %p5415_p0, %p5414_p13 }
  0x20   : > { %p5417_p2 = pneg %p5416_p1 }
  0x22   : > { %p5422_p4 = pnand %p5420_p3, %p5417_p2 }
  0x24   : > { %5425 = shalt.err (!%p5422_p4)
}
  0x25   : > { %s5426_s24 = scalar_lea.vmem %s356_s22, 8192  ;;  %p5434_p9 = scmp.lt.s32.totalorder %s356_s22, %s356_s22 }
  0x26   : > { %p5427_p7 = scmp.ne.s32.totalorder %s356_s22, %s5426_s24  ;;  %p5435_p6 = scmp.lt.s32.totalorder %s5426_s24, %s5426_s24 }
  0x28   : > { %p5429_p8 = pnand %p5427_p7, %p5415_p0  ;;  %p5436_p5 = por %p5435_p6, %p5434_p9 }
  0x2a   : > { %p5430_p11 = pneg %p5429_p8 }
  0x2c   : > { %p5437_p10 = pnand %p5436_p5, %p5430_p11 }
  0x2e   : > { %5440 = shalt.err (!%p5437_p10)
}
  0x2f   : > { %s5543_s27 = smov 256   ;;  %s5544_s15 = smov 16  }
  0x30   : > { %4851 = dma.hbm_to_vmem [thread:$0]  (!%p5678_p12), %s7444_s3, 8192, %s356_s22, [#allocation3], %s5543_s27, %s5543_s27, %s5544_s15  }
  0x31   : > { %s5441_s21 = scalar_lea.hbm %s7446_s5, 8192 }
  0x32   : > { %p5442_p13 = scmp.ne.s32.totalorder %s7446_s5, %s5441_s21  ;;  %p5448_p9 = scmp.lt.u32.totalorder %s5441_s21, %s7446_s5 }
  0x34   : > { %p5444_p5 = pnand %p5442_p13, %p5415_p0 }
  0x36   : > { %p5445_p6 = pneg %p5444_p5 }
  0x38   : > { %p5450_p10 = pnand %p5448_p9, %p5445_p6 }
  0x3a   : > { %5453 = shalt.err (!%p5450_p10)
}
  0x3b   : > { %s5454_s22 = scalar_lea.vmem %s5682_s30, 8192  ;;  %p5462_p4 = scmp.lt.s32.totalorder %s5682_s30, %s5682_s30 }
  0x3c   : > { %p5455_p1 = scmp.ne.s32.totalorder %s5682_s30, %s5454_s22  ;;  %p5463_p7 = scmp.lt.s32.totalorder %s5454_s22, %s5454_s22 }
  0x3e   : > { %p5457_p2 = pnand %p5455_p1, %p5415_p0  ;;  %p5464_p8 = por %p5463_p7, %p5462_p4 }
  0x40   : > { %p5458_p3 = pneg %p5457_p2 }
  0x42   : > { %p5465_p11 = pnand %p5464_p8, %p5458_p3 }
  0x44   : > { %5468 = shalt.err (!%p5465_p11)
}
  0x45   : > { %s5545_s13 = smov 128   ;;  %s5546_s25 = smov 8  }
  0x46   : > { %4854 = dma.hbm_to_vmem [thread:$0]  (!%p5678_p12), %s7446_s5, 8192, %s5682_s30, [#allocation6], %s5545_s13, %s5545_s13, %s5546_s25  }
  0x47   : > { %p7514_p13 = scmp.ne.s32.totalorder %s7512_s20, 0 }
  0x49   : > { %417 = sbr.rel (%p7514_p13) target bundleno = 2012 (0x7dc), region = 72 }
  0x50   : > { %p7515_p0 = scmp.eq.s32.totalorder %s5642_s29, 0 }
  0x52   : > { %5514 = dma.done.wait (%p7515_p0), [#allocation3], 8192   ;;  %p7516_p5 = pmov %p7515_p0 }
  0x53   : > { %p7517_p6 = pmov %p7515_p0 }
  0x54   : > { %5516 = vsyncadd (%p7516_p5), [#allocation3], 4294959104 }
  0x55   : > { %5518 = dma.done.wait (%p7517_p6), [#allocation6], 8192   ;;  %p7518_p9 = pmov %p7515_p0 }
  0x56   : > { %s4227_s23 = sshll.u32 %s5642_s29, 5  ;;  %v7466_v0 = vmov 0   ;;  %v4905_v1 = vld [vmem:[%s7442_s1 + $0x4] ss:$8 sps:$4 sm:$0xff]   ;;  %v4907_v2 = vld [vmem:[%s7442_s1] ss:$8 sps:$4 sm:$0xff]  }
  0x57   : > { %5520 = vsyncadd (%p7518_p9), [#allocation6], 4294959104  ;;  %726 = vmatprep.mubr.bf16.mxu0 %v7466_v0  ;;  %p466_p12 = scmp.lt.s32.totalorder %s4227_s23, 63  ;;  %694 = vmatprep.subr.bf16.mxu0 %v4905_v1  ;;  %v4908_v3 = vld [vmem:[%s7442_s1 + $0x14] ss:$8 sps:$4 sm:$0xff]   ;;  %vm645_vm0 = vcmask 523264  }
  0x58   : > { %695 = vmatpush1.bf16.msra.mxu0 %v4907_v2  ;;  %v4910_v4 = vld [vmem:[%s7442_s1 + $0x10] ss:$8 sps:$4 sm:$0xff]   ;;  %v4911_v5 = vld [vmem:[%s7442_s1 + $0x24] ss:$8 sps:$4 sm:$0xff]   ;;  %v4913_v6 = vld [vmem:[%s7442_s1 + $0x20] ss:$8 sps:$4 sm:$0xff]  }
  0x59   : > { %s7632_s23 = smov (!%p466_p12, %s4227_s23), 63  ;;  %696 = vmatprep.subr.bf16.mxu0 %v4908_v3  ;;  %v4914_v7 = vld [vmem:[%s7442_s1 + $0x34] ss:$8 sps:$4 sm:$0xff]   ;;  %v4916_v8 = vld [vmem:[%s7442_s1 + $0x30] ss:$8 sps:$4 sm:$0xff]   ;;  %s462_s16 = sand.u32 1, %s5531_s26  }
  0x5a   : > { %s4228_s17 = sshll.u32 %s7632_s23, 2  ;;  %v4933_v11 = vld [vmem:[#allocation2 + $0x4] ss:$16 sps:$4 sm:$0xff]   ;;  %v4935_v12 = vld [vmem:[#allocation2 + $0x8] ss:$16 sps:$4 sm:$0xff]   ;;  %s4226_s21 = sshll.u32 %s462_s16, 8 }
  0x5b   : > { %s5761_s27 = scalar_lea.vmem %s7441_s0, %s4228_s17  ;;  %v4937_v13 = vld [vmem:[#allocation2 + $0xc] ss:$16 sps:$4 sm:$0xff]   ;;  %v4938_v14 = vld [vmem:[#allocation2] ss:$16 sps:$4 sm:$0xff]   ;;  %1357 = vmatprep.subr.bf16.mxu1 %v4933_v11  ;;  %v4939_v15 = vld [vmem:[#allocation2 + $0x24] ss:$16 sps:$4 sm:$0xff]  }
  0x5c   : > { %697 = vmatpush1.bf16.msra.mxu0 %v4910_v4  ;;  %v4917_v9 = vld [vmem:[%s5761_s27] sm:$0xff]   ;;  %v4918_v10 = vld [vmem:[%s5761_s27 + $0x8] sm:$0xff]   ;;  %1358 = vmatpush1.bf16.msra.mxu1 %v4938_v14  ;;  %v4919_v20 = vld [vmem:[%s5761_s27 + $0x10] sm:$0xff]   ;;  %s7202_s24 = scalar_lea.vmem [#allocation7], %s4226_s21  ;;  %s4437_s22 = sshll.u32 %s5642_s29, 12 }
  0x5d   : > { %698 = vmatprep.subr.bf16.mxu0 %v4911_v5  ;;  %v4941_v16 = vld [vmem:[#allocation2 + $0x28] ss:$16 sps:$4 sm:$0xff]   ;;  %1359 = vmatprep.subr.bf16.mxu1 %v4939_v15  ;;  %v4943_v17 = vld [vmem:[#allocation2 + $0x2c] ss:$16 sps:$4 sm:$0xff]   ;;  %v4944_v18 = vld [vmem:[#allocation2 + $0x20] ss:$16 sps:$4 sm:$0xff]  }
  0x5e   : > { %v4945_v19 = vld [vmem:[#allocation2 + $0x44] ss:$16 sps:$4 sm:$0xff]   ;;  %v4949_v21 = vld [vmem:[#allocation2 + $0x4c] ss:$16 sps:$4 sm:$0xff]   ;;  %v4950_v22 = vld [vmem:[#allocation2 + $0x40] ss:$16 sps:$4 sm:$0xff]  }
  0x5f   : > { %v4951_v23 = vld [vmem:[#allocation2 + $0x64] ss:$16 sps:$4 sm:$0xff]   ;;  %v4947_v24 = vld [vmem:[#allocation2 + $0x48] ss:$16 sps:$4 sm:$0xff]   ;;  %v4955_v25 = vld [vmem:[#allocation2 + $0x6c] ss:$16 sps:$4 sm:$0xff]  }
  0x60   : > { %699 = vmatpush1.bf16.msra.mxu0 %v4913_v6  ;;  %1360 = vmatpush1.bf16.msra.mxu1 %v4944_v18  ;;  %v4956_v26 = vld [vmem:[#allocation2 + $0x60] ss:$16 sps:$4 sm:$0xff]   ;;  %v4957_v27 = vld [vmem:[#allocation2 + $0x84] ss:$16 sps:$4 sm:$0xff]   ;;  %v4953_v28 = vld [vmem:[#allocation2 + $0x68] ss:$16 sps:$4 sm:$0xff]  }
  0x61   : > { %700 = vmatprep.subr.bf16.mxu0 %v4914_v7  ;;  %1361 = vmatprep.subr.bf16.mxu1 %v4945_v19  ;;  %v4920_v29 = vld [vmem:[%s5761_s27 + $0x18] sm:$0xff]   ;;  %v4962_v31 = vld [vmem:[#allocation2 + $0x80] ss:$16 sps:$4 sm:$0xff]   ;;  %v4963_v32 = vld [vmem:[#allocation2 + $0xa4] ss:$16 sps:$4 sm:$0xff]   ;;  %s4134_s13 = sshll.u32 %s7202_s24, 4  ;;  %s7392_s13 = int_to_ptr.vmem [resolvable:$true] %s4134_s13 }
  0x62   : > { %v4961_v30 = vld [vmem:[#allocation2 + $0x8c] ss:$16 sps:$4 sm:$0xff]   ;;  %v4959_v33 = vld [vmem:[#allocation2 + $0x88] ss:$16 sps:$4 sm:$0xff]   ;;  %v4968_v35 = vld [vmem:[#allocation2 + $0xa0] ss:$16 sps:$4 sm:$0xff]  }
  0x63   : > { %v4967_v34 = vld [vmem:[#allocation2 + $0xac] ss:$16 sps:$4 sm:$0xff]   ;;  %v4969_v36 = vld [vmem:[#allocation2 + $0xc4] ss:$16 sps:$4 sm:$0xff]   ;;  %v4965_v37 = vld [vmem:[#allocation2 + $0xa8] ss:$16 sps:$4 sm:$0xff]  }
  0x64   : > { %701 = vmatpush1.bf16.msra.mxu0 %v4916_v8  ;;  %1362 = vmatpush1.bf16.msra.mxu1 %v4950_v22  ;;  %v4921_v38 = vld [vmem:[%s5761_s27 + $0x20] sm:$0xff]   ;;  %v4973_v39 = vld [vmem:[#allocation2 + $0xcc] ss:$16 sps:$4 sm:$0xff]   ;;  %v4971_v42 = vld [vmem:[#allocation2 + $0xc8] ss:$16 sps:$4 sm:$0xff]   ;;  %s7400_s29 = scalar_lea.sflag [#allocation4], %s462_s16 }
  0x65   : > { %1550 = vmatprep.subr.bf16.mxu0 %v4937_v13  ;;  %1363 = vmatprep.subr.bf16.mxu1 %v4951_v23  ;;  %v4974_v40 = vld [vmem:[#allocation2 + $0xc0] ss:$16 sps:$4 sm:$0xff]   ;;  %v4975_v41 = vld [vmem:[#allocation2 + $0xe4] ss:$16 sps:$4 sm:$0xff]   ;;  %v4979_v43 = vld [vmem:[#allocation2 + $0xec] ss:$16 sps:$4 sm:$0xff]  }
  0x66   : > { %v4980_v44 = vld [vmem:[#allocation2 + $0xe0] ss:$16 sps:$4 sm:$0xff]   ;;  %v4981_v45 = vld [vmem:[#allocation2 + $0x104] ss:$16 sps:$4 sm:$0xff]   ;;  %v4977_v46 = vld [vmem:[#allocation2 + $0xe8] ss:$16 sps:$4 sm:$0xff]  }
  0x67   : > { %4253 = vmatmul.mubr.msk.bf16.vlgmr.msra.gmra.mrb[0].mxu0 %vm645_vm0, %v4917_v9  ;;  %v4922_v47 = vld [vmem:[%s5761_s27 + $0x28] sm:$0xff]   ;;  %v4986_v49 = vld [vmem:[#allocation2 + $0x100] ss:$16 sps:$4 sm:$0xff]   ;;  %v4987_v50 = vld [vmem:[#allocation2 + $0x124] ss:$16 sps:$4 sm:$0xff]   ;;  %s5469_s30 = scalar_lea.vmem %s7392_s13, 4096 }
  0x68   : > { %736 = vmatprep.mubr.bf16.mxu0 %v7466_v0  ;;  %1551 = vmatpush1.bf16.msra.mxu0 %v4935_v12  ;;  %v4985_v48 = vld [vmem:[#allocation2 + $0x10c] ss:$16 sps:$4 sm:$0xff]   ;;  %v4983_v51 = vld [vmem:[#allocation2 + $0x108] ss:$16 sps:$4 sm:$0xff]   ;;  %v4992_v54 = vld [vmem:[#allocation2 + $0x120] ss:$16 sps:$4 sm:$0xff]   ;;  %p5470_p10 = scmp.ne.s32.totalorder %s7392_s13, %s5469_s30 }
  0x69   : > { %1552 = vmatprep.subr.bf16.mxu0 %v4943_v17  ;;  %1364 = vmatpush1.bf16.msra.mxu1 %v4956_v26  ;;  %v4991_v52 = vld [vmem:[#allocation2 + $0x12c] ss:$16 sps:$4 sm:$0xff]   ;;  %v4989_v53 = vld [vmem:[#allocation2 + $0x128] ss:$16 sps:$4 sm:$0xff]   ;;  %v4993_v55 = vld [vmem:[#allocation2 + $0x144] ss:$16 sps:$4 sm:$0xff]  }
  0x6a   : > { %1365 = vmatprep.subr.bf16.mxu1 %v4957_v27  ;;  %v4997_v56 = vld [vmem:[#allocation2 + $0x14c] ss:$16 sps:$4 sm:$0xff]   ;;  %v4998_v57 = vld [vmem:[#allocation2 + $0x140] ss:$16 sps:$4 sm:$0xff]   ;;  %v4999_v59 = vld [vmem:[#allocation2 + $0x164] ss:$16 sps:$4 sm:$0xff]   ;;  %v7465_v27 = vlaneseq }
  0x6b   : > { %v4923_v58 = vld [vmem:[%s5761_s27 + $0x30] sm:$0xff]   ;;  %v4995_v60 = vld [vmem:[#allocation2 + $0x148] ss:$16 sps:$4 sm:$0xff]   ;;  %v5003_v61 = vld [vmem:[#allocation2 + $0x16c] ss:$16 sps:$4 sm:$0xff]   ;;  %p7621_p1 = scmp.ne.s32.totalorder %s7509_s18, 0 }
  0x6c   : > { %1553 = vmatpush1.bf16.msra.mxu0 %v4941_v16  ;;  %v5004_v62 = vld [vmem:[#allocation2 + $0x160] ss:$16 sps:$4 sm:$0xff]   ;;  %v5005_v63 = vld [vmem:[#allocation2 + $0x184] ss:$16 sps:$4 sm:$0xff]   ;;  %v5001_v1 = vld [vmem:[#allocation2 + $0x168] ss:$16 sps:$4 sm:$0xff]  }
  0x6d   : > { %1554 = vmatprep.subr.bf16.mxu0 %v4949_v21  ;;  %1366 = vmatpush1.bf16.msra.mxu1 %v4962_v31  ;;  %v5009_v2 = vld [vmem:[#allocation2 + $0x18c] ss:$16 sps:$4 sm:$0xff]   ;;  %v5010_v3 = vld [vmem:[#allocation2 + $0x180] ss:$16 sps:$4 sm:$0xff]   ;;  %v5011_v5 = vld [vmem:[#allocation2 + $0x1a4] ss:$16 sps:$4 sm:$0xff]   ;;  %p5471_p2 = pnand %p5470_p10, %p7621_p1 }
  0x6e   : > { %1367 = vmatprep.subr.bf16.mxu1 %v4963_v32  ;;  %v4924_v4 = vld [vmem:[%s5761_s27 + $0x38] sm:$0xff]   ;;  %v4925_v9 = vld [vmem:[%s5761_s27 + $0x40] sm:$0xff]   ;;  %v4927_v11 = vld [vmem:[%s5761_s27 + $0x50] sm:$0xff]   ;;  %s5548_s15 = smov [#allocation7]  }
  0x6f   : > { %4254 = vmatmul.mubr.msk.bf16.gmra.mrb[4].mxu0 %vm645_vm0, %v4918_v10  ;;  %v5007_v6 = vld [vmem:[#allocation2 + $0x188] ss:$16 sps:$4 sm:$0xff]   ;;  %v5015_v7 = vld [vmem:[#allocation2 + $0x1ac] ss:$16 sps:$4 sm:$0xff]   ;;  %v5016_v12 = vld [vmem:[#allocation2 + $0x1a0] ss:$16 sps:$4 sm:$0xff]   ;;  %p5472_p3 = pneg %p5471_p2 }
  0x70   : > { %746 = vmatprep.mubr.bf16.mxu0 %v7466_v0  ;;  %1555 = vmatpush1.bf16.msra.mxu0 %v4947_v24  ;;  %v5013_v8 = vld [vmem:[#allocation2 + $0x1a8] ss:$16 sps:$4 sm:$0xff]   ;;  %v5017_v14 = vld [vmem:[#allocation2 + $0x1c4] ss:$16 sps:$4 sm:$0xff]   ;;  %v5021_v15 = vld [vmem:[#allocation2 + $0x1cc] ss:$16 sps:$4 sm:$0xff]  }
  0x71   : > { %1556 = vmatprep.subr.bf16.mxu0 %v4955_v25  ;;  %1368 = vmatpush1.bf16.msra.mxu1 %v4968_v35  ;;  %v4926_v10 = vld [vmem:[%s5761_s27 + $0x48] sm:$0xff]   ;;  %v4928_v13 = vld [vmem:[%s5761_s27 + $0x58] sm:$0xff]   ;;  %v5022_v17 = vld [vmem:[#allocation2 + $0x1c0] ss:$16 sps:$4 sm:$0xff]   ;;  %s5473_s14 = sshll.u32 %s5548_s15, 4  ;;  %s5474_s14 = int_to_ptr.vmem [resolvable:$false] %s5473_s14 }
  0x72   : > { %1369 = vmatprep.subr.bf16.mxu1 %v4969_v36  ;;  %v5019_v16 = vld [vmem:[#allocation2 + $0x1c8] ss:$16 sps:$4 sm:$0xff]   ;;  %v5023_v18 = vld [vmem:[#allocation2 + $0x1e4] ss:$16 sps:$4 sm:$0xff]   ;;  %v5027_v19 = vld [vmem:[#allocation2 + $0x1ec] ss:$16 sps:$4 sm:$0xff]   ;;  %p5476_p4 = scmp.lt.s32.totalorder %s7392_s13, %s5474_s14 }
  0x73   : > { %v5028_v21 = vld [vmem:[#allocation2 + $0x1e0] ss:$16 sps:$4 sm:$0xff]   ;;  %v4930_v23 = vld [vmem:[%s5761_s27 + $0x68] sm:$0xff]   ;;  %v4932_v25 = vld [vmem:[%s5761_s27 + $0x78] sm:$0xff]   ;;  %s5475_s19 = scalar_lea.vmem %s5474_s14, 8192 }
  0x74   : > { %1557 = vmatpush1.bf16.msra.mxu0 %v4953_v28  ;;  %v4929_v22 = vld [vmem:[%s5761_s27 + $0x60] sm:$0xff]   ;;  %v4931_v24 = vld [vmem:[%s5761_s27 + $0x70] sm:$0xff]   ;;  %v5820_v28 = vshrl.u32 %v7465_v27, 7  ;;  %s7619_s27 = sld [smem:[#allocation38_spill]]  ;;  %p5477_p7 = scmp.lt.s32.totalorder %s5475_s19, %s5469_s30 }
  0x75   : > { %1558 = vmatprep.subr.bf16.mxu0 %v4961_v30  ;;  %1370 = vmatpush1.bf16.msra.mxu1 %v4974_v40  ;;  %v5031_v26 = vld [vmem:[#allocation5 + $0x4] ss:$8 sps:$4 sm:$0xff]   ;;  %v513_v30 = vld [vmem:[%s7443_s2] sm:$0x3] }
  0x76   : > { %1371 = vmatprep.subr.bf16.mxu1 %v4975_v41  ;;  %v5829_v31 = vsub.s32 1, %v5820_v28  ;;  %p5478_p8 = por %p5477_p7, %p5476_p4 }
  0x77   : > { %4255 = vmatmul.mubr.msk.bf16.gmra.mrb[8].mxu0 %vm645_vm0, %v4919_v20  ;;  %v5025_v20 = vld [vmem:[#allocation2 + $0x1e8] ss:$16 sps:$4 sm:$0xff]  }
  0x78   : > { %756 = vmatprep.mubr.bf16.mxu0 %v7466_v0  ;;  %1559 = vmatpush1.bf16.msra.mxu0 %v4959_v33  ;;  %7520 = vst [vmem:[#allocation18_spill] sm:$0xff] %v5829_v31  ;;  %p5479_p11 = pnand %p5478_p8, %p5472_p3 }
  0x79   : > { %1560 = vmatprep.subr.bf16.mxu0 %v4967_v34  ;;  %1372 = vmatpush1.bf16.msra.mxu1 %v4980_v44  ;;  %v5835_v34 = vrot.slane %v513_v30, %v5829_v31 }
  0x7a   : > { %1373 = vmatprep.subr.bf16.mxu1 %v4981_v45  ;;  %s7620_s23 = smov %s7619_s27  ;;  %s7390_s20 = scalar_lea.hbm %s7619_s27, %s4437_s22 }
  0x7c   : > { %1561 = vmatpush1.bf16.msra.mxu0 %v4965_v37 }
  0x7d   : > { %1562 = vmatprep.subr.bf16.mxu0 %v4973_v39  ;;  %1374 = vmatpush1.bf16.msra.mxu1 %v4986_v49  ;;  %v5034_v49 = vld [vmem:[#allocation5 + $0x14] ss:$8 sps:$4 sm:$0xff]  }
  0x7e   : > { %1375 = vmatprep.subr.bf16.mxu1 %v4987_v50 }
  0x7f   : > { %4256 = vmatmul.mubr.msk.bf16.gmra.mrb[12].mxu0 %vm645_vm0, %v4920_v29  ;;  %v5823_v29 = vsub.s32 0, %v5820_v28 }
  0x80   : > { %766 = vmatprep.mubr.bf16.mxu0 %v7466_v0  ;;  %1563 = vmatpush1.bf16.msra.mxu0 %v4971_v42 }
  0x81   : > { %1564 = vmatprep.subr.bf16.mxu0 %v4979_v43  ;;  %1376 = vmatpush1.bf16.msra.mxu1 %v4992_v54  ;;  %7519 = vst [vmem:[#allocation17_spill] sm:$0xff] %v5823_v29  ;;  %v5832_v32 = vrot.slane %v513_v30, %v5823_v29  ;;  %v5049_v30 = vld [vmem:[#allocation5 + $0x64] ss:$8 sps:$4 sm:$0xff]  }
  0x82   : > { %1377 = vmatprep.subr.bf16.mxu1 %v4993_v55 }
  0x84   : > { %1565 = vmatpush1.bf16.msra.mxu0 %v4977_v46  ;;  %v5029_v46 = vld [vmem:[#allocation5] ss:$8 sps:$4 sm:$0xff]  }
  0x85   : > { %1566 = vmatprep.subr.bf16.mxu0 %v4985_v48  ;;  %1378 = vmatpush1.bf16.msra.mxu1 %v4998_v57 }
  0x86   : > { %1379 = vmatprep.subr.bf16.mxu1 %v4999_v59 }
  0x87   : > { %4257 = vmatmul.mubr.msk.bf16.gmra.mrb[16].mxu0 %vm645_vm0, %v4921_v38 }
  0x88   : > { %776 = vmatprep.mubr.bf16.mxu0 %v7466_v0  ;;  %1567 = vmatpush1.bf16.msra.mxu0 %v4983_v51 }
  0x89   : > { %1568 = vmatprep.subr.bf16.mxu0 %v4991_v52  ;;  %1380 = vmatpush1.bf16.msra.mxu1 %v5004_v62  ;;  %v5035_v62 = vld [vmem:[#allocation5 + $0x20] ss:$8 sps:$4 sm:$0xff]  }
  0x8a   : > { %1381 = vmatprep.subr.bf16.mxu1 %v5005_v63 }
  0x8c   : > { %1569 = vmatpush1.bf16.msra.mxu0 %v4989_v53 }
  0x8d   : > { %1570 = vmatprep.subr.bf16.mxu0 %v4997_v56  ;;  %1382 = vmatpush1.bf16.msra.mxu1 %v5010_v3  ;;  %v5032_v56 = vld [vmem:[#allocation5 + $0x10] ss:$8 sps:$4 sm:$0xff]  }
  0x8e   : > { %1383 = vmatprep.subr.bf16.mxu1 %v5011_v5 }
  0x8f   : > { %4258 = vmatmul.mubr.msk.bf16.gmra.mrb[20].mxu0 %vm645_vm0, %v4922_v47 }
  0x90   : > { %786 = vmatprep.mubr.bf16.mxu0 %v7466_v0  ;;  %1571 = vmatpush1.bf16.msra.mxu0 %v4995_v60 }
  0x91   : > { %1572 = vmatprep.subr.bf16.mxu0 %v5003_v61  ;;  %1384 = vmatpush1.bf16.msra.mxu1 %v5016_v12 }
  0x92   : > { %1385 = vmatprep.subr.bf16.mxu1 %v5017_v14 }
  0x94   : > { %1573 = vmatpush1.bf16.msra.mxu0 %v5001_v1 }
  0x95   : > { %1574 = vmatprep.subr.bf16.mxu0 %v5009_v2  ;;  %1386 = vmatpush1.bf16.msra.mxu1 %v5022_v17  ;;  %v5040_v2 = vld [vmem:[#allocation5 + $0x34] ss:$8 sps:$4 sm:$0xff]  }
  0x96   : > { %1387 = vmatprep.subr.bf16.mxu1 %v5023_v18  ;;  %v5046_v18 = vld [vmem:[#allocation5 + $0x54] ss:$8 sps:$4 sm:$0xff]  }
  0x97   : > { %4259 = vmatmul.mubr.msk.bf16.gmra.mrb[24].mxu0 %vm645_vm0, %v4923_v58  ;;  %v5037_v58 = vld [vmem:[#allocation5 + $0x24] ss:$8 sps:$4 sm:$0xff]  }
  0x98   : > { %796 = vmatprep.mubr.bf16.mxu0 %v7466_v0  ;;  %1575 = vmatpush1.bf16.msra.mxu0 %v5007_v6 }
  0x99   : > { %1576 = vmatprep.subr.bf16.mxu0 %v5015_v7  ;;  %1388 = vmatpush1.bf16.msra.mxu1 %v5028_v21 }
  0x9a   : > { %2267 = vmatprep.subr.bf16.mxu1 %v5031_v26 }
  0x9c   : > { %1577 = vmatpush1.bf16.msra.mxu0 %v5013_v8 }
  0x9d   : > { %1578 = vmatprep.subr.bf16.mxu0 %v5021_v15  ;;  %v5041_v15 = vld [vmem:[#allocation5 + $0x40] ss:$8 sps:$4 sm:$0xff]  }
  0x9f   : > { %4260 = vmatmul.mubr.msk.bf16.gmra.mrb[28].mxu0 %vm645_vm0, %v4924_v4 }
  0xa0   : > { %806 = vmatprep.mubr.bf16.mxu0 %v7466_v0  ;;  %1579 = vmatpush1.bf16.msra.mxu0 %v5019_v16 }
  0xa1   : > { %1580 = vmatprep.subr.bf16.mxu0 %v5027_v19 }
  0xa4   : > { %1581 = vmatpush1.bf16.msra.mxu0 %v5025_v20 }
  0xa7   : > { %4261 = vmatmul.mubr.msk.bf16.gmra.mrb[32].mxu0 %vm645_vm0, %v4925_v9  ;;  %v5038_v9 = vld [vmem:[#allocation5 + $0x30] ss:$8 sps:$4 sm:$0xff]  }
  0xa8   : > { %816 = vmatprep.mubr.bf16.mxu0 %v7466_v0 }
  0xaf   : > { %4262 = vmatmul.mubr.msk.bf16.gmra.mrb[36].mxu0 %vm645_vm0, %v4926_v10 }
  0xb0   : > { %826 = vmatprep.mubr.bf16.mxu0 %v7466_v0 }
  0xb7   : > { %4263 = vmatmul.mubr.msk.bf16.gmra.mrb[40].mxu0 %vm645_vm0, %v4927_v11  ;;  %v5043_v11 = vld [vmem:[#allocation5 + $0x44] ss:$8 sps:$4 sm:$0xff]  }
  0xb8   : > { %836 = vmatprep.mubr.bf16.mxu0 %v7466_v0 }
  0xbf   : > { %4264 = vmatmul.mubr.msk.bf16.gmra.mrb[44].mxu0 %vm645_vm0, %v4928_v13 }
  0xc0   : > { %846 = vmatprep.mubr.bf16.mxu0 %v7466_v0 }
  0xc7   : > { %4265 = vmatmul.mubr.msk.bf16.gmra.mrb[48].mxu0 %vm645_vm0, %v4929_v22 }
  0xc8   : > { %856 = vmatprep.mubr.bf16.mxu0 %v7466_v0 }
  0xcf   : > { %4266 = vmatmul.mubr.msk.bf16.gmra.mrb[52].mxu0 %vm645_vm0, %v4930_v23 }
  0xd0   : > { %866 = vmatprep.mubr.bf16.mxu0 %v7466_v0 }
  0xd7   : > { %4267 = vmatmul.mubr.msk.bf16.gmra.mrb[56].mxu0 %vm645_vm0, %v4931_v24 }
  0xd8   : > { %876 = vmatprep.mubr.bf16.mxu0 %v7466_v0 }
  0xdf   : > { %4268 = vmatmul.mubr.msk.bf16.gmra.mrb[60].mxu0 %vm645_vm0, %v4932_v25  ;;  %v5044_v25 = vld [vmem:[#allocation5 + $0x50] ss:$8 sps:$4 sm:$0xff]  }
 0x13a   : > { %v728_v33 = vpop.f32.mrb[0].mxu0 }
 0x13b   : > { %v730_v35 = vpop.f32.mrb[1].mxu0  ;;  %v729_v37 = vadd.f32 %v728_v33, %v5832_v32 }
 0x13c   : > { %v732_v36 = vpop.f32.mrb[2].mxu0  ;;  %v731_v40 = vadd.f32 %v730_v35, %v5835_v34 }
 0x13d   : > { %v733_v38 = vadd.f32 %v732_v36, %v5832_v32  ;;  %v734_v39 = vpop.f32.mrb[3].mxu0 }
 0x13e   : > { %v735_v41 = vadd.f32 %v734_v39, %v5835_v34 }
 0x13f   : > { %v887_v42 = vpack.c.bf16 %v733_v38, %v729_v37  ;;  %v5047_v37 = vld [vmem:[#allocation5 + $0x60] ss:$8 sps:$4 sm:$0xff]  }
 0x140   : > { %v888_v43 = vpack.c.bf16 %v735_v41, %v731_v40  ;;  %v5052_v40 = vld [vmem:[#allocation5 + $0x74] ss:$8 sps:$4 sm:$0xff]  }
 0x141   : > { %v919_v48 = vmax.bf16 %v7466_v0, %v887_v42 }
 0x142   : > { %v738_v44 = vpop.f32.mrb[4].mxu0  ;;  %v920_v45 = vmax.bf16 %v7466_v0, %v888_v43 }
 0x143   : > { %v740_v47 = vpop.f32.mrb[5].mxu0  ;;  %v739_v51 = vadd.f32 %v738_v44, %v5832_v32 }
 0x144   : > { %v742_v50 = vpop.f32.mrb[6].mxu0  ;;  %1389 = vmatprep.mubr.bf16.mxu1 %v920_v45  ;;  %1582 = vmatprep.mubr.bf16.mxu0 %v920_v45  ;;  %v741_v54 = vadd.f32 %v740_v47, %v5835_v34  ;;  %v5050_v47 = vld [vmem:[#allocation5 + $0x70] ss:$8 sps:$4 sm:$0xff]  }
 0x145   : > { %v743_v52 = vadd.f32 %v742_v50, %v5832_v32  ;;  %v744_v53 = vpop.f32.mrb[7].mxu0  ;;  %1390 = vmatmul.mubr.bf16.vlgmr.msra.gmra.mrb[0].mxu1 %v919_v48  ;;  %1583 = vmatmul.mubr.bf16.vlgmr.msra.gmra.mrb[64].mxu0 %v919_v48 }
 0x146   : > { %v745_v55 = vadd.f32 %v744_v53, %v5835_v34  ;;  %2268 = vmatpush1.bf16.msra.mxu1 %v5029_v46  ;;  %v5053_v53 = vld [vmem:[#allocation5 + $0x80] ss:$8 sps:$4 sm:$0xff]  }
 0x147   : > { %v889_v57 = vpack.c.bf16 %v743_v52, %v739_v51  ;;  %2269 = vmatprep.subr.bf16.mxu1 %v5034_v49  ;;  %v5055_v49 = vld [vmem:[#allocation5 + $0x84] ss:$8 sps:$4 sm:$0xff]  }
 0x148   : > { %v890_v59 = vpack.c.bf16 %v745_v55, %v741_v54 }
 0x149   : > { %v921_v1 = vmax.bf16 %v7466_v0, %v889_v57 }
 0x14a   : > { %v748_v60 = vpop.f32.mrb[8].mxu0  ;;  %v922_v61 = vmax.bf16 %v7466_v0, %v890_v59  ;;  %2270 = vmatpush1.bf16.msra.mxu1 %v5032_v56  ;;  %v5058_v56 = vld [vmem:[#allocation5 + $0x94] ss:$8 sps:$4 sm:$0xff]  }
 0x14b   : > { %v750_v63 = vpop.f32.mrb[9].mxu0  ;;  %2271 = vmatprep.subr.bf16.mxu1 %v5037_v58  ;;  %v749_v4 = vadd.f32 %v748_v60, %v5832_v32 }
 0x14c   : > { %v752_v3 = vpop.f32.mrb[10].mxu0  ;;  %1399 = vmatprep.mubr.bf16.mxu1 %v922_v61  ;;  %1592 = vmatprep.mubr.bf16.mxu0 %v922_v61  ;;  %v751_v7 = vadd.f32 %v750_v63, %v5835_v34  ;;  %v5056_v63 = vld [vmem:[#allocation5 + $0x90] ss:$8 sps:$4 sm:$0xff]  }
 0x14d   : > { %v753_v5 = vadd.f32 %v752_v3, %v5832_v32  ;;  %v754_v6 = vpop.f32.mrb[11].mxu0  ;;  %1400 = vmatmul.mubr.bf16.gmra.mrb[4].mxu1 %v921_v1  ;;  %1593 = vmatmul.mubr.bf16.gmra.mrb[68].mxu0 %v921_v1 }
 0x14e   : > { %v755_v8 = vadd.f32 %v754_v6, %v5835_v34  ;;  %2272 = vmatpush1.bf16.msra.mxu1 %v5035_v62  ;;  %v5059_v6 = vld [vmem:[#allocation5 + $0xa0] ss:$8 sps:$4 sm:$0xff]  }
 0x14f   : > { %v891_v10 = vpack.c.bf16 %v753_v5, %v749_v4  ;;  %2273 = vmatprep.subr.bf16.mxu1 %v5040_v2  ;;  %v5061_v2 = vld [vmem:[#allocation5 + $0xa4] ss:$8 sps:$4 sm:$0xff]  }
 0x150   : > { %v892_v12 = vpack.c.bf16 %v755_v8, %v751_v7 }
 0x151   : > { %v923_v17 = vmax.bf16 %v7466_v0, %v891_v10 }
 0x152   : > { %v758_v13 = vpop.f32.mrb[12].mxu0  ;;  %v924_v14 = vmax.bf16 %v7466_v0, %v892_v12  ;;  %2274 = vmatpush1.bf16.msra.mxu1 %v5038_v9  ;;  %v5064_v9 = vld [vmem:[#allocation5 + $0xb4] ss:$8 sps:$4 sm:$0xff]  }
 0x153   : > { %v760_v16 = vpop.f32.mrb[13].mxu0  ;;  %2275 = vmatprep.subr.bf16.mxu1 %v5043_v11  ;;  %v759_v20 = vadd.f32 %v758_v13, %v5832_v32 }
 0x154   : > { %v762_v19 = vpop.f32.mrb[14].mxu0  ;;  %1409 = vmatprep.mubr.bf16.mxu1 %v924_v14  ;;  %1602 = vmatprep.mubr.bf16.mxu0 %v924_v14  ;;  %v761_v23 = vadd.f32 %v760_v16, %v5835_v34  ;;  %v5062_v16 = vld [vmem:[#allocation5 + $0xb0] ss:$8 sps:$4 sm:$0xff]  }
 0x155   : > { %v763_v21 = vadd.f32 %v762_v19, %v5832_v32  ;;  %v764_v22 = vpop.f32.mrb[15].mxu0  ;;  %1410 = vmatmul.mubr.bf16.gmra.mrb[8].mxu1 %v923_v17  ;;  %1603 = vmatmul.mubr.bf16.gmra.mrb[72].mxu0 %v923_v17 }
 0x156   : > { %v765_v24 = vadd.f32 %v764_v22, %v5835_v34  ;;  %2276 = vmatpush1.bf16.msra.mxu1 %v5041_v15  ;;  %v5065_v22 = vld [vmem:[#allocation5 + $0xc0] ss:$8 sps:$4 sm:$0xff]  }
 0x157   : > { %v893_v26 = vpack.c.bf16 %v763_v21, %v759_v20  ;;  %2277 = vmatprep.subr.bf16.mxu1 %v5046_v18  ;;  %v5067_v18 = vld [vmem:[#allocation5 + $0xc4] ss:$8 sps:$4 sm:$0xff]  }
 0x158   : > { %v894_v33 = vpack.c.bf16 %v765_v24, %v761_v23 }
 0x159   : > { %v925_v39 = vmax.bf16 %v7466_v0, %v893_v26 }
 0x15a   : > { %v768_v35 = vpop.f32.mrb[16].mxu0  ;;  %v926_v36 = vmax.bf16 %v7466_v0, %v894_v33  ;;  %2278 = vmatpush1.bf16.msra.mxu1 %v5044_v25  ;;  %v5070_v25 = vld [vmem:[#allocation5 + $0xd4] ss:$8 sps:$4 sm:$0xff]  }
 0x15b   : > { %v770_v38 = vpop.f32.mrb[17].mxu0  ;;  %2279 = vmatprep.subr.bf16.mxu1 %v5049_v30  ;;  %v769_v42 = vadd.f32 %v768_v35, %v5832_v32 }
 0x15c   : > { %v772_v41 = vpop.f32.mrb[18].mxu0  ;;  %1419 = vmatprep.mubr.bf16.mxu1 %v926_v36  ;;  %1612 = vmatprep.mubr.bf16.mxu0 %v926_v36  ;;  %v771_v45 = vadd.f32 %v770_v38, %v5835_v34  ;;  %v5068_v38 = vld [vmem:[#allocation5 + $0xd0] ss:$8 sps:$4 sm:$0xff]  }
 0x15d   : > { %v773_v43 = vadd.f32 %v772_v41, %v5832_v32  ;;  %v774_v44 = vpop.f32.mrb[19].mxu0  ;;  %1420 = vmatmul.mubr.bf16.gmra.mrb[12].mxu1 %v925_v39  ;;  %1613 = vmatmul.mubr.bf16.gmra.mrb[76].mxu0 %v925_v39 }
 0x15e   : > { %v775_v46 = vadd.f32 %v774_v44, %v5835_v34  ;;  %2280 = vmatpush1.bf16.msra.mxu1 %v5047_v37  ;;  %v5071_v44 = vld [vmem:[#allocation5 + $0xe0] ss:$8 sps:$4 sm:$0xff]  }
 0x15f   : > { %v895_v48 = vpack.c.bf16 %v773_v43, %v769_v42  ;;  %2281 = vmatprep.subr.bf16.mxu1 %v5052_v40  ;;  %v5073_v40 = vld [vmem:[#allocation5 + $0xe4] ss:$8 sps:$4 sm:$0xff]  }
 0x160   : > { %v896_v50 = vpack.c.bf16 %v775_v46, %v771_v45 }
 0x161   : > { %v927_v55 = vmax.bf16 %v7466_v0, %v895_v48 }
 0x162   : > { %v778_v51 = vpop.f32.mrb[20].mxu0  ;;  %v928_v52 = vmax.bf16 %v7466_v0, %v896_v50  ;;  %2282 = vmatpush1.bf16.msra.mxu1 %v5050_v47 }
 0x163   : > { %v780_v54 = vpop.f32.mrb[21].mxu0  ;;  %2283 = vmatprep.subr.bf16.mxu1 %v5055_v49  ;;  %v779_v58 = vadd.f32 %v778_v51, %v5832_v32 }
 0x164   : > { %v782_v57 = vpop.f32.mrb[22].mxu0  ;;  %1429 = vmatprep.mubr.bf16.mxu1 %v928_v52  ;;  %1622 = vmatprep.mubr.bf16.mxu0 %v928_v52  ;;  %v781_v61 = vadd.f32 %v780_v54, %v5835_v34 }
 0x165   : > { %v783_v59 = vadd.f32 %v782_v57, %v5832_v32  ;;  %v784_v60 = vpop.f32.mrb[23].mxu0  ;;  %1430 = vmatmul.mubr.bf16.gmra.mrb[16].mxu1 %v927_v55  ;;  %1623 = vmatmul.mubr.bf16.gmra.mrb[80].mxu0 %v927_v55 }
 0x166   : > { %v785_v62 = vadd.f32 %v784_v60, %v5835_v34  ;;  %2284 = vmatpush1.bf16.msra.mxu1 %v5053_v53 }
 0x167   : > { %v897_v1 = vpack.c.bf16 %v783_v59, %v779_v58  ;;  %2285 = vmatprep.subr.bf16.mxu1 %v5058_v56 }
 0x168   : > { %v898_v3 = vpack.c.bf16 %v785_v62, %v781_v61 }
 0x169   : > { %v929_v8 = vmax.bf16 %v7466_v0, %v897_v1 }
 0x16a   : > { %v788_v4 = vpop.f32.mrb[24].mxu0  ;;  %v930_v5 = vmax.bf16 %v7466_v0, %v898_v3  ;;  %2286 = vmatpush1.bf16.msra.mxu1 %v5056_v63 }
 0x16b   : > { %v790_v7 = vpop.f32.mrb[25].mxu0  ;;  %2287 = vmatprep.subr.bf16.mxu1 %v5061_v2  ;;  %v789_v11 = vadd.f32 %v788_v4, %v5832_v32 }
 0x16c   : > { %v792_v10 = vpop.f32.mrb[26].mxu0  ;;  %1439 = vmatprep.mubr.bf16.mxu1 %v930_v5  ;;  %1632 = vmatprep.mubr.bf16.mxu0 %v930_v5  ;;  %v791_v14 = vadd.f32 %v790_v7, %v5835_v34 }
 0x16d   : > { %v793_v12 = vadd.f32 %v792_v10, %v5832_v32  ;;  %v794_v13 = vpop.f32.mrb[27].mxu0  ;;  %1440 = vmatmul.mubr.bf16.gmra.mrb[20].mxu1 %v929_v8  ;;  %1633 = vmatmul.mubr.bf16.gmra.mrb[84].mxu0 %v929_v8 }
 0x16e   : > { %v795_v15 = vadd.f32 %v794_v13, %v5835_v34  ;;  %2288 = vmatpush1.bf16.msra.mxu1 %v5059_v6 }
 0x16f   : > { %v899_v17 = vpack.c.bf16 %v793_v12, %v789_v11  ;;  %2289 = vmatprep.subr.bf16.mxu1 %v5064_v9 }
 0x170   : > { %v900_v19 = vpack.c.bf16 %v795_v15, %v791_v14 }
 0x171   : > { %v931_v24 = vmax.bf16 %v7466_v0, %v899_v17 }
 0x172   : > { %v798_v20 = vpop.f32.mrb[28].mxu0  ;;  %v932_v21 = vmax.bf16 %v7466_v0, %v900_v19  ;;  %2290 = vmatpush1.bf16.msra.mxu1 %v5062_v16 }
 0x173   : > { %v800_v23 = vpop.f32.mrb[29].mxu0  ;;  %2291 = vmatprep.subr.bf16.mxu1 %v5067_v18  ;;  %v799_v30 = vadd.f32 %v798_v20, %v5832_v32 }
 0x174   : > { %v802_v26 = vpop.f32.mrb[30].mxu0  ;;  %1449 = vmatprep.mubr.bf16.mxu1 %v932_v21  ;;  %1642 = vmatprep.mubr.bf16.mxu0 %v932_v21  ;;  %v801_v36 = vadd.f32 %v800_v23, %v5835_v34 }
 0x175   : > { %v803_v33 = vadd.f32 %v802_v26, %v5832_v32  ;;  %v804_v35 = vpop.f32.mrb[31].mxu0  ;;  %1450 = vmatmul.mubr.bf16.gmra.mrb[24].mxu1 %v931_v24  ;;  %1643 = vmatmul.mubr.bf16.gmra.mrb[88].mxu0 %v931_v24 }
 0x176   : > { %v805_v37 = vadd.f32 %v804_v35, %v5835_v34  ;;  %2292 = vmatpush1.bf16.msra.mxu1 %v5065_v22 }
 0x177   : > { %v901_v39 = vpack.c.bf16 %v803_v33, %v799_v30  ;;  %2293 = vmatprep.subr.bf16.mxu1 %v5070_v25 }
 0x178   : > { %v902_v41 = vpack.c.bf16 %v805_v37, %v801_v36 }
 0x179   : > { %v933_v46 = vmax.bf16 %v7466_v0, %v901_v39 }
 0x17a   : > { %v808_v42 = vpop.f32.mrb[32].mxu0  ;;  %v934_v43 = vmax.bf16 %v7466_v0, %v902_v41  ;;  %2294 = vmatpush1.bf16.msra.mxu1 %v5068_v38 }
 0x17b   : > { %v810_v45 = vpop.f32.mrb[33].mxu0  ;;  %2295 = vmatprep.subr.bf16.mxu1 %v5073_v40  ;;  %v809_v48 = vadd.f32 %v808_v42, %v5832_v32  ;;  %v5076_v42 = vld [vmem:[#allocation5 + $0xf4] ss:$8 sps:$4 sm:$0xff]  }
 0x17c   : > { %v812_v47 = vpop.f32.mrb[34].mxu0  ;;  %1459 = vmatprep.mubr.bf16.mxu1 %v934_v43  ;;  %1652 = vmatprep.mubr.bf16.mxu0 %v934_v43  ;;  %v811_v51 = vadd.f32 %v810_v45, %v5835_v34  ;;  %v5074_v45 = vld [vmem:[#allocation5 + $0xf0] ss:$8 sps:$4 sm:$0xff]  }
 0x17d   : > { %v813_v49 = vadd.f32 %v812_v47, %v5832_v32  ;;  %v814_v50 = vpop.f32.mrb[35].mxu0  ;;  %1460 = vmatmul.mubr.bf16.gmra.mrb[28].mxu1 %v933_v46  ;;  %1653 = vmatmul.mubr.bf16.gmra.mrb[92].mxu0 %v933_v46 }
 0x17e   : > { %v815_v52 = vadd.f32 %v814_v50, %v5835_v34  ;;  %2296 = vmatpush1.bf16.msra.mxu1 %v5071_v44 }
 0x17f   : > { %v903_v53 = vpack.c.bf16 %v813_v49, %v809_v48  ;;  %2297 = vmatprep.subr.bf16.mxu1 %v5076_v42 }
 0x180   : > { %v904_v54 = vpack.c.bf16 %v815_v52, %v811_v51 }
 0x181   : > { %v935_v58 = vmax.bf16 %v7466_v0, %v903_v53 }
 0x182   : > { %v818_v55 = vpop.f32.mrb[36].mxu0  ;;  %v936_v56 = vmax.bf16 %v7466_v0, %v904_v54  ;;  %2298 = vmatpush1.bf16.msra.mxu1 %v5074_v45 }
 0x183   : > { %v820_v57 = vpop.f32.mrb[37].mxu0  ;;  %v819_v60 = vadd.f32 %v818_v55, %v5832_v32 }
 0x184   : > { %v822_v59 = vpop.f32.mrb[38].mxu0  ;;  %1469 = vmatprep.mubr.bf16.mxu1 %v936_v56  ;;  %1662 = vmatprep.mubr.bf16.mxu0 %v936_v56  ;;  %v821_v63 = vadd.f32 %v820_v57, %v5835_v34  ;;  %v5079_v56 = vld [vmem:[#allocation5 + $0x104] ss:$8 sps:$4 sm:$0xff]  }
 0x185   : > { %v823_v61 = vadd.f32 %v822_v59, %v5832_v32  ;;  %v824_v62 = vpop.f32.mrb[39].mxu0  ;;  %1470 = vmatmul.mubr.bf16.gmra.mrb[32].mxu1 %v935_v58  ;;  %1663 = vmatmul.mubr.bf16.gmra.mrb[96].mxu0 %v935_v58 }
 0x186   : > { %v825_v1 = vadd.f32 %v824_v62, %v5835_v34  ;;  %2460 = vmatprep.subr.bf16.mxu1 %v5079_v56 }
 0x187   : > { %v905_v2 = vpack.c.bf16 %v823_v61, %v819_v60 }
 0x188   : > { %v906_v3 = vpack.c.bf16 %v825_v1, %v821_v63 }
 0x189   : > { %v937_v7 = vmax.bf16 %v7466_v0, %v905_v2 }
 0x18a   : > { %v828_v4 = vpop.f32.mrb[40].mxu0  ;;  %v938_v5 = vmax.bf16 %v7466_v0, %v906_v3 }
 0x18b   : > { %v830_v6 = vpop.f32.mrb[41].mxu0  ;;  %v829_v9 = vadd.f32 %v828_v4, %v5832_v32 }
 0x18c   : > { %v832_v8 = vpop.f32.mrb[42].mxu0  ;;  %1479 = vmatprep.mubr.bf16.mxu1 %v938_v5  ;;  %1672 = vmatprep.mubr.bf16.mxu0 %v938_v5  ;;  %v831_v12 = vadd.f32 %v830_v6, %v5835_v34 }
 0x18d   : > { %v833_v10 = vadd.f32 %v832_v8, %v5832_v32  ;;  %v834_v11 = vpop.f32.mrb[43].mxu0  ;;  %1480 = vmatmul.mubr.bf16.gmra.mrb[36].mxu1 %v937_v7  ;;  %1673 = vmatmul.mubr.bf16.gmra.mrb[100].mxu0 %v937_v7 }
 0x18e   : > { %v835_v13 = vadd.f32 %v834_v11, %v5835_v34 }
 0x18f   : > { %v907_v14 = vpack.c.bf16 %v833_v10, %v829_v9 }
 0x190   : > { %v908_v15 = vpack.c.bf16 %v835_v13, %v831_v12 }
 0x191   : > { %v939_v19 = vmax.bf16 %v7466_v0, %v907_v14 }
 0x192   : > { %v838_v16 = vpop.f32.mrb[44].mxu0  ;;  %v940_v17 = vmax.bf16 %v7466_v0, %v908_v15 }
 0x193   : > { %v840_v18 = vpop.f32.mrb[45].mxu0  ;;  %v839_v21 = vadd.f32 %v838_v16, %v5832_v32 }
 0x194   : > { %v842_v20 = vpop.f32.mrb[46].mxu0  ;;  %1489 = vmatprep.mubr.bf16.mxu1 %v940_v17  ;;  %1682 = vmatprep.mubr.bf16.mxu0 %v940_v17  ;;  %v841_v24 = vadd.f32 %v840_v18, %v5835_v34 }
 0x195   : > { %v843_v22 = vadd.f32 %v842_v20, %v5832_v32  ;;  %v844_v23 = vpop.f32.mrb[47].mxu0  ;;  %1490 = vmatmul.mubr.bf16.gmra.mrb[40].mxu1 %v939_v19  ;;  %1683 = vmatmul.mubr.bf16.gmra.mrb[104].mxu0 %v939_v19 }
 0x196   : > { %v845_v25 = vadd.f32 %v844_v23, %v5835_v34 }
 0x197   : > { %v909_v26 = vpack.c.bf16 %v843_v22, %v839_v21 }
 0x198   : > { %v910_v30 = vpack.c.bf16 %v845_v25, %v841_v24  ;;  %v1027_v24 = vsub.s32 2, %v5820_v28  ;;  %v1031_v25 = vsub.s32 3, %v5820_v28 }
 0x199   : > { %v941_v37 = vmax.bf16 %v7466_v0, %v909_v26 }
 0x19a   : > { %v848_v33 = vpop.f32.mrb[48].mxu0  ;;  %v942_v35 = vmax.bf16 %v7466_v0, %v910_v30 }
 0x19b   : > { %v850_v36 = vpop.f32.mrb[49].mxu0  ;;  %v849_v39 = vadd.f32 %v848_v33, %v5832_v32 }
 0x19c   : > { %v852_v38 = vpop.f32.mrb[50].mxu0  ;;  %1499 = vmatprep.mubr.bf16.mxu1 %v942_v35  ;;  %1692 = vmatprep.mubr.bf16.mxu0 %v942_v35  ;;  %v851_v43 = vadd.f32 %v850_v36, %v5835_v34 }
 0x19d   : > { %v853_v40 = vadd.f32 %v852_v38, %v5832_v32  ;;  %v854_v41 = vpop.f32.mrb[51].mxu0  ;;  %1500 = vmatmul.mubr.bf16.gmra.mrb[44].mxu1 %v941_v37  ;;  %1693 = vmatmul.mubr.bf16.gmra.mrb[108].mxu0 %v941_v37 }
 0x19e   : > { %v855_v44 = vadd.f32 %v854_v41, %v5835_v34 }
 0x19f   : > { %v911_v46 = vpack.c.bf16 %v853_v40, %v849_v39 }
 0x1a0   : > { %v912_v47 = vpack.c.bf16 %v855_v44, %v851_v43 }
 0x1a1   : > { %v943_v51 = vmax.bf16 %v7466_v0, %v911_v46 }
 0x1a2   : > { %v858_v48 = vpop.f32.mrb[52].mxu0  ;;  %v944_v49 = vmax.bf16 %v7466_v0, %v912_v47 }
 0x1a3   : > { %v860_v50 = vpop.f32.mrb[53].mxu0  ;;  %v859_v53 = vadd.f32 %v858_v48, %v5832_v32 }
 0x1a4   : > { %v862_v52 = vpop.f32.mrb[54].mxu0  ;;  %1509 = vmatprep.mubr.bf16.mxu1 %v944_v49  ;;  %1702 = vmatprep.mubr.bf16.mxu0 %v944_v49  ;;  %v861_v57 = vadd.f32 %v860_v50, %v5835_v34 }
 0x1a5   : > { %v863_v54 = vadd.f32 %v862_v52, %v5832_v32  ;;  %v864_v55 = vpop.f32.mrb[55].mxu0  ;;  %1510 = vmatmul.mubr.bf16.gmra.mrb[48].mxu1 %v943_v51  ;;  %1703 = vmatmul.mubr.bf16.gmra.mrb[112].mxu0 %v943_v51 }
 0x1a6   : > { %v865_v58 = vadd.f32 %v864_v55, %v5835_v34 }
 0x1a7   : > { %v913_v59 = vpack.c.bf16 %v863_v54, %v859_v53 }
 0x1a8   : > { %v914_v60 = vpack.c.bf16 %v865_v58, %v861_v57  ;;  %v5077_v57 = vld [vmem:[#allocation5 + $0x100] ss:$8 sps:$4 sm:$0xff]  }
 0x1a9   : > { %v945_v1 = vmax.bf16 %v7466_v0, %v913_v59 }
 0x1aa   : > { %v868_v61 = vpop.f32.mrb[56].mxu0  ;;  %v946_v62 = vmax.bf16 %v7466_v0, %v914_v60 }
 0x1ab   : > { %v870_v63 = vpop.f32.mrb[57].mxu0  ;;  %v869_v3 = vadd.f32 %v868_v61, %v5832_v32  ;;  %v5082_v61 = vld [vmem:[#allocation5 + $0x114] ss:$8 sps:$4 sm:$0xff]  }
 0x1ac   : > { %v872_v2 = vpop.f32.mrb[58].mxu0  ;;  %1519 = vmatprep.mubr.bf16.mxu1 %v946_v62  ;;  %1712 = vmatprep.mubr.bf16.mxu0 %v946_v62  ;;  %v871_v6 = vadd.f32 %v870_v63, %v5835_v34 }
 0x1ad   : > { %v873_v4 = vadd.f32 %v872_v2, %v5832_v32  ;;  %v874_v5 = vpop.f32.mrb[59].mxu0  ;;  %1520 = vmatmul.mubr.bf16.gmra.mrb[52].mxu1 %v945_v1  ;;  %1713 = vmatmul.mubr.bf16.gmra.mrb[116].mxu0 %v945_v1 }
 0x1ae   : > { %v875_v7 = vadd.f32 %v874_v5, %v5835_v34 }
 0x1af   : > { %v915_v8 = vpack.c.bf16 %v873_v4, %v869_v3 }
 0x1b0   : > { %v916_v9 = vpack.c.bf16 %v875_v7, %v871_v6 }
 0x1b1   : > { %v947_v13 = vmax.bf16 %v7466_v0, %v915_v8 }
 0x1b2   : > { %v878_v10 = vpop.f32.mrb[60].mxu0  ;;  %v948_v11 = vmax.bf16 %v7466_v0, %v916_v9 }
 0x1b3   : > { %v880_v12 = vpop.f32.mrb[61].mxu0  ;;  %v879_v15 = vadd.f32 %v878_v10, %v5832_v32 }
 0x1b4   : > { %v882_v14 = vpop.f32.mrb[62].mxu0  ;;  %1529 = vmatprep.mubr.bf16.mxu1 %v948_v11  ;;  %1722 = vmatprep.mubr.bf16.mxu0 %v948_v11  ;;  %v881_v18 = vadd.f32 %v880_v12, %v5835_v34  ;;  %v5080_v11 = vld [vmem:[#allocation5 + $0x110] ss:$8 sps:$4 sm:$0xff]  }
 0x1b5   : > { %v883_v16 = vadd.f32 %v882_v14, %v5832_v32  ;;  %v884_v17 = vpop.f32.mrb[63].mxu0  ;;  %1530 = vmatmul.mubr.bf16.gmra.mrb[56].mxu1 %v947_v13  ;;  %1723 = vmatmul.mubr.bf16.gmra.mrb[120].mxu0 %v947_v13  ;;  %v1015_v32 = vld [vmem:[%s7445_s4] sm:$0xf]  ;;  %v5085_v14 = vld [vmem:[#allocation5 + $0x124] ss:$8 sps:$4 sm:$0xff]  }
 0x1b6   : > { %v885_v19 = vadd.f32 %v884_v17, %v5835_v34  ;;  %v5939_v34 = vrot.slane %v1015_v32, %v5823_v29  ;;  %v5941_v26 = vrot.slane %v1015_v32, %v1027_v24  ;;  %v5944_v35 = vrot.slane %v1015_v32, %v5829_v31  ;;  %v5088_v24 = vld [vmem:[#allocation5 + $0x134] ss:$8 sps:$4 sm:$0xff]  }
 0x1b7   : > { %v917_v20 = vpack.c.bf16 %v883_v16, %v879_v15  ;;  %v5946_v36 = vrot.slane %v1015_v32, %v1031_v25  ;;  %v7528_v31 = vmov 0  }
 0x1b8   : > { %v918_v21 = vpack.c.bf16 %v885_v19, %v881_v18 }
 0x1b9   : > { %v949_v23 = vmax.bf16 %v7466_v0, %v917_v20  ;;  %v5083_v20 = vld [vmem:[#allocation5 + $0x120] ss:$8 sps:$4 sm:$0xff]  }
 0x1ba   : > { %v950_v22 = vmax.bf16 %v7466_v0, %v918_v21 }
 0x1bc   : > { %1539 = vmatprep.mubr.bf16.mxu1 %v950_v22  ;;  %1732 = vmatprep.mubr.bf16.mxu0 %v950_v22 }
 0x1bd   : > { %1540 = vmatmul.mubr.bf16.gmra.mrb[60].mxu1 %v949_v23  ;;  %1733 = vmatmul.mubr.bf16.gmra.mrb[124].mxu0 %v949_v23 }
 0x218   : > { %v1391_v30 = vpop.f32.mrb[0].mxu1  ;;  %v1584_v33 = vpop.f32.mrb[64].mxu0 }
 0x219   : > { %v1393_v37 = vpop.f32.mrb[1].mxu1  ;;  %v1586_v38 = vpop.f32.mrb[65].mxu0  ;;  %v1392_v41 = vadd.f32 %v1391_v30, %v5939_v34  ;;  %v5950_v28 = vadd.f32 %v1584_v33, %v5941_v26 }
 0x21a   : > { %v1395_v39 = vpop.f32.mrb[2].mxu1  ;;  %v1588_v40 = vpop.f32.mrb[66].mxu0  ;;  %v1394_v46 = vadd.f32 %v1393_v37, %v5944_v35  ;;  %v5958_v47 = vadd.f32 %v1586_v38, %v5946_v36 }
 0x21b   : > { %v1396_v42 = vadd.f32 %v1395_v39, %v5939_v34  ;;  %v5954_v43 = vadd.f32 %v1588_v40, %v5941_v26  ;;  %v1397_v44 = vpop.f32.mrb[3].mxu1  ;;  %v1590_v45 = vpop.f32.mrb[67].mxu0 }
 0x21c   : > { %v1398_v48 = vadd.f32 %v1397_v44, %v5944_v35  ;;  %v5962_v49 = vadd.f32 %v1590_v45, %v5946_v36 }
 0x21d   : > { %v1743_v50 = vpack.c.bf16 %v1396_v42, %v1392_v41 }
 0x21e   : > { %v1744_v52 = vpack.c.bf16 %v1398_v48, %v1394_v46  ;;  %v5086_v46 = vld [vmem:[#allocation5 + $0x130] ss:$8 sps:$4 sm:$0xff]  }
 0x21f   : > { %v1807_v58 = vmax.bf16 %v7466_v0, %v1743_v50 }
 0x220   : > { %v1401_v54 = vpop.f32.mrb[4].mxu1  ;;  %v1594_v55 = vpop.f32.mrb[68].mxu0  ;;  %v1808_v56 = vmax.bf16 %v7466_v0, %v1744_v52  ;;  %v5091_v52 = vld [vmem:[#allocation5 + $0x144] ss:$8 sps:$4 sm:$0xff]  }
 0x221   : > { %v1403_v59 = vpop.f32.mrb[5].mxu1  ;;  %v1596_v60 = vpop.f32.mrb[69].mxu0  ;;  %v1402_v1 = vadd.f32 %v1401_v54, %v5939_v34  ;;  %v5972_v2 = vadd.f32 %v1594_v55, %v5941_v26 }
 0x222   : > { %v1405_v62 = vpop.f32.mrb[6].mxu1  ;;  %v1598_v63 = vpop.f32.mrb[70].mxu0  ;;  %2299 = vmatprep.mubr.bf16.mxu1 %v1808_v56  ;;  %v1404_v7 = vadd.f32 %v1403_v59, %v5944_v35  ;;  %v5980_v8 = vadd.f32 %v1596_v60, %v5946_v36  ;;  %v5089_v59 = vld [vmem:[#allocation5 + $0x140] ss:$8 sps:$4 sm:$0xff]  }
 0x223   : > { %v1406_v3 = vadd.f32 %v1405_v62, %v5939_v34  ;;  %v5976_v4 = vadd.f32 %v1598_v63, %v5941_v26  ;;  %v1407_v5 = vpop.f32.mrb[7].mxu1  ;;  %v1600_v6 = vpop.f32.mrb[71].mxu0  ;;  %2300 = vmatmul.mubr.bf16.vlgmr.msra.gmra.mrb[64].mxu1 %v1807_v58  ;;  %v5094_v63 = vld [vmem:[#allocation5 + $0x154] ss:$8 sps:$4 sm:$0xff]  }
 0x224   : > { %v1408_v9 = vadd.f32 %v1407_v5, %v5944_v35  ;;  %v5984_v10 = vadd.f32 %v1600_v6, %v5946_v36  ;;  %2461 = vmatpush1.bf16.msra.mxu1 %v5077_v57 }
 0x225   : > { %v1747_v12 = vpack.c.bf16 %v1406_v3, %v1402_v1  ;;  %2462 = vmatprep.subr.bf16.mxu1 %v5082_v61 }
 0x226   : > { %v1748_v15 = vpack.c.bf16 %v1408_v9, %v1404_v7 }
 0x227   : > { %v1811_v23 = vmax.bf16 %v7466_v0, %v1747_v12 }
 0x228   : > { %v1411_v17 = vpop.f32.mrb[8].mxu1  ;;  %v1604_v18 = vpop.f32.mrb[72].mxu0  ;;  %v1812_v19 = vmax.bf16 %v7466_v0, %v1748_v15  ;;  %2463 = vmatpush1.bf16.msra.mxu1 %v5080_v11 }
 0x229   : > { %v1413_v21 = vpop.f32.mrb[9].mxu1  ;;  %v1606_v22 = vpop.f32.mrb[73].mxu0  ;;  %2464 = vmatprep.subr.bf16.mxu1 %v5085_v14  ;;  %v1412_v30 = vadd.f32 %v1411_v17, %v5939_v34  ;;  %v5994_v33 = vadd.f32 %v1604_v18, %v5941_v26 }
 0x22a   : > { %v1415_v32 = vpop.f32.mrb[10].mxu1  ;;  %v1608_v25 = vpop.f32.mrb[74].mxu0  ;;  %2309 = vmatprep.mubr.bf16.mxu1 %v1812_v19  ;;  %v1414_v41 = vadd.f32 %v1413_v21, %v5944_v35  ;;  %v6002_v42 = vadd.f32 %v1606_v22, %v5946_v36  ;;  %v5092_v19 = vld [vmem:[#allocation5 + $0x150] ss:$8 sps:$4 sm:$0xff]   ;;  %v5097_v22 = vld [vmem:[#allocation5 + $0x164] ss:$8 sps:$4 sm:$0xff]  }
 0x22b   : > { %v1416_v37 = vadd.f32 %v1415_v32, %v5939_v34  ;;  %v5998_v38 = vadd.f32 %v1608_v25, %v5941_v26  ;;  %v1417_v39 = vpop.f32.mrb[11].mxu1  ;;  %v1610_v40 = vpop.f32.mrb[75].mxu0  ;;  %2310 = vmatmul.mubr.bf16.gmra.mrb[68].mxu1 %v1811_v23 }
 0x22c   : > { %v1418_v44 = vadd.f32 %v1417_v39, %v5944_v35  ;;  %v6006_v45 = vadd.f32 %v1610_v40, %v5946_v36  ;;  %2465 = vmatpush1.bf16.msra.mxu1 %v5083_v20 }
 0x22d   : > { %v1751_v48 = vpack.c.bf16 %v1416_v37, %v1412_v30  ;;  %2466 = vmatprep.subr.bf16.mxu1 %v5088_v24  ;;  %v5095_v37 = vld [vmem:[#allocation5 + $0x160] ss:$8 sps:$4 sm:$0xff]  }
 0x22e   : > { %v1752_v54 = vpack.c.bf16 %v1418_v44, %v1414_v41  ;;  %v5100_v44 = vld [vmem:[#allocation5 + $0x174] ss:$8 sps:$4 sm:$0xff]  }
 0x22f   : > { %v1815_v62 = vmax.bf16 %v7466_v0, %v1751_v48 }
 0x230   : > { %v1421_v56 = vpop.f32.mrb[12].mxu1  ;;  %v1614_v57 = vpop.f32.mrb[76].mxu0  ;;  %v1816_v58 = vmax.bf16 %v7466_v0, %v1752_v54  ;;  %2467 = vmatpush1.bf16.msra.mxu1 %v5086_v46 }
 0x231   : > { %v1423_v60 = vpop.f32.mrb[13].mxu1  ;;  %v1616_v61 = vpop.f32.mrb[77].mxu0  ;;  %2468 = vmatprep.subr.bf16.mxu1 %v5091_v52  ;;  %v1422_v5 = vadd.f32 %v1421_v56, %v5939_v34  ;;  %v6016_v6 = vadd.f32 %v1614_v57, %v5941_v26 }
 0x232   : > { %v1425_v1 = vpop.f32.mrb[14].mxu1  ;;  %v1618_v3 = vpop.f32.mrb[78].mxu0  ;;  %2319 = vmatprep.mubr.bf16.mxu1 %v1816_v58  ;;  %v1424_v14 = vadd.f32 %v1423_v60, %v5944_v35  ;;  %v6024_v15 = vadd.f32 %v1616_v61, %v5946_v36 }
 0x233   : > { %v1426_v7 = vadd.f32 %v1425_v1, %v5939_v34  ;;  %v6020_v9 = vadd.f32 %v1618_v3, %v5941_v26  ;;  %v1427_v11 = vpop.f32.mrb[15].mxu1  ;;  %v1620_v12 = vpop.f32.mrb[79].mxu0  ;;  %2320 = vmatmul.mubr.bf16.gmra.mrb[72].mxu1 %v1815_v62  ;;  %v5098_v1 = vld [vmem:[#allocation5 + $0x170] ss:$8 sps:$4 sm:$0xff]  }
 0x234   : > { %v1428_v17 = vadd.f32 %v1427_v11, %v5944_v35  ;;  %v6028_v18 = vadd.f32 %v1620_v12, %v5946_v36  ;;  %2469 = vmatpush1.bf16.msra.mxu1 %v5089_v59 }
 0x235   : > { %v1755_v20 = vpack.c.bf16 %v1426_v7, %v1422_v5  ;;  %2470 = vmatprep.subr.bf16.mxu1 %v5094_v63  ;;  %v5103_v7 = vld [vmem:[#allocation5 + $0x184] ss:$8 sps:$4 sm:$0xff]  }
 0x236   : > { %v1756_v23 = vpack.c.bf16 %v1428_v17, %v1424_v14 }
 0x237   : > { %v1819_v41 = vmax.bf16 %v7466_v0, %v1755_v20  ;;  %v5101_v20 = vld [vmem:[#allocation5 + $0x180] ss:$8 sps:$4 sm:$0xff]  }
 0x238   : > { %v1431_v32 = vpop.f32.mrb[16].mxu1  ;;  %v1624_v25 = vpop.f32.mrb[80].mxu0  ;;  %v1820_v30 = vmax.bf16 %v7466_v0, %v1756_v23  ;;  %2471 = vmatpush1.bf16.msra.mxu1 %v5092_v19 }
 0x239   : > { %v1433_v39 = vpop.f32.mrb[17].mxu1  ;;  %v1626_v40 = vpop.f32.mrb[81].mxu0  ;;  %2472 = vmatprep.subr.bf16.mxu1 %v5097_v22  ;;  %v1432_v52 = vadd.f32 %v1431_v32, %v5939_v34  ;;  %v6038_v54 = vadd.f32 %v1624_v25, %v5941_v26  ;;  %v5106_v25 = vld [vmem:[#allocation5 + $0x194] ss:$8 sps:$4 sm:$0xff]  }
 0x23a   : > { %v1435_v46 = vpop.f32.mrb[18].mxu1  ;;  %v1628_v48 = vpop.f32.mrb[82].mxu0  ;;  %2329 = vmatprep.mubr.bf16.mxu1 %v1820_v30  ;;  %v1434_v60 = vadd.f32 %v1433_v39, %v5944_v35  ;;  %v6046_v61 = vadd.f32 %v1626_v40, %v5946_v36 }
 0x23b   : > { %v1436_v56 = vadd.f32 %v1435_v46, %v5939_v34  ;;  %v6042_v57 = vadd.f32 %v1628_v48, %v5941_v26  ;;  %v1437_v58 = vpop.f32.mrb[19].mxu1  ;;  %v1630_v59 = vpop.f32.mrb[83].mxu0  ;;  %2330 = vmatmul.mubr.bf16.gmra.mrb[76].mxu1 %v1819_v41 }
 0x23c   : > { %v1438_v62 = vadd.f32 %v1437_v58, %v5944_v35  ;;  %v6050_v63 = vadd.f32 %v1630_v59, %v5946_v36  ;;  %2473 = vmatpush1.bf16.msra.mxu1 %v5095_v37 }
 0x23d   : > { %v1759_v3 = vpack.c.bf16 %v1436_v56, %v1432_v52  ;;  %2474 = vmatprep.subr.bf16.mxu1 %v5100_v44 }
 0x23e   : > { %v1760_v11 = vpack.c.bf16 %v1438_v62, %v1434_v60  ;;  %v5104_v60 = vld [vmem:[#allocation5 + $0x190] ss:$8 sps:$4 sm:$0xff]  }
 0x23f   : > { %v1823_v32 = vmax.bf16 %v7466_v0, %v1759_v3  ;;  %v5109_v3 = vld [vmem:[#allocation5 + $0x1a4] ss:$8 sps:$4 sm:$0xff]  }
 0x240   : > { %v1441_v14 = vpop.f32.mrb[20].mxu1  ;;  %v1634_v17 = vpop.f32.mrb[84].mxu0  ;;  %v1824_v19 = vmax.bf16 %v7466_v0, %v1760_v11  ;;  %2475 = vmatpush1.bf16.msra.mxu1 %v5098_v1 }
 0x241   : > { %v1443_v22 = vpop.f32.mrb[21].mxu1  ;;  %v1636_v23 = vpop.f32.mrb[85].mxu0  ;;  %2476 = vmatprep.subr.bf16.mxu1 %v5103_v7  ;;  %v1442_v39 = vadd.f32 %v1441_v14, %v5939_v34  ;;  %v6060_v40 = vadd.f32 %v1634_v17, %v5941_v26 }
 0x242   : > { %v1445_v30 = vpop.f32.mrb[22].mxu1  ;;  %v1638_v37 = vpop.f32.mrb[86].mxu0  ;;  %2339 = vmatprep.mubr.bf16.mxu1 %v1824_v19  ;;  %v1444_v52 = vadd.f32 %v1443_v22, %v5944_v35  ;;  %v6068_v56 = vadd.f32 %v1636_v23, %v5946_v36  ;;  %v5107_v22 = vld [vmem:[#allocation5 + $0x1a0] ss:$8 sps:$4 sm:$0xff]  }
 0x243   : > { %v1446_v41 = vadd.f32 %v1445_v30, %v5939_v34  ;;  %v6064_v44 = vadd.f32 %v1638_v37, %v5941_v26  ;;  %v1447_v46 = vpop.f32.mrb[23].mxu1  ;;  %v1640_v48 = vpop.f32.mrb[87].mxu0  ;;  %2340 = vmatmul.mubr.bf16.gmra.mrb[80].mxu1 %v1823_v32  ;;  %v5112_v30 = vld [vmem:[#allocation5 + $0x1b4] ss:$8 sps:$4 sm:$0xff]  }
 0x244   : > { %v1448_v58 = vadd.f32 %v1447_v46, %v5944_v35  ;;  %v6072_v59 = vadd.f32 %v1640_v48, %v5946_v36  ;;  %2477 = vmatpush1.bf16.msra.mxu1 %v5101_v20 }
 0x245   : > { %v1763_v62 = vpack.c.bf16 %v1446_v41, %v1442_v39  ;;  %2478 = vmatprep.subr.bf16.mxu1 %v5106_v25 }
 0x246   : > { %v1764_v7 = vpack.c.bf16 %v1448_v58, %v1444_v52 }
 0x247   : > { %v1827_v20 = vmax.bf16 %v7466_v0, %v1763_v62 }
 0x248   : > { %v1451_v14 = vpop.f32.mrb[24].mxu1  ;;  %v1644_v17 = vpop.f32.mrb[88].mxu0  ;;  %v1828_v19 = vmax.bf16 %v7466_v0, %v1764_v7  ;;  %2479 = vmatpush1.bf16.msra.mxu1 %v5104_v60 }
 0x249   : > { %v1453_v23 = vpop.f32.mrb[25].mxu1  ;;  %v1646_v32 = vpop.f32.mrb[89].mxu0  ;;  %2480 = vmatprep.subr.bf16.mxu1 %v5109_v3  ;;  %v1452_v25 = vadd.f32 %v1451_v14, %v5939_v34  ;;  %v6082_v41 = vadd.f32 %v1644_v17, %v5941_v26  ;;  %v5110_v14 = vld [vmem:[#allocation5 + $0x1b0] ss:$8 sps:$4 sm:$0xff]  }
 0x24a   : > { %v1455_v37 = vpop.f32.mrb[26].mxu1  ;;  %v1648_v39 = vpop.f32.mrb[90].mxu0  ;;  %2349 = vmatprep.mubr.bf16.mxu1 %v1828_v19  ;;  %v1454_v60 = vadd.f32 %v1453_v23, %v5944_v35  ;;  %v6090_v62 = vadd.f32 %v1646_v32, %v5946_v36 }
 0x24b   : > { %v1456_v46 = vadd.f32 %v1455_v37, %v5939_v34  ;;  %v6086_v48 = vadd.f32 %v1648_v39, %v5941_v26  ;;  %v1457_v52 = vpop.f32.mrb[27].mxu1  ;;  %v1650_v58 = vpop.f32.mrb[91].mxu0  ;;  %2350 = vmatmul.mubr.bf16.gmra.mrb[84].mxu1 %v1827_v20  ;;  %v5115_v37 = vld [vmem:[#allocation5 + $0x1c4] ss:$8 sps:$4 sm:$0xff]  }
 0x24c   : > { %v1458_v3 = vadd.f32 %v1457_v52, %v5944_v35  ;;  %v6094_v7 = vadd.f32 %v1650_v58, %v5946_v36  ;;  %2481 = vmatpush1.bf16.msra.mxu1 %v5107_v22  ;;  %v5113_v52 = vld [vmem:[#allocation5 + $0x1c0] ss:$8 sps:$4 sm:$0xff]  }
 0x24d   : > { %v1767_v17 = vpack.c.bf16 %v1456_v46, %v1452_v25  ;;  %2482 = vmatprep.subr.bf16.mxu1 %v5112_v30  ;;  %v5118_v25 = vld [vmem:[#allocation5 + $0x1d4] ss:$8 sps:$4 sm:$0xff]  }
 0x24e   : > { %v1768_v39 = vpack.c.bf16 %v1458_v3, %v1454_v60 }
 0x24f   : > { %v1831_v22 = vmax.bf16 %v7466_v0, %v1767_v17 }
 0x250   : > { %v1461_v20 = vpop.f32.mrb[28].mxu1  ;;  %v1654_v32 = vpop.f32.mrb[92].mxu0  ;;  %v1832_v27 = vmax.bf16 %v7466_v0, %v1768_v39  ;;  %2483 = vmatpush1.bf16.msra.mxu1 %v5110_v14 }
 0x251   : > { %v1463_v58 = vpop.f32.mrb[29].mxu1  ;;  %v1656_v1 = vpop.f32.mrb[93].mxu0  ;;  %2484 = vmatprep.subr.bf16.mxu1 %v5115_v37  ;;  %v1462_v30 = vadd.f32 %v1461_v20, %v5939_v34  ;;  %v6104_v60 = vadd.f32 %v1654_v32, %v5941_v26  ;;  %v5116_v32 = vld [vmem:[#allocation5 + $0x1d0] ss:$8 sps:$4 sm:$0xff]  }
 0x252   : > { %v1465_v46 = vpop.f32.mrb[30].mxu1  ;;  %v1658_v19 = vpop.f32.mrb[94].mxu0  ;;  %2359 = vmatprep.mubr.bf16.mxu1 %v1832_v27  ;;  %v1464_v17 = vadd.f32 %v1463_v58, %v5944_v35  ;;  %v6112_v37 = vadd.f32 %v1656_v1, %v5946_v36 }
 0x253   : > { %v1466_v3 = vadd.f32 %v1465_v46, %v5939_v34  ;;  %v6108_v39 = vadd.f32 %v1658_v19, %v5941_v26  ;;  %v1467_v14 = vpop.f32.mrb[31].mxu1  ;;  %v1660_v23 = vpop.f32.mrb[95].mxu0  ;;  %2360 = vmatmul.mubr.bf16.gmra.mrb[88].mxu1 %v1831_v22  ;;  %v5121_v46 = vld [vmem:[#allocation5 + $0x1e4] ss:$8 sps:$4 sm:$0xff]  }
 0x254   : > { %v1468_v27 = vadd.f32 %v1467_v14, %v5944_v35  ;;  %v6116_v20 = vadd.f32 %v1660_v23, %v5946_v36  ;;  %2485 = vmatpush1.bf16.msra.mxu1 %v5113_v52  ;;  %v5119_v14 = vld [vmem:[#allocation5 + $0x1e0] ss:$8 sps:$4 sm:$0xff]  }
 0x255   : > { %v1771_v11 = vpack.c.bf16 %v1466_v3, %v1462_v30  ;;  %2486 = vmatprep.subr.bf16.mxu1 %v5118_v25  ;;  %v5124_v30 = vld [vmem:[#allocation5 + $0x1f4] ss:$8 sps:$4 sm:$0xff]  }
 0x256   : > { %v1772_v5 = vpack.c.bf16 %v1468_v27, %v1464_v17 }
 0x257   : > { %v1835_v52 = vmax.bf16 %v7466_v0, %v1771_v11 }
 0x258   : > { %v1471_v22 = vpop.f32.mrb[32].mxu1  ;;  %v1664_v1 = vpop.f32.mrb[96].mxu0  ;;  %v1836_v12 = vmax.bf16 %v7466_v0, %v1772_v5  ;;  %2487 = vmatpush1.bf16.msra.mxu1 %v5116_v32 }
 0x259   : > { %v1473_v23 = vpop.f32.mrb[33].mxu1  ;;  %v1666_v21 = vpop.f32.mrb[97].mxu0  ;;  %2488 = vmatprep.subr.bf16.mxu1 %v5121_v46  ;;  %v1472_v25 = vadd.f32 %v1471_v22, %v5939_v34  ;;  %v6126_v17 = vadd.f32 %v1664_v1, %v5941_v26  ;;  %v5122_v1 = vld [vmem:[#allocation5 + $0x1f0] ss:$8 sps:$4 sm:$0xff]  }
 0x25a   : > { %v1475_v3 = vpop.f32.mrb[34].mxu1  ;;  %v1668_v19 = vpop.f32.mrb[98].mxu0  ;;  %2369 = vmatprep.mubr.bf16.mxu1 %v1836_v12  ;;  %v1474_v11 = vadd.f32 %v1473_v23, %v5944_v35  ;;  %v6134_v46 = vadd.f32 %v1666_v21, %v5946_v36 }
 0x25b   : > { %v1476_v27 = vadd.f32 %v1475_v3, %v5939_v34  ;;  %v6130_v5 = vadd.f32 %v1668_v19, %v5941_v26  ;;  %v1477_v32 = vpop.f32.mrb[35].mxu1  ;;  %v1670_v58 = vpop.f32.mrb[99].mxu0  ;;  %2370 = vmatmul.mubr.bf16.gmra.mrb[92].mxu1 %v1835_v52 }
 0x25c   : > { %v1478_v12 = vadd.f32 %v1477_v32, %v5944_v35  ;;  %v6138_v22 = vadd.f32 %v1670_v58, %v5946_v36  ;;  %2489 = vmatpush1.bf16.msra.mxu1 %v5119_v14 }
 0x25d   : > { %v1775_v24 = vpack.c.bf16 %v1476_v27, %v1472_v25  ;;  %2490 = vmatprep.subr.bf16.mxu1 %v5124_v30 }
 0x25e   : > { %v1776_v3 = vpack.c.bf16 %v1478_v12, %v1474_v11 }
 0x25f   : > { %v1839_v58 = vmax.bf16 %v7466_v0, %v1775_v24 }
 0x260   : > { %v1481_v23 = vpop.f32.mrb[36].mxu1  ;;  %v1674_v50 = vpop.f32.mrb[100].mxu0  ;;  %v1840_v21 = vmax.bf16 %v7466_v0, %v1776_v3  ;;  %2491 = vmatpush1.bf16.msra.mxu1 %v5122_v1 }
 0x261   : > { %v1483_v32 = vpop.f32.mrb[37].mxu1  ;;  %v1676_v55 = vpop.f32.mrb[101].mxu0  ;;  %v1482_v25 = vadd.f32 %v1481_v23, %v5939_v34  ;;  %v6148_v30 = vadd.f32 %v1674_v50, %v5941_v26 }
 0x262   : > { %v1485_v14 = vpop.f32.mrb[38].mxu1  ;;  %v1678_v13 = vpop.f32.mrb[102].mxu0  ;;  %2379 = vmatprep.mubr.bf16.mxu1 %v1840_v21  ;;  %v1484_v1 = vadd.f32 %v1483_v32, %v5944_v35  ;;  %v6156_v24 = vadd.f32 %v1676_v55, %v5946_v36 }
 0x263   : > { %7521 = vst [vmem:[#allocation19_spill] sm:$0xff] %v6148_v30  ;;  %v1486_v27 = vadd.f32 %v1485_v14, %v5939_v34  ;;  %v6152_v11 = vadd.f32 %v1678_v13, %v5941_v26  ;;  %v1487_v12 = vpop.f32.mrb[39].mxu1  ;;  %v1680_v3 = vpop.f32.mrb[103].mxu0  ;;  %2380 = vmatmul.mubr.bf16.gmra.mrb[96].mxu1 %v1839_v58 }
 0x264   : > { %7523 = vst [vmem:[#allocation21_spill] sm:$0xff] %v6156_v24  ;;  %v1488_v21 = vadd.f32 %v1487_v12, %v5944_v35  ;;  %v6160_v23 = vadd.f32 %v1680_v3, %v5946_v36 }
 0x265   : > { %7522 = vst [vmem:[#allocation20_spill] sm:$0xff] %v6152_v11  ;;  %v1779_v50 = vpack.c.bf16 %v1486_v27, %v1482_v25 }
 0x266   : > { %v1780_v19 = vpack.c.bf16 %v1488_v21, %v1484_v1 }
 0x267   : > { %v1843_v51 = vmax.bf16 %v7466_v0, %v1779_v50 }
 0x268   : > { %v1491_v52 = vpop.f32.mrb[40].mxu1  ;;  %v1684_v58 = vpop.f32.mrb[104].mxu0  ;;  %v1844_v32 = vmax.bf16 %v7466_v0, %v1780_v19 }
 0x269   : > { %v1493_v16 = vpop.f32.mrb[41].mxu1  ;;  %v1686_v55 = vpop.f32.mrb[105].mxu0  ;;  %v1492_v25 = vadd.f32 %v1491_v52, %v5939_v34  ;;  %v6170_v27 = vadd.f32 %v1684_v58, %v5941_v26 }
 0x26a   : > { %v1495_v12 = vpop.f32.mrb[42].mxu1  ;;  %v1688_v53 = vpop.f32.mrb[106].mxu0  ;;  %2389 = vmatprep.mubr.bf16.mxu1 %v1844_v32  ;;  %v1494_v19 = vadd.f32 %v1493_v16, %v5944_v35  ;;  %v6178_v50 = vadd.f32 %v1686_v55, %v5946_v36 }
 0x26b   : > { %7524 = vst [vmem:[#allocation22_spill] sm:$0xff] %v6170_v27  ;;  %v1496_v3 = vadd.f32 %v1495_v12, %v5939_v34  ;;  %v6174_v1 = vadd.f32 %v1688_v53, %v5941_v26  ;;  %v1497_v21 = vpop.f32.mrb[43].mxu1  ;;  %v1690_v14 = vpop.f32.mrb[107].mxu0  ;;  %2390 = vmatmul.mubr.bf16.gmra.mrb[100].mxu1 %v1843_v51 }
 0x26c   : > { %7526 = vst [vmem:[#allocation24_spill] sm:$0xff] %v6178_v50  ;;  %v1498_v32 = vadd.f32 %v1497_v21, %v5944_v35  ;;  %v6182_v52 = vadd.f32 %v1690_v14, %v5946_v36 }
 0x26d   : > { %7525 = vst [vmem:[#allocation23_spill] sm:$0xff] %v6174_v1  ;;  %v1783_v58 = vpack.c.bf16 %v1496_v3, %v1492_v25 }
 0x26e   : > { %7527 = vst [vmem:[#allocation25_spill] sm:$0xff] %v6182_v52  ;;  %v1784_v13 = vpack.c.bf16 %v1498_v32, %v1494_v19 }
 0x26f   : > { %v1847_v30 = vmax.bf16 %v7528_v31, %v1783_v58 }
 0x270   : > { %v1501_v0 = vpop.f32.mrb[44].mxu1  ;;  %v1694_v51 = vpop.f32.mrb[108].mxu0  ;;  %v1848_v16 = vmax.bf16 %v7528_v31, %v1784_v13 }
 0x271   : > { %v1503_v29 = vpop.f32.mrb[45].mxu1  ;;  %v1696_v55 = vpop.f32.mrb[109].mxu0  ;;  %v1502_v14 = vadd.f32 %v1501_v0, %v5939_v34  ;;  %v6192_v25 = vadd.f32 %v1694_v51, %v5941_v26 }
 0x272   : > { %v1505_v21 = vpop.f32.mrb[46].mxu1  ;;  %v1698_v11 = vpop.f32.mrb[110].mxu0  ;;  %2399 = vmatprep.mubr.bf16.mxu1 %v1848_v16  ;;  %v1504_v13 = vadd.f32 %v1503_v29, %v5944_v35  ;;  %v6200_v58 = vadd.f32 %v1696_v55, %v5946_v36 }
 0x273   : > { %7529 = vst [vmem:[#allocation26_spill] sm:$0xff] %v6192_v25  ;;  %v1506_v3 = vadd.f32 %v1505_v21, %v5939_v34  ;;  %v6196_v19 = vadd.f32 %v1698_v11, %v5941_v26  ;;  %v1507_v32 = vpop.f32.mrb[47].mxu1  ;;  %v1700_v12 = vpop.f32.mrb[111].mxu0  ;;  %2400 = vmatmul.mubr.bf16.gmra.mrb[104].mxu1 %v1847_v30 }
 0x274   : > { %7531 = vst [vmem:[#allocation28_spill] sm:$0xff] %v6200_v58  ;;  %v1508_v16 = vadd.f32 %v1507_v32, %v5944_v35  ;;  %v6204_v0 = vadd.f32 %v1700_v12, %v5946_v36 }
 0x275   : > { %7530 = vst [vmem:[#allocation27_spill] sm:$0xff] %v6196_v19  ;;  %v1787_v51 = vpack.c.bf16 %v1506_v3, %v1502_v14 }
 0x276   : > { %7532 = vst [vmem:[#allocation29_spill] sm:$0xff] %v6204_v0  ;;  %v1788_v53 = vpack.c.bf16 %v1508_v16, %v1504_v13 }
 0x277   : > { %v1851_v50 = vmax.bf16 %v7528_v31, %v1787_v51 }
 0x278   : > { %v1511_v27 = vpop.f32.mrb[48].mxu1  ;;  %v1704_v30 = vpop.f32.mrb[112].mxu0  ;;  %v1852_v29 = vmax.bf16 %v7528_v31, %v1788_v53 }
 0x279   : > { %v1513_v1 = vpop.f32.mrb[49].mxu1  ;;  %v1706_v55 = vpop.f32.mrb[113].mxu0  ;;  %v1512_v12 = vadd.f32 %v1511_v27, %v5939_v34  ;;  %v6214_v14 = vadd.f32 %v1704_v30, %v5941_v26  ;;  %v5125_v30 = vld [vmem:[%s7448_s7 + $0x40] sm:$0xff]  }
 0x27a   : > { %v1515_v32 = vpop.f32.mrb[50].mxu1  ;;  %v1708_v52 = vpop.f32.mrb[114].mxu0  ;;  %2409 = vmatprep.mubr.bf16.mxu1 %v1852_v29  ;;  %v1514_v53 = vadd.f32 %v1513_v1, %v5944_v35  ;;  %v6222_v51 = vadd.f32 %v1706_v55, %v5946_v36  ;;  %4438 = vmatprep.subr.bf16.mxu0 %v5125_v30 }
 0x27b   : > { %7533 = vst [vmem:[#allocation30_spill] sm:$0xff] %v6214_v14  ;;  %v1516_v3 = vadd.f32 %v1515_v32, %v5939_v34  ;;  %v6218_v13 = vadd.f32 %v1708_v52, %v5941_v26  ;;  %v1517_v16 = vpop.f32.mrb[51].mxu1  ;;  %v1710_v21 = vpop.f32.mrb[115].mxu0  ;;  %2410 = vmatmul.mubr.bf16.gmra.mrb[108].mxu1 %v1851_v50  ;;  %v5126_v52 = vld [vmem:[%s7448_s7] sm:$0xff]  }
 0x27c   : > { %7535 = vst [vmem:[#allocation32_spill] sm:$0xff] %v6222_v51  ;;  %v1518_v29 = vadd.f32 %v1517_v16, %v5944_v35  ;;  %v6226_v27 = vadd.f32 %v1710_v21, %v5946_v36  ;;  %4439 = vmatpush3.bf16.msra.mxu0 %v5126_v52 }
 0x27d   : > { %7534 = vst [vmem:[#allocation31_spill] sm:$0xff] %v6218_v13  ;;  %v1791_v32 = vpack.c.bf16 %v1516_v3, %v1512_v12 }
 0x27e   : > { %7536 = vst [vmem:[#allocation33_spill] sm:$0xff] %v6226_v27  ;;  %v1792_v50 = vpack.c.bf16 %v1518_v29, %v1514_v53 }
 0x27f   : > { %v1855_v58 = vmax.bf16 %v7528_v31, %v1791_v32 }
 0x280   : > { %v1521_v21 = vpop.f32.mrb[52].mxu1  ;;  %v1714_v16 = vpop.f32.mrb[116].mxu0  ;;  %v1856_v11 = vmax.bf16 %v7528_v31, %v1792_v50 }
 0x281   : > { %v1523_v25 = vpop.f32.mrb[53].mxu1  ;;  %v1716_v19 = vpop.f32.mrb[117].mxu0  ;;  %v1522_v12 = vadd.f32 %v1521_v21, %v5939_v34  ;;  %v6242_v3 = vadd.f32 %v1714_v16, %v5941_v26 }
 0x282   : > { %v1525_v0 = vpop.f32.mrb[54].mxu1  ;;  %v1718_v24 = vpop.f32.mrb[118].mxu0  ;;  %2419 = vmatprep.mubr.bf16.mxu1 %v1856_v11  ;;  %v1524_v50 = vadd.f32 %v1523_v25, %v5944_v35  ;;  %v6250_v32 = vadd.f32 %v1716_v19, %v5946_v36 }
 0x283   : > { %7537 = vst [vmem:[#allocation34_spill] sm:$0xff] %v6242_v3  ;;  %v1526_v53 = vadd.f32 %v1525_v0, %v5939_v34  ;;  %v6246_v29 = vadd.f32 %v1718_v24, %v5941_v26  ;;  %v1527_v30 = vpop.f32.mrb[55].mxu1  ;;  %v1720_v52 = vpop.f32.mrb[119].mxu0  ;;  %2420 = vmatmul.mubr.bf16.gmra.mrb[112].mxu1 %v1855_v58 }
 0x284   : > { %7539 = vst [vmem:[#allocation36_spill] sm:$0xff] %v6250_v32  ;;  %v1528_v11 = vadd.f32 %v1527_v30, %v5944_v35  ;;  %v6254_v21 = vadd.f32 %v1720_v52, %v5946_v36 }
 0x285   : > { %7538 = vst [vmem:[#allocation35_spill] sm:$0xff] %v6246_v29  ;;  %v1795_v16 = vpack.c.bf16 %v1526_v53, %v1522_v12 }
 0x286   : > { %7540 = vst [vmem:[#allocation37_spill] sm:$0xff] %v6254_v21  ;;  %v1796_v1 = vpack.c.bf16 %v1528_v11, %v1524_v50 }
 0x287   : > { %v1859_v13 = vmax.bf16 %v7528_v31, %v1795_v16 }
 0x288   : > { %v1531_v55 = vpop.f32.mrb[56].mxu1  ;;  %v1724_v58 = vpop.f32.mrb[120].mxu0  ;;  %v1860_v25 = vmax.bf16 %v7528_v31, %v1796_v1 }
 0x289   : > { %v1533_v14 = vpop.f32.mrb[57].mxu1  ;;  %v1726_v19 = vpop.f32.mrb[121].mxu0  ;;  %v1532_v12 = vadd.f32 %v1531_v55, %v5939_v34  ;;  %v6264_v53 = vadd.f32 %v1724_v58, %v5941_v26  ;;  %v5127_v58 = vld [vmem:[%s7448_s7 + $0x48] sm:$0xff]  }
 0x28a   : > { %v1535_v30 = vpop.f32.mrb[58].mxu1  ;;  %v1728_v51 = vpop.f32.mrb[122].mxu0  ;;  %2429 = vmatprep.mubr.bf16.mxu1 %v1860_v25  ;;  %v1534_v1 = vadd.f32 %v1533_v14, %v5944_v35  ;;  %v6272_v16 = vadd.f32 %v1726_v19, %v5946_v36  ;;  %4440 = vmatprep.subr.bf16.mxu0 %v5127_v58 }
 0x28b   : > { %v1536_v52 = vadd.f32 %v1535_v30, %v5939_v34  ;;  %v6268_v50 = vadd.f32 %v1728_v51, %v5941_v26  ;;  %v1537_v11 = vpop.f32.mrb[59].mxu1  ;;  %v1730_v0 = vpop.f32.mrb[123].mxu0  ;;  %2430 = vmatmul.mubr.bf16.gmra.mrb[116].mxu1 %v1859_v13  ;;  %v5128_v51 = vld [vmem:[%s7448_s7 + $0x8] sm:$0xff]  }
 0x28c   : > { %v1538_v25 = vadd.f32 %v1537_v11, %v5944_v35  ;;  %v6276_v55 = vadd.f32 %v1730_v0, %v5946_v36  ;;  %4441 = vmatpush3.bf16.msra.mxu0 %v5128_v51 }
 0x28d   : > { %v1799_v30 = vpack.c.bf16 %v1536_v52, %v1532_v12  ;;  %v1801_v14 = vpack.c.bf16 %v6268_v50, %v6264_v53  ;;  %v7588_v53 = vld [vmem:[#allocation17_spill] sm:$0xff] }
 0x28e   : > { %v1800_v13 = vpack.c.bf16 %v1538_v25, %v1534_v1  ;;  %v1802_v19 = vpack.c.bf16 %v6276_v55, %v6272_v16  ;;  %v1935_v55 = vld [vmem:[%s7447_s6] sm:$0x3] }
 0x28f   : > { %v1863_v32 = vmax.bf16 %v7528_v31, %v1799_v30  ;;  %v6480_v50 = vrot.slane %v1935_v55, %v7588_v53 }
 0x290   : > { %v1541_v0 = vpop.f32.mrb[60].mxu1  ;;  %v1734_v11 = vpop.f32.mrb[124].mxu0  ;;  %v1864_v24 = vmax.bf16 %v7528_v31, %v1800_v13 }
 0x291   : > { %v1543_v3 = vpop.f32.mrb[61].mxu1  ;;  %v1736_v29 = vpop.f32.mrb[125].mxu0  ;;  %v1542_v12 = vadd.f32 %v1541_v0, %v5939_v34  ;;  %v6292_v52 = vadd.f32 %v1734_v11, %v5941_v26 }
 0x292   : > { %v1545_v21 = vpop.f32.mrb[62].mxu1  ;;  %v1738_v27 = vpop.f32.mrb[126].mxu0  ;;  %2439 = vmatprep.mubr.bf16.mxu1 %v1864_v24  ;;  %v1544_v13 = vadd.f32 %v1543_v3, %v5944_v35  ;;  %v6300_v30 = vadd.f32 %v1736_v29, %v5946_v36  ;;  %v7541_v29 = vpack.c.bf16 %v5962_v49, %v5958_v47  ;;  %v5132_v47 = vld [vmem:[%s7448_s7 + $0x18] sm:$0xff]   ;;  %v5133_v49 = vld [vmem:[%s7448_s7 + $0x60] sm:$0xff]  }
 0x293   : > { %v1546_v1 = vadd.f32 %v1545_v21, %v5939_v34  ;;  %v6296_v25 = vadd.f32 %v1738_v27, %v5941_v26  ;;  %v1547_v58 = vpop.f32.mrb[63].mxu1  ;;  %v1740_v51 = vpop.f32.mrb[127].mxu0  ;;  %2440 = vmatmul.mubr.bf16.gmra.mrb[120].mxu1 %v1863_v32  ;;  %v5130_v32 = vld [vmem:[%s7448_s7 + $0x10] sm:$0xff]  }
 0x294   : > { %v1548_v24 = vadd.f32 %v1547_v58, %v5944_v35  ;;  %v6304_v0 = vadd.f32 %v1740_v51, %v5946_v36  ;;  %v1810_v35 = vmax.bf16 %v7528_v31, %v7541_v29  ;;  %v5129_v36 = vld [vmem:[%s7448_s7 + $0x50] sm:$0xff]   ;;  %v7543_v51 = vpack.c.bf16 %v5984_v10, %v5980_v8  ;;  %v5139_v29 = vld [vmem:[%s7448_s7 + $0x78] sm:$0xff]  }
 0x295   : > { %v1803_v11 = vpack.c.bf16 %v1546_v1, %v1542_v12  ;;  %v1805_v34 = vpack.c.bf16 %v6296_v25, %v6292_v52  ;;  %v5131_v12 = vld [vmem:[%s7448_s7 + $0x58] sm:$0xff]   ;;  %4442 = vmatprep.subr.bf16.mxu0 %v5129_v36  ;;  %v7542_v1 = vpack.c.bf16 %v5954_v43, %v5950_v28  ;;  %v5136_v28 = vld [vmem:[%s7448_s7 + $0x28] sm:$0xff]   ;;  %v5137_v43 = vld [vmem:[%s7448_s7 + $0x70] sm:$0xff]   ;;  %v7544_v8 = vpack.c.bf16 %v5976_v4, %v5972_v2 }
 0x296   : > { %v1804_v21 = vpack.c.bf16 %v1548_v24, %v1544_v13  ;;  %v1806_v26 = vpack.c.bf16 %v6304_v0, %v6300_v30  ;;  %4443 = vmatpush3.bf16.msra.mxu0 %v5130_v32  ;;  %v1814_v13 = vmax.bf16 %v7528_v31, %v7543_v51  ;;  %v5134_v24 = vld [vmem:[%s7448_s7 + $0x20] sm:$0xff]   ;;  %v5140_v2 = vld [vmem:[%s7448_s7 + $0x38] sm:$0xff]   ;;  %v7546_v4 = vpack.c.bf16 %v5998_v38, %v5994_v33 }
 0x297   : > { %v1867_v3 = vmax.bf16 %v7528_v31, %v1803_v11  ;;  %4444 = vmatprep.subr.bf16.mxu0 %v5131_v12  ;;  %v1809_v58 = vmax.bf16 %v7528_v31, %v7542_v1  ;;  %v5135_v11 = vld [vmem:[%s7448_s7 + $0x68] sm:$0xff]   ;;  %v1813_v10 = vmax.bf16 %v7528_v31, %v7544_v8  ;;  %v7548_v36 = vpack.c.bf16 %v6020_v9, %v6016_v6 }
 0x298   : > { %v1868_v27 = vmax.bf16 %v7528_v31, %v1804_v21  ;;  %v7545_v21 = vpack.c.bf16 %v6006_v45, %v6002_v42  ;;  %v1817_v42 = vmax.bf16 %v7528_v31, %v7546_v4  ;;  %v7547_v45 = vpack.c.bf16 %v6028_v18, %v6024_v15 }
 0x299   : > { %v1821_v32 = vmax.bf16 %v7528_v31, %v7548_v36  ;;  %v7549_v12 = vpack.c.bf16 %v6050_v63, %v6046_v61  ;;  %v7550_v38 = vpack.c.bf16 %v6042_v57, %v6038_v54  ;;  %v7551_v18 = vpack.c.bf16 %v6072_v59, %v6068_v56 }
 0x29a   : > { %2449 = vmatprep.mubr.bf16.mxu1 %v1868_v27  ;;  %4445 = vmatpush3.bf16.msra.mxu0 %v5132_v47  ;;  %v1818_v27 = vmax.bf16 %v7528_v31, %v7545_v21  ;;  %v7552_v6 = vpack.c.bf16 %v6064_v44, %v6060_v40  ;;  %v7553_v61 = vpack.c.bf16 %v6094_v7, %v6090_v62  ;;  %v7574_v21 = vld [vmem:[#allocation26_spill] sm:$0xff] }
 0x29b   : > { %2450 = vmatmul.mubr.bf16.gmra.mrb[124].mxu1 %v1867_v3  ;;  %4446 = vmatprep.subr.bf16.mxu0 %v5133_v49  ;;  %v5138_v3 = vld [vmem:[%s7448_s7 + $0x30] sm:$0xff]   ;;  %v1826_v33 = vmax.bf16 %v7528_v31, %v7549_v12  ;;  %v1825_v15 = vmax.bf16 %v7528_v31, %v7550_v38  ;;  %v1830_v47 = vmax.bf16 %v7528_v31, %v7551_v18  ;;  %v7582_v12 = vld [vmem:[#allocation37_spill] sm:$0xff] }
 0x29c   : > { %2492 = vmatprep.mubr.bf16.mxu1 %v1810_v35  ;;  %v1822_v35 = vmax.bf16 %v7528_v31, %v7547_v45  ;;  %v1829_v9 = vmax.bf16 %v7528_v31, %v7552_v6  ;;  %v1834_v63 = vmax.bf16 %v7528_v31, %v7553_v61  ;;  %v7554_v54 = vpack.c.bf16 %v6086_v48, %v6082_v41  ;;  %v7579_v45 = vld [vmem:[#allocation31_spill] sm:$0xff] }
 0x29d   : > { %v7555_v56 = vpack.c.bf16 %v6116_v20, %v6112_v37  ;;  %v7556_v40 = vpack.c.bf16 %v6108_v39, %v6104_v60  ;;  %v7557_v62 = vpack.c.bf16 %v6138_v22, %v6134_v46  ;;  %v7558_v41 = vpack.c.bf16 %v6130_v5, %v6126_v17  ;;  %v7559_v37 = vld [vmem:[#allocation21_spill] sm:$0xff]  ;;  %v7561_v60 = vld [vmem:[#allocation20_spill] sm:$0xff]  ;;  %v7562_v39 = vld [vmem:[#allocation19_spill] sm:$0xff] }
 0x29e   : > { %4447 = vmatpush3.bf16.msra.mxu0 %v5134_v24  ;;  %v1833_v57 = vmax.bf16 %v7528_v31, %v7554_v54  ;;  %v7560_v20 = vpack.c.bf16 %v6160_v23, %v7559_v37  ;;  %v7563_v1 = vpack.c.bf16 %v7561_v60, %v7562_v39  ;;  %v7564_v22 = vld [vmem:[#allocation25_spill] sm:$0xff]  ;;  %v7567_v17 = vld [vmem:[#allocation23_spill] sm:$0xff]  ;;  %v7568_v5 = vld [vmem:[#allocation22_spill] sm:$0xff]  ;;  %v1866_v61 = vmax.bf16 %v7528_v31, %v1802_v19 }
 0x29f   : > { %4448 = vmatprep.subr.bf16.mxu0 %v5135_v11  ;;  %v1838_v59 = vmax.bf16 %v7528_v31, %v7555_v56  ;;  %v1837_v44 = vmax.bf16 %v7528_v31, %v7556_v40  ;;  %v1842_v7 = vmax.bf16 %v7528_v31, %v7557_v62  ;;  %v1841_v48 = vmax.bf16 %v7528_v31, %v7558_v41  ;;  %v7570_v11 = vld [vmem:[#allocation29_spill] sm:$0xff]  ;;  %v7585_v18 = vld [vmem:[#allocation35_spill] sm:$0xff]  ;;  %v7589_v19 = vld [vmem:[#allocation18_spill] sm:$0xff] }
 0x2a0   : > { %v1846_v49 = vmax.bf16 %v7528_v31, %v7560_v20  ;;  %v1845_v46 = vmax.bf16 %v7528_v31, %v7563_v1  ;;  %v7569_v24 = vpack.c.bf16 %v7567_v17, %v7568_v5  ;;  %v1870_v54 = vmax.bf16 %v7528_v31, %v1806_v26  ;;  %v5142_v37 = vld [vmem:[%s7450_s9 + $0x8] sm:$0xff]  }
 0x2a1   : > { %v1869_v16 = vmax.bf16 %v7528_v31, %v1805_v34  ;;  %v6483_v30 = vrot.slane %v1935_v55, %v7589_v19  ;;  %v5141_v34 = vld [vmem:[%s7450_s9] sm:$0xff]  }
 0x2a2   : > { %4449 = vmatpush3.bf16.msra.mxu0 %v5136_v28  ;;  %v1849_v23 = vmax.bf16 %v7528_v31, %v7569_v24  ;;  %v7571_v28 = vld [vmem:[#allocation28_spill] sm:$0xff] }
 0x2a3   : > { %2493 = vmatmul.mubr.bf16.vlgmr.msra.gmra.mrb[64].mxu1 %v1809_v58  ;;  %4450 = vmatprep.subr.bf16.mxu0 %v5137_v43  ;;  %v7565_v58 = vld [vmem:[#allocation24_spill] sm:$0xff]  ;;  %v7572_v43 = vpack.c.bf16 %v7570_v11, %v7571_v28 }
 0x2a4   : > { %2502 = vmatprep.mubr.bf16.mxu1 %v1814_v13  ;;  %v7566_v51 = vpack.c.bf16 %v7564_v22, %v7565_v58  ;;  %v5143_v58 = vld [vmem:[%s7450_s9 + $0x10] sm:$0xff]  }
 0x2a5   : > { %v1854_v8 = vmax.bf16 %v7528_v31, %v7572_v43 }
 0x2a6   : > { %4451 = vmatpush3.bf16.msra.mxu0 %v5138_v3  ;;  %v1850_v13 = vmax.bf16 %v7528_v31, %v7566_v51 }
 0x2a7   : > { %4452 = vmatprep.subr.bf16.mxu0 %v5139_v29  ;;  %v7576_v29 = vld [vmem:[#allocation33_spill] sm:$0xff] }
 0x2aa   : > { %4453 = vmatpush3.bf16.msra.mxu0 %v5140_v2  ;;  %v7577_v2 = vld [vmem:[#allocation32_spill] sm:$0xff] }
 0x2ab   : > { %2503 = vmatmul.mubr.bf16.gmra.mrb[68].mxu1 %v1813_v10  ;;  %v7573_v10 = vld [vmem:[#allocation27_spill] sm:$0xff]  ;;  %v7578_v4 = vpack.c.bf16 %v7576_v29, %v7577_v2  ;;  %4598 = vmatprep.subr.bf16.mxu0 %v5141_v34 }
 0x2ac   : > { %2512 = vmatprep.mubr.bf16.mxu1 %v1818_v27  ;;  %v7575_v27 = vpack.c.bf16 %v7573_v10, %v7574_v21 }
 0x2ae   : > { %v1853_v3 = vmax.bf16 %v7528_v31, %v7575_v27 }
 0x2b3   : > { %2513 = vmatmul.mubr.bf16.gmra.mrb[72].mxu1 %v1817_v42  ;;  %v1858_v42 = vmax.bf16 %v7528_v31, %v7578_v4 }
 0x2b4   : > { %2522 = vmatprep.mubr.bf16.mxu1 %v1822_v35  ;;  %v7580_v35 = vld [vmem:[#allocation30_spill] sm:$0xff] }
 0x2b5   : > { %v7581_v36 = vpack.c.bf16 %v7579_v45, %v7580_v35 }
 0x2bb   : > { %2523 = vmatmul.mubr.bf16.gmra.mrb[76].mxu1 %v1821_v32  ;;  %v1857_v32 = vmax.bf16 %v7528_v31, %v7581_v36 }
 0x2bc   : > { %2532 = vmatprep.mubr.bf16.mxu1 %v1826_v33  ;;  %v7583_v33 = vld [vmem:[#allocation36_spill] sm:$0xff] }
 0x2bd   : > { %v7584_v38 = vpack.c.bf16 %v7582_v12, %v7583_v33 }
 0x2c3   : > { %2533 = vmatmul.mubr.bf16.gmra.mrb[80].mxu1 %v1825_v15  ;;  %v1862_v15 = vmax.bf16 %v7528_v31, %v7584_v38 }
 0x2c4   : > { %2542 = vmatprep.mubr.bf16.mxu1 %v1830_v47  ;;  %v7586_v47 = vld [vmem:[#allocation34_spill] sm:$0xff] }
 0x2c5   : > { %v7587_v6 = vpack.c.bf16 %v7585_v18, %v7586_v47 }
 0x2cb   : > { %2543 = vmatmul.mubr.bf16.gmra.mrb[84].mxu1 %v1829_v9  ;;  %v1861_v9 = vmax.bf16 %v7528_v31, %v7587_v6 }
 0x2cc   : > { %2552 = vmatprep.mubr.bf16.mxu1 %v1834_v63  ;;  %v1865_v63 = vmax.bf16 %v7528_v31, %v1801_v14 }
 0x2d3   : > { %2553 = vmatmul.mubr.bf16.gmra.mrb[88].mxu1 %v1833_v57 }
 0x2d4   : > { %2562 = vmatprep.mubr.bf16.mxu1 %v1838_v59 }
 0x2db   : > { %2563 = vmatmul.mubr.bf16.gmra.mrb[92].mxu1 %v1837_v44 }
 0x2dc   : > { %2572 = vmatprep.mubr.bf16.mxu1 %v1842_v7 }
 0x2e3   : > { %2573 = vmatmul.mubr.bf16.gmra.mrb[96].mxu1 %v1841_v48 }
 0x2e4   : > { %2582 = vmatprep.mubr.bf16.mxu1 %v1846_v49 }
 0x2eb   : > { %2583 = vmatmul.mubr.bf16.gmra.mrb[100].mxu1 %v1845_v46 }
 0x2ec   : > { %2592 = vmatprep.mubr.bf16.mxu1 %v1850_v13 }
 0x2f3   : > { %2593 = vmatmul.mubr.bf16.gmra.mrb[104].mxu1 %v1849_v23  ;;  %v5144_v23 = vld [vmem:[%s7450_s9 + $0x18] sm:$0xff]  }
 0x2f4   : > { %2602 = vmatprep.mubr.bf16.mxu1 %v1854_v8 }
 0x2fb   : > { %2603 = vmatmul.mubr.bf16.gmra.mrb[108].mxu1 %v1853_v3 }
 0x2fc   : > { %2612 = vmatprep.mubr.bf16.mxu1 %v1858_v42 }
 0x303   : > { %2613 = vmatmul.mubr.bf16.gmra.mrb[112].mxu1 %v1857_v32 }
 0x304   : > { %2622 = vmatprep.mubr.bf16.mxu1 %v1862_v15 }
 0x30b   : > { %2623 = vmatmul.mubr.bf16.gmra.mrb[116].mxu1 %v1861_v9 }
 0x30c   : > { %2632 = vmatprep.mubr.bf16.mxu1 %v1866_v61 }
 0x313   : > { %2633 = vmatmul.mubr.bf16.gmra.mrb[120].mxu1 %v1865_v63 }
 0x314   : > { %2642 = vmatprep.mubr.bf16.mxu1 %v1870_v54 }
 0x31b   : > { %2643 = vmatmul.mubr.bf16.gmra.mrb[124].mxu1 %v1869_v16 }
 0x376   : > { %v2494_v14 = vpop.f32.mrb[64].mxu1 }
 0x377   : > { %v2496_v0 = vpop.f32.mrb[65].mxu1  ;;  %v4710_v57 = vadd.f32 %v2494_v14, %v6480_v50 }
 0x378   : > { %v2498_v26 = vpop.f32.mrb[66].mxu1  ;;  %v4711_v56 = vadd.f32 %v2496_v0, %v6483_v30 }
 0x379   : > { %v4712_v52 = vadd.f32 %v2498_v26, %v6480_v50  ;;  %v2500_v25 = vpop.f32.mrb[67].mxu1 }
 0x37a   : > { %v4713_v59 = vadd.f32 %v2500_v25, %v6483_v30 }
 0x37b   : > { %v2653_v40 = vpack.c.bf16 %v4712_v52, %v4710_v57 }
 0x37c   : > { %v2654_v44 = vpack.c.bf16 %v4713_v59, %v4711_v56 }
 0x37d   : > { %v2685_v41 = vmax.bf16 %v7528_v31, %v2653_v40 }
 0x37e   : > { %v2504_v62 = vpop.f32.mrb[68].mxu1  ;;  %v2686_v7 = vmax.bf16 %v7528_v31, %v2654_v44 }
 0x37f   : > { %v2506_v48 = vpop.f32.mrb[69].mxu1  ;;  %v4714_v49 = vadd.f32 %v2504_v62, %v6480_v50 }
 0x380   : > { %v2508_v20 = vpop.f32.mrb[70].mxu1  ;;  %2884 = vmatprep.mubr.bf16.mxu0 %v2686_v7  ;;  %v4715_v1 = vadd.f32 %v2506_v48, %v6483_v30 }
 0x381   : > { %v4716_v60 = vadd.f32 %v2508_v20, %v6480_v50  ;;  %v2510_v39 = vpop.f32.mrb[71].mxu1  ;;  %2885 = vmatmul.mubr.bf16.vlgmr.msra.gmra.mrb[128].mxu0 %v2685_v41 }
 0x382   : > { %v4717_v46 = vadd.f32 %v2510_v39, %v6483_v30  ;;  %4599 = vmatpush3.bf16.msra.mxu0 %v5141_v34 }
 0x383   : > { %v2655_v22 = vpack.c.bf16 %v4716_v60, %v4714_v49  ;;  %4600 = vmatprep.subr.bf16.mxu0 %v5142_v37 }
 0x384   : > { %v2656_v51 = vpack.c.bf16 %v4717_v46, %v4715_v1 }
 0x385   : > { %v2687_v24 = vmax.bf16 %v7528_v31, %v2655_v22 }
 0x386   : > { %v2514_v13 = vpop.f32.mrb[72].mxu1  ;;  %v2688_v17 = vmax.bf16 %v7528_v31, %v2656_v51  ;;  %4601 = vmatpush3.bf16.msra.mxu0 %v5142_v37 }
 0x387   : > { %v2516_v5 = vpop.f32.mrb[73].mxu1  ;;  %4602 = vmatprep.subr.bf16.mxu0 %v5143_v58  ;;  %v4718_v28 = vadd.f32 %v2514_v13, %v6480_v50 }
 0x388   : > { %v2518_v11 = vpop.f32.mrb[74].mxu1  ;;  %2892 = vmatprep.mubr.bf16.mxu0 %v2688_v17  ;;  %v4719_v10 = vadd.f32 %v2516_v5, %v6483_v30 }
 0x389   : > { %v4720_v43 = vadd.f32 %v2518_v11, %v6480_v50  ;;  %v2520_v8 = vpop.f32.mrb[75].mxu1  ;;  %2893 = vmatmul.mubr.bf16.gmra.mrb[132].mxu0 %v2687_v24 }
 0x38a   : > { %v4721_v21 = vadd.f32 %v2520_v8, %v6483_v30  ;;  %4603 = vmatpush3.bf16.msra.mxu0 %v5143_v58 }
 0x38b   : > { %v2657_v27 = vpack.c.bf16 %v4720_v43, %v4718_v28  ;;  %4604 = vmatprep.subr.bf16.mxu0 %v5144_v23 }
 0x38c   : > { %v2658_v3 = vpack.c.bf16 %v4721_v21, %v4719_v10 }
 0x38d   : > { %v2689_v42 = vmax.bf16 %v7528_v31, %v2657_v27 }
 0x38e   : > { %v2524_v29 = vpop.f32.mrb[76].mxu1  ;;  %v2690_v2 = vmax.bf16 %v7528_v31, %v2658_v3  ;;  %4605 = vmatpush3.bf16.msra.mxu0 %v5144_v23 }
 0x38f   : > { %v2526_v4 = vpop.f32.mrb[77].mxu1  ;;  %v4722_v35 = vadd.f32 %v2524_v29, %v6480_v50 }
 0x390   : > { %v2528_v45 = vpop.f32.mrb[78].mxu1  ;;  %2900 = vmatprep.mubr.bf16.mxu0 %v2690_v2  ;;  %v4723_v12 = vadd.f32 %v2526_v4, %v6483_v30 }
 0x391   : > { %v4724_v36 = vadd.f32 %v2528_v45, %v6480_v50  ;;  %v2530_v32 = vpop.f32.mrb[79].mxu1  ;;  %2901 = vmatmul.mubr.bf16.gmra.mrb[136].mxu0 %v2689_v42 }
 0x392   : > { %v4725_v33 = vadd.f32 %v2530_v32, %v6483_v30 }
 0x393   : > { %v2659_v38 = vpack.c.bf16 %v4724_v36, %v4722_v35 }
 0x394   : > { %v2660_v15 = vpack.c.bf16 %v4725_v33, %v4723_v12 }
 0x395   : > { %v2691_v9 = vmax.bf16 %v7528_v31, %v2659_v38 }
 0x396   : > { %v2534_v18 = vpop.f32.mrb[80].mxu1  ;;  %v2692_v47 = vmax.bf16 %v7528_v31, %v2660_v15 }
 0x397   : > { %v2536_v6 = vpop.f32.mrb[81].mxu1  ;;  %v4726_v63 = vadd.f32 %v2534_v18, %v6480_v50 }
 0x398   : > { %v2538_v61 = vpop.f32.mrb[82].mxu1  ;;  %2908 = vmatprep.mubr.bf16.mxu0 %v2692_v47  ;;  %v4727_v55 = vadd.f32 %v2536_v6, %v6483_v30 }
 0x399   : > { %v4728_v54 = vadd.f32 %v2538_v61, %v6480_v50  ;;  %v2540_v16 = vpop.f32.mrb[83].mxu1  ;;  %2909 = vmatmul.mubr.bf16.gmra.mrb[140].mxu0 %v2691_v9 }
 0x39a   : > { %v4729_v53 = vadd.f32 %v2540_v16, %v6483_v30 }
 0x39b   : > { %v2661_v14 = vpack.c.bf16 %v4728_v54, %v4726_v63 }
 0x39c   : > { %v2662_v19 = vpack.c.bf16 %v4729_v53, %v4727_v55 }
 0x39d   : > { %v2693_v52 = vmax.bf16 %v7528_v31, %v2661_v14 }
 0x39e   : > { %v2544_v0 = vpop.f32.mrb[84].mxu1  ;;  %v2694_v26 = vmax.bf16 %v7528_v31, %v2662_v19 }
 0x39f   : > { %v2546_v57 = vpop.f32.mrb[85].mxu1  ;;  %v4730_v34 = vadd.f32 %v2544_v0, %v6480_v50 }
 0x3a0   : > { %v2548_v25 = vpop.f32.mrb[86].mxu1  ;;  %2916 = vmatprep.mubr.bf16.mxu0 %v2694_v26  ;;  %v4731_v40 = vadd.f32 %v2546_v57, %v6483_v30 }
 0x3a1   : > { %v4732_v56 = vadd.f32 %v2548_v25, %v6480_v50  ;;  %v2550_v59 = vpop.f32.mrb[87].mxu1  ;;  %2917 = vmatmul.mubr.bf16.gmra.mrb[144].mxu0 %v2693_v52 }
 0x3a2   : > { %v4733_v44 = vadd.f32 %v2550_v59, %v6483_v30 }
 0x3a3   : > { %v2663_v62 = vpack.c.bf16 %v4732_v56, %v4730_v34 }
 0x3a4   : > { %v2664_v7 = vpack.c.bf16 %v4733_v44, %v4731_v40 }
 0x3a5   : > { %v2695_v20 = vmax.bf16 %v7528_v31, %v2663_v62 }
 0x3a6   : > { %v2554_v41 = vpop.f32.mrb[88].mxu1  ;;  %v2696_v48 = vmax.bf16 %v7528_v31, %v2664_v7 }
 0x3a7   : > { %v2556_v37 = vpop.f32.mrb[89].mxu1  ;;  %v4734_v60 = vadd.f32 %v2554_v41, %v6480_v50 }
 0x3a8   : > { %v2558_v49 = vpop.f32.mrb[90].mxu1  ;;  %2924 = vmatprep.mubr.bf16.mxu0 %v2696_v48  ;;  %v4735_v46 = vadd.f32 %v2556_v37, %v6483_v30 }
 0x3a9   : > { %v4736_v39 = vadd.f32 %v2558_v49, %v6480_v50  ;;  %v2560_v1 = vpop.f32.mrb[91].mxu1  ;;  %2925 = vmatmul.mubr.bf16.gmra.mrb[148].mxu0 %v2695_v20 }
 0x3aa   : > { %v4737_v22 = vadd.f32 %v2560_v1, %v6483_v30 }
 0x3ab   : > { %v2665_v58 = vpack.c.bf16 %v4736_v39, %v4734_v60 }
 0x3ac   : > { %v2666_v51 = vpack.c.bf16 %v4737_v22, %v4735_v46 }
 0x3ad   : > { %v2697_v24 = vmax.bf16 %v7528_v31, %v2665_v58 }
 0x3ae   : > { %v2564_v13 = vpop.f32.mrb[92].mxu1  ;;  %v2698_v17 = vmax.bf16 %v7528_v31, %v2666_v51 }
 0x3af   : > { %v2566_v5 = vpop.f32.mrb[93].mxu1  ;;  %v4738_v11 = vadd.f32 %v2564_v13, %v6480_v50 }
 0x3b0   : > { %v2568_v23 = vpop.f32.mrb[94].mxu1  ;;  %2932 = vmatprep.mubr.bf16.mxu0 %v2698_v17  ;;  %v4739_v8 = vadd.f32 %v2566_v5, %v6483_v30  ;;  %v5145_v17 = vld [vmem:[%s7450_s9 + $0x20] sm:$0xff]  }
 0x3b1   : > { %v4740_v28 = vadd.f32 %v2568_v23, %v6480_v50  ;;  %v2570_v43 = vpop.f32.mrb[95].mxu1  ;;  %2933 = vmatmul.mubr.bf16.gmra.mrb[152].mxu0 %v2697_v24  ;;  %4606 = vmatprep.subr.bf16.mxu0 %v5145_v17 }
 0x3b2   : > { %v4741_v10 = vadd.f32 %v2570_v43, %v6483_v30  ;;  %4607 = vmatpush3.bf16.msra.mxu0 %v5145_v17 }
 0x3b3   : > { %v2667_v21 = vpack.c.bf16 %v4740_v28, %v4738_v11 }
 0x3b4   : > { %v2668_v27 = vpack.c.bf16 %v4741_v10, %v4739_v8 }
 0x3b5   : > { %v2699_v4 = vmax.bf16 %v7528_v31, %v2667_v21  ;;  %v5146_v21 = vld [vmem:[%s7450_s9 + $0x28] sm:$0xff]  }
 0x3b6   : > { %v2574_v3 = vpop.f32.mrb[96].mxu1  ;;  %v2700_v29 = vmax.bf16 %v7528_v31, %v2668_v27  ;;  %4608 = vmatprep.subr.bf16.mxu0 %v5146_v21 }
 0x3b7   : > { %v2576_v2 = vpop.f32.mrb[97].mxu1  ;;  %v4742_v45 = vadd.f32 %v2574_v3, %v6480_v50  ;;  %4609 = vmatpush3.bf16.msra.mxu0 %v5146_v21 }
 0x3b8   : > { %v2578_v42 = vpop.f32.mrb[98].mxu1  ;;  %2940 = vmatprep.mubr.bf16.mxu0 %v2700_v29  ;;  %v4743_v32 = vadd.f32 %v2576_v2, %v6483_v30 }
 0x3b9   : > { %v4744_v35 = vadd.f32 %v2578_v42, %v6480_v50  ;;  %v2580_v36 = vpop.f32.mrb[99].mxu1  ;;  %2941 = vmatmul.mubr.bf16.gmra.mrb[156].mxu0 %v2699_v4  ;;  %v5147_v4 = vld [vmem:[%s7450_s9 + $0x30] sm:$0xff]  }
 0x3ba   : > { %v4745_v12 = vadd.f32 %v2580_v36, %v6483_v30  ;;  %4610 = vmatprep.subr.bf16.mxu0 %v5147_v4 }
 0x3bb   : > { %v2669_v33 = vpack.c.bf16 %v4744_v35, %v4742_v45  ;;  %4611 = vmatpush3.bf16.msra.mxu0 %v5147_v4 }
 0x3bc   : > { %v2670_v38 = vpack.c.bf16 %v4745_v12, %v4743_v32 }
 0x3bd   : > { %v2701_v6 = vmax.bf16 %v7528_v31, %v2669_v33 }
 0x3be   : > { %v2584_v15 = vpop.f32.mrb[100].mxu1  ;;  %v2702_v18 = vmax.bf16 %v7528_v31, %v2670_v38 }
 0x3bf   : > { %v2586_v47 = vpop.f32.mrb[101].mxu1  ;;  %v4746_v61 = vadd.f32 %v2584_v15, %v6480_v50  ;;  %v5148_v15 = vld [vmem:[%s7450_s9 + $0x38] sm:$0xff]  }
 0x3c0   : > { %v2588_v9 = vpop.f32.mrb[102].mxu1  ;;  %2948 = vmatprep.mubr.bf16.mxu0 %v2702_v18  ;;  %v4747_v16 = vadd.f32 %v2586_v47, %v6483_v30  ;;  %4612 = vmatprep.subr.bf16.mxu0 %v5148_v15 }
 0x3c1   : > { %v4748_v63 = vadd.f32 %v2588_v9, %v6480_v50  ;;  %v2590_v54 = vpop.f32.mrb[103].mxu1  ;;  %2949 = vmatmul.mubr.bf16.gmra.mrb[160].mxu0 %v2701_v6 }
 0x3c2   : > { %v4749_v55 = vadd.f32 %v2590_v54, %v6483_v30  ;;  %4613 = vmatpush3.bf16.msra.mxu0 %v5148_v15  ;;  %v5154_v15 = vld [vmem:[%s7452_s11 + $0x28] sm:$0xff]  }
 0x3c3   : > { %v2671_v53 = vpack.c.bf16 %v4748_v63, %v4746_v61 }
 0x3c4   : > { %v2672_v14 = vpack.c.bf16 %v4749_v55, %v4747_v16 }
 0x3c5   : > { %v2703_v57 = vmax.bf16 %v7528_v31, %v2671_v53 }
 0x3c6   : > { %v2594_v19 = vpop.f32.mrb[104].mxu1  ;;  %v2704_v0 = vmax.bf16 %v7528_v31, %v2672_v14 }
 0x3c7   : > { %v2596_v26 = vpop.f32.mrb[105].mxu1  ;;  %v4750_v25 = vadd.f32 %v2594_v19, %v6480_v50 }
 0x3c8   : > { %v2598_v52 = vpop.f32.mrb[106].mxu1  ;;  %2956 = vmatprep.mubr.bf16.mxu0 %v2704_v0  ;;  %v4751_v59 = vadd.f32 %v2596_v26, %v6483_v30 }
 0x3c9   : > { %v4752_v34 = vadd.f32 %v2598_v52, %v6480_v50  ;;  %v2600_v56 = vpop.f32.mrb[107].mxu1  ;;  %2957 = vmatmul.mubr.bf16.gmra.mrb[164].mxu0 %v2703_v57 }
 0x3ca   : > { %v4753_v40 = vadd.f32 %v2600_v56, %v6483_v30 }
 0x3cb   : > { %v2673_v44 = vpack.c.bf16 %v4752_v34, %v4750_v25 }
 0x3cc   : > { %v2674_v62 = vpack.c.bf16 %v4753_v40, %v4751_v59 }
 0x3cd   : > { %v2705_v37 = vmax.bf16 %v7528_v31, %v2673_v44 }
 0x3ce   : > { %v2604_v7 = vpop.f32.mrb[108].mxu1  ;;  %v2706_v41 = vmax.bf16 %v7528_v31, %v2674_v62 }
 0x3cf   : > { %v2606_v48 = vpop.f32.mrb[109].mxu1  ;;  %v4754_v49 = vadd.f32 %v2604_v7, %v6480_v50 }
 0x3d0   : > { %v2608_v20 = vpop.f32.mrb[110].mxu1  ;;  %2964 = vmatprep.mubr.bf16.mxu0 %v2706_v41  ;;  %v4755_v1 = vadd.f32 %v2606_v48, %v6483_v30 }
 0x3d1   : > { %v4756_v60 = vadd.f32 %v2608_v20, %v6480_v50  ;;  %v2610_v39 = vpop.f32.mrb[111].mxu1  ;;  %2965 = vmatmul.mubr.bf16.gmra.mrb[168].mxu0 %v2705_v37 }
 0x3d2   : > { %v4757_v46 = vadd.f32 %v2610_v39, %v6483_v30 }
 0x3d3   : > { %v2675_v22 = vpack.c.bf16 %v4756_v60, %v4754_v49 }
 0x3d4   : > { %v2676_v58 = vpack.c.bf16 %v4757_v46, %v4755_v1 }
 0x3d5   : > { %v2707_v24 = vmax.bf16 %v7528_v31, %v2675_v22 }
 0x3d6   : > { %v2614_v51 = vpop.f32.mrb[112].mxu1  ;;  %v2708_v13 = vmax.bf16 %v7528_v31, %v2676_v58 }
 0x3d7   : > { %v2616_v5 = vpop.f32.mrb[113].mxu1  ;;  %v4758_v11 = vadd.f32 %v2614_v51, %v6480_v50 }
 0x3d8   : > { %v2618_v23 = vpop.f32.mrb[114].mxu1  ;;  %2972 = vmatprep.mubr.bf16.mxu0 %v2708_v13  ;;  %v4759_v8 = vadd.f32 %v2616_v5, %v6483_v30  ;;  %v5150_v13 = vld [vmem:[%s7452_s11 + $0x8] sm:$0xff]  }
 0x3d9   : > { %v4760_v28 = vadd.f32 %v2618_v23, %v6480_v50  ;;  %v2620_v43 = vpop.f32.mrb[115].mxu1  ;;  %2973 = vmatmul.mubr.bf16.gmra.mrb[172].mxu0 %v2707_v24 }
 0x3da   : > { %v4761_v10 = vadd.f32 %v2620_v43, %v6483_v30  ;;  %v5151_v43 = vld [vmem:[%s7452_s11 + $0x10] sm:$0xff]  }
 0x3db   : > { %v2677_v27 = vpack.c.bf16 %v4760_v28, %v4758_v11 }
 0x3dc   : > { %v2678_v3 = vpack.c.bf16 %v4761_v10, %v4759_v8 }
 0x3dd   : > { %v2709_v45 = vmax.bf16 %v7528_v31, %v2677_v27 }
 0x3de   : > { %v2624_v29 = vpop.f32.mrb[116].mxu1  ;;  %v2710_v2 = vmax.bf16 %v7528_v31, %v2678_v3  ;;  %v5152_v3 = vld [vmem:[%s7452_s11 + $0x18] sm:$0xff]  }
 0x3df   : > { %v2626_v42 = vpop.f32.mrb[117].mxu1  ;;  %v4762_v36 = vadd.f32 %v2624_v29, %v6480_v50 }
 0x3e0   : > { %v2628_v35 = vpop.f32.mrb[118].mxu1  ;;  %2980 = vmatprep.mubr.bf16.mxu0 %v2710_v2  ;;  %v4763_v33 = vadd.f32 %v2626_v42, %v6483_v30 }
 0x3e1   : > { %v4764_v32 = vadd.f32 %v2628_v35, %v6480_v50  ;;  %v2630_v12 = vpop.f32.mrb[119].mxu1  ;;  %2981 = vmatmul.mubr.bf16.gmra.mrb[176].mxu0 %v2709_v45 }
 0x3e2   : > { %v4765_v38 = vadd.f32 %v2630_v12, %v6483_v30 }
 0x3e3   : > { %v2679_v18 = vpack.c.bf16 %v4764_v32, %v4762_v36  ;;  %v5153_v36 = vld [vmem:[%s7452_s11 + $0x20] sm:$0xff]  }
 0x3e4   : > { %v2680_v47 = vpack.c.bf16 %v4765_v38, %v4763_v33 }
 0x3e5   : > { %v2711_v63 = vmax.bf16 %v7528_v31, %v2679_v18 }
 0x3e6   : > { %v2634_v6 = vpop.f32.mrb[120].mxu1  ;;  %v2712_v9 = vmax.bf16 %v7528_v31, %v2680_v47 }
 0x3e7   : > { %v2636_v61 = vpop.f32.mrb[121].mxu1  ;;  %v4766_v16 = vadd.f32 %v2634_v6, %v6480_v50 }
 0x3e8   : > { %v2638_v54 = vpop.f32.mrb[122].mxu1  ;;  %2988 = vmatprep.mubr.bf16.mxu0 %v2712_v9  ;;  %v4767_v14 = vadd.f32 %v2636_v61, %v6483_v30 }
 0x3e9   : > { %v4768_v55 = vadd.f32 %v2638_v54, %v6480_v50  ;;  %v2640_v53 = vpop.f32.mrb[123].mxu1  ;;  %2989 = vmatmul.mubr.bf16.gmra.mrb[180].mxu0 %v2711_v63 }
 0x3ea   : > { %v4769_v19 = vadd.f32 %v2640_v53, %v6483_v30 }
 0x3eb   : > { %v2681_v0 = vpack.c.bf16 %v4768_v55, %v4766_v16 }
 0x3ec   : > { %v2682_v26 = vpack.c.bf16 %v4769_v19, %v4767_v14 }
 0x3ed   : > { %v2713_v34 = vmax.bf16 %v7528_v31, %v2681_v0 }
 0x3ee   : > { %v2644_v57 = vpop.f32.mrb[124].mxu1  ;;  %v2714_v52 = vmax.bf16 %v7528_v31, %v2682_v26 }
 0x3ef   : > { %v2646_v25 = vpop.f32.mrb[125].mxu1  ;;  %v4770_v59 = vadd.f32 %v2644_v57, %v6480_v50 }
 0x3f0   : > { %v2648_v56 = vpop.f32.mrb[126].mxu1  ;;  %2996 = vmatprep.mubr.bf16.mxu0 %v2714_v52  ;;  %v4771_v62 = vadd.f32 %v2646_v25, %v6483_v30 }
 0x3f1   : > { %v4772_v40 = vadd.f32 %v2648_v56, %v6480_v50  ;;  %v2650_v44 = vpop.f32.mrb[127].mxu1  ;;  %2997 = vmatmul.mubr.bf16.gmra.mrb[184].mxu0 %v2713_v34  ;;  %v6608_v50 = vld [vmem:[%s7449_s8] ss:$0 sm:$0xff] }
 0x3f2   : > { %v4773_v7 = vadd.f32 %v2650_v44, %v6483_v30  ;;  %v5149_v30 = vld [vmem:[%s7452_s11] sm:$0xff]  }
 0x3f3   : > { %v2683_v41 = vpack.c.bf16 %v4772_v40, %v4770_v59  ;;  %4694 = vmatprep.subr.bf16.mxu1 %v5149_v30  ;;  %4646 = vmatprep.subr.bf16.mxu0 %v5149_v30 }
 0x3f4   : > { %v2684_v48 = vpack.c.bf16 %v4773_v7, %v4771_v62  ;;  %4702 = vmatpush3.bf16.msra.mxu1 %v5149_v30 }
 0x3f5   : > { %v2715_v20 = vmax.bf16 %v7528_v31, %v2683_v41  ;;  %4695 = vmatprep.subr.bf16.mxu1 %v5150_v13 }
 0x3f6   : > { %v2716_v37 = vmax.bf16 %v7528_v31, %v2684_v48 }
 0x3f8   : > { %3004 = vmatprep.mubr.bf16.mxu0 %v2716_v37  ;;  %4703 = vmatpush3.bf16.msra.mxu1 %v5150_v13 }
 0x3f9   : > { %3005 = vmatmul.mubr.bf16.gmra.mrb[188].mxu0 %v2715_v20  ;;  %4696 = vmatprep.subr.bf16.mxu1 %v5151_v43 }
 0x3fc   : > { %4704 = vmatpush3.bf16.msra.mxu1 %v5151_v43 }
 0x3fd   : > { %4697 = vmatprep.subr.bf16.mxu1 %v5152_v3 }
 0x400   : > { %4705 = vmatpush3.bf16.msra.mxu1 %v5152_v3 }
 0x401   : > { %4698 = vmatprep.subr.bf16.mxu1 %v5153_v36 }
 0x404   : > { %4706 = vmatpush3.bf16.msra.mxu1 %v5153_v36 }
 0x405   : > { %4699 = vmatprep.subr.bf16.mxu1 %v5154_v15 }
 0x408   : > { %4707 = vmatpush3.bf16.msra.mxu1 %v5154_v15 }
 0x454   : > { %v4454_v49 = vpop.f32.mrb[128].mxu0 }
 0x455   : > { %v4455_v60 = vpop.f32.mrb[129].mxu0 }
 0x456   : > { %v4456_v39 = vadd.f32 %v4455_v60, %v4454_v49  ;;  %v4457_v1 = vpop.f32.mrb[130].mxu0 }
 0x457   : > { %v4458_v46 = vpop.f32.mrb[131].mxu0 }
 0x458   : > { %v4459_v22 = vadd.f32 %v4458_v46, %v4457_v1  ;;  %v2887_v58 = vadd.f32 %v4456_v39, %v6608_v50 }
 0x45a   : > { %v2890_v51 = vadd.f32 %v4459_v22, %v6608_v50 }
 0x45c   : > { %v3013_v17 = vpack.c.bf16 %v2890_v51, %v2887_v58  ;;  %v4460_v5 = vpop.f32.mrb[132].mxu0 }
 0x45d   : > { %v4461_v24 = vpop.f32.mrb[133].mxu0 }
 0x45e   : > { %v4462_v23 = vadd.f32 %v4461_v24, %v4460_v5  ;;  %v4463_v11 = vpop.f32.mrb[134].mxu0  ;;  %v3029_v28 = vmax.bf16 %v7528_v31, %v3013_v17 }
 0x45f   : > { %v4464_v8 = vpop.f32.mrb[135].mxu0 }
 0x460   : > { %v4465_v10 = vadd.f32 %v4464_v8, %v4463_v11  ;;  %4614 = vmatprep.mubr.bf16.mxu0 %v3029_v28  ;;  %v2895_v21 = vadd.f32 %v4462_v23, %v6608_v50 }
 0x462   : > { %v2898_v27 = vadd.f32 %v4465_v10, %v6608_v50 }
 0x464   : > { %v3014_v29 = vpack.c.bf16 %v2898_v27, %v2895_v21  ;;  %v4466_v2 = vpop.f32.mrb[136].mxu0 }
 0x465   : > { %v4467_v4 = vpop.f32.mrb[137].mxu0 }
 0x466   : > { %v3030_v42 = vmax.bf16 %v7528_v31, %v3014_v29  ;;  %v4468_v45 = vadd.f32 %v4467_v4, %v4466_v2  ;;  %v4469_v35 = vpop.f32.mrb[138].mxu0 }
 0x467   : > { %v4470_v32 = vpop.f32.mrb[139].mxu0 }
 0x468   : > { %v4471_v12 = vadd.f32 %v4470_v32, %v4469_v35  ;;  %4615 = vmatmul.mubr.bf16.vlgmr.msra.gmra.mrb[192].mxu0 %v3030_v42  ;;  %v2903_v33 = vadd.f32 %v4468_v45, %v6608_v50 }
 0x469   : > { %4647 = vmatpush3.bf16.msra.mxu0 %v5149_v30 }
 0x46a   : > { %v2906_v38 = vadd.f32 %v4471_v12, %v6608_v50  ;;  %4648 = vmatprep.subr.bf16.mxu0 %v5150_v13 }
 0x46c   : > { %v3015_v18 = vpack.c.bf16 %v2906_v38, %v2903_v33  ;;  %v4472_v47 = vpop.f32.mrb[140].mxu0 }
 0x46d   : > { %v4473_v6 = vpop.f32.mrb[141].mxu0  ;;  %4649 = vmatpush3.bf16.msra.mxu0 %v5150_v13 }
 0x46e   : > { %v4474_v9 = vadd.f32 %v4473_v6, %v4472_v47  ;;  %v4475_v61 = vpop.f32.mrb[142].mxu0  ;;  %v3031_v63 = vmax.bf16 %v7528_v31, %v3015_v18  ;;  %4650 = vmatprep.subr.bf16.mxu0 %v5151_v43 }
 0x46f   : > { %v4476_v54 = vpop.f32.mrb[143].mxu0 }
 0x470   : > { %v4477_v16 = vadd.f32 %v4476_v54, %v4475_v61  ;;  %4618 = vmatprep.mubr.bf16.mxu0 %v3031_v63  ;;  %v2911_v55 = vadd.f32 %v4474_v9, %v6608_v50 }
 0x471   : > { %4651 = vmatpush3.bf16.msra.mxu0 %v5151_v43 }
 0x472   : > { %v2914_v53 = vadd.f32 %v4477_v16, %v6608_v50  ;;  %4652 = vmatprep.subr.bf16.mxu0 %v5152_v3 }
 0x474   : > { %v3016_v14 = vpack.c.bf16 %v2914_v53, %v2911_v55  ;;  %v4478_v19 = vpop.f32.mrb[144].mxu0 }
 0x475   : > { %v4479_v0 = vpop.f32.mrb[145].mxu0  ;;  %4653 = vmatpush3.bf16.msra.mxu0 %v5152_v3 }
 0x476   : > { %v4480_v26 = vadd.f32 %v4479_v0, %v4478_v19  ;;  %v4481_v57 = vpop.f32.mrb[146].mxu0  ;;  %v3032_v52 = vmax.bf16 %v7528_v31, %v3016_v14  ;;  %4654 = vmatprep.subr.bf16.mxu0 %v5153_v36 }
 0x477   : > { %v4482_v25 = vpop.f32.mrb[147].mxu0 }
 0x478   : > { %v4483_v34 = vadd.f32 %v4482_v25, %v4481_v57  ;;  %4619 = vmatmul.mubr.bf16.gmra.mrb[196].mxu0 %v3032_v52  ;;  %v2919_v56 = vadd.f32 %v4480_v26, %v6608_v50 }
 0x479   : > { %4655 = vmatpush3.bf16.msra.mxu0 %v5153_v36 }
 0x47a   : > { %v2922_v59 = vadd.f32 %v4483_v34, %v6608_v50  ;;  %4656 = vmatprep.subr.bf16.mxu0 %v5154_v15 }
 0x47c   : > { %v3017_v40 = vpack.c.bf16 %v2922_v59, %v2919_v56  ;;  %v4484_v44 = vpop.f32.mrb[148].mxu0 }
 0x47d   : > { %v4485_v62 = vpop.f32.mrb[149].mxu0  ;;  %4657 = vmatpush3.bf16.msra.mxu0 %v5154_v15 }
 0x47e   : > { %v4486_v7 = vadd.f32 %v4485_v62, %v4484_v44  ;;  %v4487_v41 = vpop.f32.mrb[150].mxu0  ;;  %v3033_v48 = vmax.bf16 %v7528_v31, %v3017_v40 }
 0x47f   : > { %v4488_v37 = vpop.f32.mrb[151].mxu0 }
 0x480   : > { %v4489_v20 = vadd.f32 %v4488_v37, %v4487_v41  ;;  %4622 = vmatprep.mubr.bf16.mxu0 %v3033_v48  ;;  %v2927_v49 = vadd.f32 %v4486_v7, %v6608_v50 }
 0x482   : > { %v2930_v60 = vadd.f32 %v4489_v20, %v6608_v50 }
 0x484   : > { %v3018_v39 = vpack.c.bf16 %v2930_v60, %v2927_v49  ;;  %v4490_v1 = vpop.f32.mrb[152].mxu0 }
 0x485   : > { %v4491_v46 = vpop.f32.mrb[153].mxu0 }
 0x486   : > { %v4492_v22 = vadd.f32 %v4491_v46, %v4490_v1  ;;  %v4493_v30 = vpop.f32.mrb[154].mxu0  ;;  %v3034_v58 = vmax.bf16 %v7528_v31, %v3018_v39 }
 0x487   : > { %v4494_v51 = vpop.f32.mrb[155].mxu0 }
 0x488   : > { %v4495_v13 = vadd.f32 %v4494_v51, %v4493_v30  ;;  %4623 = vmatmul.mubr.bf16.gmra.mrb[200].mxu0 %v3034_v58  ;;  %v2935_v17 = vadd.f32 %v4492_v22, %v6608_v50 }
 0x48a   : > { %v2938_v5 = vadd.f32 %v4495_v13, %v6608_v50 }
 0x48c   : > { %v3019_v24 = vpack.c.bf16 %v2938_v5, %v2935_v17  ;;  %v4496_v23 = vpop.f32.mrb[156].mxu0 }
 0x48d   : > { %v4497_v11 = vpop.f32.mrb[157].mxu0 }
 0x48e   : > { %v4498_v28 = vadd.f32 %v4497_v11, %v4496_v23  ;;  %v4499_v43 = vpop.f32.mrb[158].mxu0  ;;  %v3035_v8 = vmax.bf16 %v7528_v31, %v3019_v24  ;;  %v5155_v24 = vld [vmem:[%s7452_s11 + $0x30] sm:$0xff]  }
 0x48f   : > { %v4500_v10 = vpop.f32.mrb[159].mxu0  ;;  %4658 = vmatprep.subr.bf16.mxu0 %v5155_v24  ;;  %4700 = vmatprep.subr.bf16.mxu1 %v5155_v24 }
 0x490   : > { %v4501_v21 = vadd.f32 %v4500_v10, %v4499_v43  ;;  %4626 = vmatprep.mubr.bf16.mxu0 %v3035_v8  ;;  %v2943_v27 = vadd.f32 %v4498_v28, %v6608_v50  ;;  %4659 = vmatpush3.bf16.msra.mxu0 %v5155_v24 }
 0x491   : > { %4708 = vmatpush3.bf16.msra.mxu1 %v5155_v24 }
 0x492   : > { %v2946_v3 = vadd.f32 %v4501_v21, %v6608_v50  ;;  %v5156_v21 = vld [vmem:[%s7452_s11 + $0x38] sm:$0xff]  }
 0x493   : > { %4660 = vmatprep.subr.bf16.mxu0 %v5156_v21  ;;  %4701 = vmatprep.subr.bf16.mxu1 %v5156_v21 }
 0x494   : > { %v3020_v29 = vpack.c.bf16 %v2946_v3, %v2943_v27  ;;  %v4502_v2 = vpop.f32.mrb[160].mxu0  ;;  %4661 = vmatpush3.bf16.msra.mxu0 %v5156_v21 }
 0x495   : > { %v4503_v4 = vpop.f32.mrb[161].mxu0  ;;  %4709 = vmatpush3.bf16.msra.mxu1 %v5156_v21 }
 0x496   : > { %v4504_v42 = vadd.f32 %v4503_v4, %v4502_v2  ;;  %v4505_v45 = vpop.f32.mrb[162].mxu0  ;;  %v3036_v35 = vmax.bf16 %v7528_v31, %v3020_v29 }
 0x497   : > { %v4506_v36 = vpop.f32.mrb[163].mxu0 }
 0x498   : > { %v4507_v32 = vadd.f32 %v4506_v36, %v4505_v45  ;;  %4627 = vmatmul.mubr.bf16.gmra.mrb[204].mxu0 %v3036_v35  ;;  %v2951_v12 = vadd.f32 %v4504_v42, %v6608_v50 }
 0x49a   : > { %v2954_v33 = vadd.f32 %v4507_v32, %v6608_v50 }
 0x49c   : > { %v3021_v38 = vpack.c.bf16 %v2954_v33, %v2951_v12  ;;  %v4508_v15 = vpop.f32.mrb[164].mxu0 }
 0x49d   : > { %v4509_v18 = vpop.f32.mrb[165].mxu0 }
 0x49e   : > { %v4510_v47 = vadd.f32 %v4509_v18, %v4508_v15  ;;  %v4511_v6 = vpop.f32.mrb[166].mxu0  ;;  %v3037_v9 = vmax.bf16 %v7528_v31, %v3021_v38 }
 0x49f   : > { %v4512_v61 = vpop.f32.mrb[167].mxu0 }
 0x4a0   : > { %v4513_v63 = vadd.f32 %v4512_v61, %v4511_v6  ;;  %4630 = vmatprep.mubr.bf16.mxu0 %v3037_v9  ;;  %v2959_v54 = vadd.f32 %v4510_v47, %v6608_v50 }
 0x4a2   : > { %v2962_v16 = vadd.f32 %v4513_v63, %v6608_v50 }
 0x4a4   : > { %v3022_v55 = vpack.c.bf16 %v2962_v16, %v2959_v54  ;;  %v4514_v53 = vpop.f32.mrb[168].mxu0 }
 0x4a5   : > { %v4515_v14 = vpop.f32.mrb[169].mxu0 }
 0x4a6   : > { %v4516_v19 = vadd.f32 %v4515_v14, %v4514_v53  ;;  %v4517_v0 = vpop.f32.mrb[170].mxu0  ;;  %v3038_v26 = vmax.bf16 %v7528_v31, %v3022_v55 }
 0x4a7   : > { %v4518_v57 = vpop.f32.mrb[171].mxu0 }
 0x4a8   : > { %v4519_v52 = vadd.f32 %v4518_v57, %v4517_v0  ;;  %4631 = vmatmul.mubr.bf16.gmra.mrb[208].mxu0 %v3038_v26  ;;  %v2967_v25 = vadd.f32 %v4516_v19, %v6608_v50  ;;  %v6685_v19 = vld [vmem:[%s7451_s10] ss:$0 sm:$0xff] }
 0x4aa   : > { %v2970_v34 = vadd.f32 %v4519_v52, %v6608_v50 }
 0x4ac   : > { %v3023_v56 = vpack.c.bf16 %v2970_v34, %v2967_v25  ;;  %v4520_v59 = vpop.f32.mrb[172].mxu0 }
 0x4ad   : > { %v4521_v40 = vpop.f32.mrb[173].mxu0 }
 0x4ae   : > { %v4522_v44 = vadd.f32 %v4521_v40, %v4520_v59  ;;  %v4523_v62 = vpop.f32.mrb[174].mxu0  ;;  %v3039_v7 = vmax.bf16 %v7528_v31, %v3023_v56 }
 0x4af   : > { %v4524_v41 = vpop.f32.mrb[175].mxu0 }
 0x4b0   : > { %v4525_v48 = vadd.f32 %v4524_v41, %v4523_v62  ;;  %4634 = vmatprep.mubr.bf16.mxu0 %v3039_v7  ;;  %v2975_v37 = vadd.f32 %v4522_v44, %v6608_v50 }
 0x4b2   : > { %v2978_v20 = vadd.f32 %v4525_v48, %v6608_v50 }
 0x4b4   : > { %v3024_v49 = vpack.c.bf16 %v2978_v20, %v2975_v37  ;;  %v4526_v60 = vpop.f32.mrb[176].mxu0 }
 0x4b5   : > { %v4527_v39 = vpop.f32.mrb[177].mxu0 }
 0x4b6   : > { %v4528_v1 = vadd.f32 %v4527_v39, %v4526_v60  ;;  %v4529_v46 = vpop.f32.mrb[178].mxu0  ;;  %v3040_v22 = vmax.bf16 %v7528_v31, %v3024_v49 }
 0x4b7   : > { %v4530_v30 = vpop.f32.mrb[179].mxu0 }
 0x4b8   : > { %v4531_v58 = vadd.f32 %v4530_v30, %v4529_v46  ;;  %4635 = vmatmul.mubr.bf16.gmra.mrb[212].mxu0 %v3040_v22  ;;  %v2983_v51 = vadd.f32 %v4528_v1, %v6608_v50 }
 0x4ba   : > { %v2986_v13 = vadd.f32 %v4531_v58, %v6608_v50 }
 0x4bc   : > { %v3025_v17 = vpack.c.bf16 %v2986_v13, %v2983_v51  ;;  %v4532_v5 = vpop.f32.mrb[180].mxu0 }
 0x4bd   : > { %v4533_v23 = vpop.f32.mrb[181].mxu0 }
 0x4be   : > { %v4534_v11 = vadd.f32 %v4533_v23, %v4532_v5  ;;  %v4535_v28 = vpop.f32.mrb[182].mxu0  ;;  %v3041_v43 = vmax.bf16 %v7528_v31, %v3025_v17 }
 0x4bf   : > { %v4536_v8 = vpop.f32.mrb[183].mxu0 }
 0x4c0   : > { %v4537_v10 = vadd.f32 %v4536_v8, %v4535_v28  ;;  %4638 = vmatprep.mubr.bf16.mxu0 %v3041_v43  ;;  %v2991_v27 = vadd.f32 %v4534_v11, %v6608_v50 }
 0x4c2   : > { %v2994_v3 = vadd.f32 %v4537_v10, %v6608_v50 }
 0x4c4   : > { %v3026_v29 = vpack.c.bf16 %v2994_v3, %v2991_v27  ;;  %v4538_v2 = vpop.f32.mrb[184].mxu0 }
 0x4c5   : > { %v4539_v4 = vpop.f32.mrb[185].mxu0 }
 0x4c6   : > { %v4540_v42 = vadd.f32 %v4539_v4, %v4538_v2  ;;  %v4541_v45 = vpop.f32.mrb[186].mxu0  ;;  %v3042_v35 = vmax.bf16 %v7528_v31, %v3026_v29 }
 0x4c7   : > { %v4542_v36 = vpop.f32.mrb[187].mxu0 }
 0x4c8   : > { %v4543_v32 = vadd.f32 %v4542_v36, %v4541_v45  ;;  %4639 = vmatmul.mubr.bf16.gmra.mrb[216].mxu0 %v3042_v35  ;;  %v2999_v12 = vadd.f32 %v4540_v42, %v6608_v50 }
 0x4ca   : > { %v3002_v33 = vadd.f32 %v4543_v32, %v6608_v50 }
 0x4cc   : > { %v3027_v38 = vpack.c.bf16 %v3002_v33, %v2999_v12  ;;  %v4544_v15 = vpop.f32.mrb[188].mxu0 }
 0x4cd   : > { %v4545_v18 = vpop.f32.mrb[189].mxu0 }
 0x4ce   : > { %v4546_v47 = vadd.f32 %v4545_v18, %v4544_v15  ;;  %v4547_v6 = vpop.f32.mrb[190].mxu0  ;;  %v3043_v9 = vmax.bf16 %v7528_v31, %v3027_v38 }
 0x4cf   : > { %v4548_v61 = vpop.f32.mrb[191].mxu0 }
 0x4d0   : > { %v4549_v63 = vadd.f32 %v4548_v61, %v4547_v6  ;;  %4642 = vmatprep.mubr.bf16.mxu0 %v3043_v9  ;;  %v3007_v54 = vadd.f32 %v4546_v47, %v6608_v50 }
 0x4d2   : > { %v3010_v16 = vadd.f32 %v4549_v63, %v6608_v50 }
 0x4d4   : > { %v3028_v55 = vpack.c.bf16 %v3010_v16, %v3007_v54 }
 0x4d6   : > { %v3044_v53 = vmax.bf16 %v7528_v31, %v3028_v55 }
 0x4d8   : > { %4643 = vmatmul.mubr.bf16.gmra.mrb[220].mxu0 %v3044_v53 }
 0x53b   : > { %v4616_v14 = vpop.f32.mrb[192].mxu0 }
 0x53c   : > { %v3150_v0 = vpop.f32.mrb[193].mxu0  ;;  %v3159_v57 = vadd.f32 %v4616_v14, %v6685_v19 }
 0x53d   : > { %v4617_v26 = vpop.f32.mrb[194].mxu0  ;;  %v3151_v34 = vadd.f32 %v6685_v19, %v3150_v0 }
 0x53e   : > { %v3162_v52 = vadd.f32 %v4617_v26, %v6685_v19  ;;  %v3153_v25 = vpop.f32.mrb[195].mxu0 }
 0x53f   : > { %v3154_v50 = vadd.f32 %v6685_v19, %v3153_v25 }
 0x540   : > { %v3278_v56 = vpack.c.bf16 %v3162_v52, %v3159_v57 }
 0x541   : > { %v3277_v59 = vpack.c.bf16 %v3154_v50, %v3151_v34 }
 0x542   : > { %v3294_v44 = vmax.bf16 %v7528_v31, %v3278_v56 }
 0x543   : > { %v3293_v40 = vmax.bf16 %v7528_v31, %v3277_v59 }
 0x545   : > { %4662 = vmatprep.mubr.bf16.mxu0 %v3293_v40 }
 0x546   : > { %4663 = vmatmul.mubr.bf16.vlgmr.msra.gmra.mrb[224].mxu0 %v3294_v44 }
 0x54b   : > { %v4620_v62 = vpop.f32.mrb[196].mxu0 }
 0x54c   : > { %v3166_v7 = vpop.f32.mrb[197].mxu0  ;;  %v3175_v48 = vadd.f32 %v4620_v62, %v6685_v19 }
 0x54d   : > { %v4621_v41 = vpop.f32.mrb[198].mxu0  ;;  %v3167_v49 = vadd.f32 %v6685_v19, %v3166_v7 }
 0x54e   : > { %v3178_v37 = vadd.f32 %v4621_v41, %v6685_v19  ;;  %v3169_v20 = vpop.f32.mrb[199].mxu0 }
 0x54f   : > { %v3170_v60 = vadd.f32 %v6685_v19, %v3169_v20 }
 0x550   : > { %v3280_v39 = vpack.c.bf16 %v3178_v37, %v3175_v48 }
 0x551   : > { %v3279_v1 = vpack.c.bf16 %v3170_v60, %v3167_v49 }
 0x552   : > { %v3296_v22 = vmax.bf16 %v7528_v31, %v3280_v39 }
 0x553   : > { %v3295_v46 = vmax.bf16 %v7528_v31, %v3279_v1 }
 0x555   : > { %4666 = vmatprep.mubr.bf16.mxu0 %v3295_v46 }
 0x556   : > { %4667 = vmatmul.mubr.bf16.gmra.mrb[228].mxu0 %v3296_v22 }
 0x55b   : > { %v4624_v30 = vpop.f32.mrb[200].mxu0 }
 0x55c   : > { %v3182_v58 = vpop.f32.mrb[201].mxu0  ;;  %v3191_v13 = vadd.f32 %v4624_v30, %v6685_v19 }
 0x55d   : > { %v4625_v51 = vpop.f32.mrb[202].mxu0  ;;  %v3183_v24 = vadd.f32 %v6685_v19, %v3182_v58 }
 0x55e   : > { %v3194_v17 = vadd.f32 %v4625_v51, %v6685_v19  ;;  %v3185_v5 = vpop.f32.mrb[203].mxu0 }
 0x55f   : > { %v3186_v23 = vadd.f32 %v6685_v19, %v3185_v5 }
 0x560   : > { %v3282_v11 = vpack.c.bf16 %v3194_v17, %v3191_v13 }
 0x561   : > { %v3281_v28 = vpack.c.bf16 %v3186_v23, %v3183_v24 }
 0x562   : > { %v3298_v8 = vmax.bf16 %v7528_v31, %v3282_v11 }
 0x563   : > { %v3297_v43 = vmax.bf16 %v7528_v31, %v3281_v28 }
 0x565   : > { %4670 = vmatprep.mubr.bf16.mxu0 %v3297_v43  ;;  %v7590_v43 = vlaneseq }
 0x566   : > { %4671 = vmatmul.mubr.bf16.gmra.mrb[232].mxu0 %v3298_v8 }
 0x567   : > { %v6736_v8 = vand.u32 127, %v7590_v43 }
 0x569   : > { %vm3543_vm1 = vcmp.lt.s32.totalorder %v6736_v8, 75 }
 0x56b   : > { %v4628_v10 = vpop.f32.mrb[204].mxu0 }
 0x56c   : > { %v3198_v21 = vpop.f32.mrb[205].mxu0  ;;  %v3207_v3 = vadd.f32 %v4628_v10, %v6685_v19  ;;  %v6741_v10 = vld [vmem:[%s7453_s12] ss:$0 sm:$0xff] }
 0x56d   : > { %v4629_v27 = vpop.f32.mrb[206].mxu0  ;;  %v3199_v4 = vadd.f32 %v6685_v19, %v3198_v21 }
 0x56e   : > { %v3210_v29 = vadd.f32 %v4629_v27, %v6685_v19  ;;  %v3201_v2 = vpop.f32.mrb[207].mxu0 }
 0x56f   : > { %v3202_v42 = vadd.f32 %v6685_v19, %v3201_v2 }
 0x570   : > { %v3284_v45 = vpack.c.bf16 %v3210_v29, %v3207_v3 }
 0x571   : > { %v3283_v35 = vpack.c.bf16 %v3202_v42, %v3199_v4 }
 0x572   : > { %v3300_v32 = vmax.bf16 %v7528_v31, %v3284_v45 }
 0x573   : > { %v3299_v36 = vmax.bf16 %v7528_v31, %v3283_v35 }
 0x575   : > { %4674 = vmatprep.mubr.bf16.mxu1 %v3299_v36 }
 0x576   : > { %4675 = vmatmul.mubr.bf16.vlgmr.msra.gmra.mrb[128].mxu1 %v3300_v32 }
 0x57b   : > { %v4632_v12 = vpop.f32.mrb[208].mxu0 }
 0x57c   : > { %v3214_v33 = vpop.f32.mrb[209].mxu0  ;;  %v3223_v15 = vadd.f32 %v4632_v12, %v6685_v19 }
 0x57d   : > { %v4633_v38 = vpop.f32.mrb[210].mxu0  ;;  %v3215_v6 = vadd.f32 %v6685_v19, %v3214_v33 }
 0x57e   : > { %v3226_v18 = vadd.f32 %v4633_v38, %v6685_v19  ;;  %v3217_v47 = vpop.f32.mrb[211].mxu0 }
 0x57f   : > { %v3218_v9 = vadd.f32 %v6685_v19, %v3217_v47 }
 0x580   : > { %v3286_v61 = vpack.c.bf16 %v3226_v18, %v3223_v15 }
 0x581   : > { %v3285_v63 = vpack.c.bf16 %v3218_v9, %v3215_v6 }
 0x582   : > { %v3302_v16 = vmax.bf16 %v7528_v31, %v3286_v61 }
 0x583   : > { %v3301_v54 = vmax.bf16 %v7528_v31, %v3285_v63 }
 0x585   : > { %4678 = vmatprep.mubr.bf16.mxu1 %v3301_v54 }
 0x586   : > { %4679 = vmatmul.mubr.bf16.gmra.mrb[132].mxu1 %v3302_v16 }
 0x58b   : > { %v4636_v55 = vpop.f32.mrb[212].mxu0 }
 0x58c   : > { %v3230_v53 = vpop.f32.mrb[213].mxu0  ;;  %v3239_v0 = vadd.f32 %v4636_v55, %v6685_v19 }
 0x58d   : > { %v4637_v14 = vpop.f32.mrb[214].mxu0  ;;  %v3231_v52 = vadd.f32 %v6685_v19, %v3230_v53 }
 0x58e   : > { %v3242_v26 = vadd.f32 %v4637_v14, %v6685_v19  ;;  %v3233_v57 = vpop.f32.mrb[215].mxu0 }
 0x58f   : > { %v3234_v25 = vadd.f32 %v6685_v19, %v3233_v57 }
 0x590   : > { %v3288_v34 = vpack.c.bf16 %v3242_v26, %v3239_v0 }
 0x591   : > { %v3287_v50 = vpack.c.bf16 %v3234_v25, %v3231_v52 }
 0x592   : > { %v3304_v59 = vmax.bf16 %v7528_v31, %v3288_v34 }
 0x593   : > { %v3303_v56 = vmax.bf16 %v7528_v31, %v3287_v50 }
 0x595   : > { %4682 = vmatprep.mubr.bf16.mxu1 %v3303_v56 }
 0x596   : > { %4683 = vmatmul.mubr.bf16.gmra.mrb[136].mxu1 %v3304_v59 }
 0x59b   : > { %v4640_v40 = vpop.f32.mrb[216].mxu0 }
 0x59c   : > { %v3246_v44 = vpop.f32.mrb[217].mxu0  ;;  %v3255_v7 = vadd.f32 %v4640_v40, %v6685_v19 }
 0x59d   : > { %v4641_v62 = vpop.f32.mrb[218].mxu0  ;;  %v3247_v37 = vadd.f32 %v6685_v19, %v3246_v44 }
 0x59e   : > { %v3258_v41 = vadd.f32 %v4641_v62, %v6685_v19  ;;  %v3249_v48 = vpop.f32.mrb[219].mxu0 }
 0x59f   : > { %v3250_v20 = vadd.f32 %v6685_v19, %v3249_v48 }
 0x5a0   : > { %v3290_v49 = vpack.c.bf16 %v3258_v41, %v3255_v7 }
 0x5a1   : > { %v3289_v60 = vpack.c.bf16 %v3250_v20, %v3247_v37 }
 0x5a2   : > { %v3306_v1 = vmax.bf16 %v7528_v31, %v3290_v49 }
 0x5a3   : > { %v3305_v39 = vmax.bf16 %v7528_v31, %v3289_v60 }
 0x5a5   : > { %4686 = vmatprep.mubr.bf16.mxu1 %v3305_v39 }
 0x5a6   : > { %4687 = vmatmul.mubr.bf16.gmra.mrb[140].mxu1 %v3306_v1 }
 0x5ab   : > { %v4644_v46 = vpop.f32.mrb[220].mxu0 }
 0x5ac   : > { %v3262_v22 = vpop.f32.mrb[221].mxu0  ;;  %v3271_v58 = vadd.f32 %v4644_v46, %v6685_v19 }
 0x5ad   : > { %v4645_v30 = vpop.f32.mrb[222].mxu0  ;;  %v3263_v17 = vadd.f32 %v6685_v19, %v3262_v22 }
 0x5ae   : > { %v3274_v51 = vadd.f32 %v4645_v30, %v6685_v19  ;;  %v3265_v13 = vpop.f32.mrb[223].mxu0 }
 0x5af   : > { %v3266_v5 = vadd.f32 %v6685_v19, %v3265_v13 }
 0x5b0   : > { %v3292_v24 = vpack.c.bf16 %v3274_v51, %v3271_v58 }
 0x5b1   : > { %v3291_v23 = vpack.c.bf16 %v3266_v5, %v3263_v17 }
 0x5b2   : > { %v3308_v28 = vmax.bf16 %v7528_v31, %v3292_v24 }
 0x5b3   : > { %v3307_v11 = vmax.bf16 %v7528_v31, %v3291_v23 }
 0x5b5   : > { %4690 = vmatprep.mubr.bf16.mxu1 %v3307_v11 }
 0x5b6   : > { %4691 = vmatmul.mubr.bf16.gmra.mrb[144].mxu1 %v3308_v28 }
 0x619   : > { %v4664_v21 = vpop.f32.mrb[224].mxu0 }
 0x61a   : > { %v6745_v19 = vadd.f32 %v4664_v21, %v6741_v10  ;;  %v3414_v27 = vpop.f32.mrb[225].mxu0 }
 0x61b   : > { %v6748_v3 = vadd.f32 %v6741_v10, %v3414_v27  ;;  %v4665_v31 = vpop.f32.mrb[226].mxu0 }
 0x61c   : > { %v6751_v29 = vadd.f32 %v4665_v31, %v6741_v10  ;;  %v3417_v2 = vpop.f32.mrb[227].mxu0  ;;  %v6756_v4 = vsel %vm3543_vm1, %v6745_v19, -1e+30 }
 0x61d   : > { %v6759_v42 = vadd.f32 %v6741_v10, %v3417_v2  ;;  %3580 = vmax.xlane.f32.xlu1 %v6756_v4  ;;  %v6765_v45 = vsel %vm3543_vm1, %v6748_v3, -1e+30 }
 0x61e   : > { %3576 = vmax.xlane.f32.xlu0 %v6765_v45  ;;  %v6771_v35 = vsel %vm3543_vm1, %v6751_v29, -1e+30 }
 0x61f   : > { %v6777_v36 = vsel %vm3543_vm1, %v6759_v42, -1e+30 }
 0x621   : > { %3582 = vmax.xlane.f32.xlu1 %v6771_v35 }
 0x622   : > { %3578 = vmax.xlane.f32.xlu0 %v6777_v36 }
 0x629   : > { %v4668_v32 = vpop.f32.mrb[228].mxu0 }
 0x62a   : > { %v6781_v12 = vadd.f32 %v4668_v32, %v6741_v10  ;;  %v3430_v33 = vpop.f32.mrb[229].mxu0 }
 0x62b   : > { %v4669_v38 = vpop.f32.mrb[230].mxu0  ;;  %v6792_v6 = vadd.f32 %v6741_v10, %v3430_v33 }
 0x62c   : > { %v6784_v15 = vadd.f32 %v4669_v38, %v6741_v10  ;;  %v3433_v18 = vpop.f32.mrb[231].mxu0  ;;  %v6789_v47 = vsel %vm3543_vm1, %v6781_v12, -1e+30 }
 0x62d   : > { %3588 = vmax.xlane.f32.xlu0 %v6789_v47  ;;  %v6796_v9 = vadd.f32 %v6741_v10, %v3433_v18  ;;  %v6807_v63 = vsel %vm3543_vm1, %v6792_v6, -1e+30 }
 0x62e   : > { %v6801_v61 = vsel %vm3543_vm1, %v6784_v15, -1e+30 }
 0x62f   : > { %3590 = vmax.xlane.f32.xlu1 %v6801_v61  ;;  %v6813_v54 = vsel %vm3543_vm1, %v6796_v9, -1e+30 }
 0x631   : > { %3584 = vmax.xlane.f32.xlu0 %v6807_v63 }
 0x633   : > { %3586 = vmax.xlane.f32.xlu1 %v6813_v54 }
 0x639   : > { %v4672_v16 = vpop.f32.mrb[232].mxu0 }
 0x63a   : > { %v6817_v55 = vadd.f32 %v4672_v16, %v6741_v10  ;;  %v3446_v53 = vpop.f32.mrb[233].mxu0 }
 0x63b   : > { %v4673_v14 = vpop.f32.mrb[234].mxu0  ;;  %v6828_v52 = vadd.f32 %v6741_v10, %v3446_v53 }
 0x63c   : > { %v6820_v0 = vadd.f32 %v4673_v14, %v6741_v10  ;;  %v3449_v26 = vpop.f32.mrb[235].mxu0  ;;  %v6825_v57 = vsel %vm3543_vm1, %v6817_v55, -1e+30 }
 0x63d   : > { %3596 = vmax.xlane.f32.xlu0 %v6825_v57  ;;  %v6832_v25 = vadd.f32 %v6741_v10, %v3449_v26  ;;  %v6843_v50 = vsel %vm3543_vm1, %v6828_v52, -1e+30 }
 0x63e   : > { %v6837_v34 = vsel %vm3543_vm1, %v6820_v0, -1e+30 }
 0x63f   : > { %3598 = vmax.xlane.f32.xlu1 %v6837_v34  ;;  %v6849_v56 = vsel %vm3543_vm1, %v6832_v25, -1e+30 }
 0x641   : > { %3592 = vmax.xlane.f32.xlu0 %v6843_v50 }
 0x643   : > { %3594 = vmax.xlane.f32.xlu1 %v6849_v56 }
 0x649   : > { %v4676_v59 = vpop.f32.mrb[128].mxu1 }
 0x64a   : > { %v6853_v40 = vadd.f32 %v4676_v59, %v6741_v10  ;;  %v3462_v44 = vpop.f32.mrb[129].mxu1 }
 0x64b   : > { %v4677_v62 = vpop.f32.mrb[130].mxu1  ;;  %v6856_v7 = vadd.f32 %v6741_v10, %v3462_v44 }
 0x64c   : > { %v6859_v41 = vadd.f32 %v4677_v62, %v6741_v10  ;;  %v3465_v48 = vpop.f32.mrb[131].mxu1  ;;  %v6864_v37 = vsel %vm3543_vm1, %v6853_v40, -1e+30 }
 0x64d   : > { %3604 = vmax.xlane.f32.xlu0 %v6864_v37  ;;  %v6868_v20 = vadd.f32 %v6741_v10, %v3465_v48  ;;  %v6879_v60 = vsel %vm3543_vm1, %v6856_v7, -1e+30 }
 0x64e   : > { %v6873_v49 = vsel %vm3543_vm1, %v6859_v41, -1e+30 }
 0x64f   : > { %3606 = vmax.xlane.f32.xlu1 %v6873_v49  ;;  %v6885_v39 = vsel %vm3543_vm1, %v6868_v20, -1e+30 }
 0x651   : > { %3600 = vmax.xlane.f32.xlu0 %v6879_v60 }
 0x653   : > { %3602 = vmax.xlane.f32.xlu1 %v6885_v39 }
 0x659   : > { %v4680_v1 = vpop.f32.mrb[132].mxu1 }
 0x65a   : > { %v6889_v46 = vadd.f32 %v4680_v1, %v6741_v10  ;;  %v3478_v22 = vpop.f32.mrb[133].mxu1 }
 0x65b   : > { %v4681_v30 = vpop.f32.mrb[134].mxu1  ;;  %v6892_v58 = vadd.f32 %v6741_v10, %v3478_v22 }
 0x65c   : > { %v6895_v51 = vadd.f32 %v4681_v30, %v6741_v10  ;;  %v3481_v13 = vpop.f32.mrb[135].mxu1  ;;  %v6900_v17 = vsel %vm3543_vm1, %v6889_v46, -1e+30 }
 0x65d   : > { %7591 = vst [vmem:[#allocation21_spill] sm:$0xff] %v6892_v58  ;;  %3612 = vmax.xlane.f32.xlu0 %v6900_v17  ;;  %v6904_v5 = vadd.f32 %v6741_v10, %v3481_v13  ;;  %v6915_v23 = vsel %vm3543_vm1, %v6892_v58, -1e+30 }
 0x65e   : > { %v6909_v24 = vsel %vm3543_vm1, %v6895_v51, -1e+30 }
 0x65f   : > { %7592 = vst [vmem:[#allocation20_spill] sm:$0xff] %v6904_v5  ;;  %3614 = vmax.xlane.f32.xlu1 %v6909_v24  ;;  %v6921_v11 = vsel %vm3543_vm1, %v6904_v5, -1e+30 }
 0x661   : > { %3608 = vmax.xlane.f32.xlu0 %v6915_v23 }
 0x663   : > { %3610 = vmax.xlane.f32.xlu1 %v6921_v11 }
 0x669   : > { %v4684_v28 = vpop.f32.mrb[136].mxu1 }
 0x66a   : > { %v6925_v43 = vadd.f32 %v4684_v28, %v6741_v10  ;;  %v3494_v21 = vpop.f32.mrb[137].mxu1 }
 0x66b   : > { %v4685_v27 = vpop.f32.mrb[138].mxu1  ;;  %v6928_v31 = vadd.f32 %v6741_v10, %v3494_v21 }
 0x66c   : > { %7593 = vst [vmem:[#allocation19_spill] sm:$0xff] %v6925_v43  ;;  %v6931_v2 = vadd.f32 %v4685_v27, %v6741_v10  ;;  %v3497_v32 = vpop.f32.mrb[139].mxu1  ;;  %v6936_v33 = vsel %vm3543_vm1, %v6925_v43, -1e+30 }
 0x66d   : > { %7594 = vst [vmem:[#allocation25_spill] sm:$0xff] %v6928_v31  ;;  %3620 = vmax.xlane.f32.xlu0 %v6936_v33  ;;  %v6940_v38 = vadd.f32 %v6741_v10, %v3497_v32  ;;  %v6951_v16 = vsel %vm3543_vm1, %v6928_v31, -1e+30 }
 0x66e   : > { %7595 = vst [vmem:[#allocation24_spill] sm:$0xff] %v6931_v2  ;;  %v6945_v18 = vsel %vm3543_vm1, %v6931_v2, -1e+30 }
 0x66f   : > { %7596 = vst [vmem:[#allocation23_spill] sm:$0xff] %v6940_v38  ;;  %3622 = vmax.xlane.f32.xlu1 %v6945_v18  ;;  %v6957_v53 = vsel %vm3543_vm1, %v6940_v38, -1e+30 }
 0x671   : > { %3616 = vmax.xlane.f32.xlu0 %v6951_v16 }
 0x673   : > { %3618 = vmax.xlane.f32.xlu1 %v6957_v53 }
 0x679   : > { %v4688_v14 = vpop.f32.mrb[140].mxu1 }
 0x67a   : > { %v6961_v26 = vadd.f32 %v4688_v14, %v6741_v10  ;;  %v3510_v59 = vpop.f32.mrb[141].mxu1 }
 0x67b   : > { %v4689_v44 = vpop.f32.mrb[142].mxu1  ;;  %v6964_v62 = vadd.f32 %v6741_v10, %v3510_v59 }
 0x67c   : > { %7597 = vst [vmem:[#allocation22_spill] sm:$0xff] %v6961_v26  ;;  %v6967_v48 = vadd.f32 %v4689_v44, %v6741_v10  ;;  %v3513_v1 = vpop.f32.mrb[143].mxu1  ;;  %v6972_v22 = vsel %vm3543_vm1, %v6961_v26, -1e+30 }
 0x67d   : > { %7598 = vst [vmem:[#allocation29_spill] sm:$0xff] %v6964_v62  ;;  %3628 = vmax.xlane.f32.xlu0 %v6972_v22  ;;  %v6976_v30 = vadd.f32 %v6741_v10, %v3513_v1  ;;  %v6987_v28 = vsel %vm3543_vm1, %v6964_v62, -1e+30 }
 0x67e   : > { %7599 = vst [vmem:[#allocation28_spill] sm:$0xff] %v6967_v48  ;;  %v6981_v13 = vsel %vm3543_vm1, %v6967_v48, -1e+30 }
 0x67f   : > { %7600 = vst [vmem:[#allocation27_spill] sm:$0xff] %v6976_v30  ;;  %3630 = vmax.xlane.f32.xlu1 %v6981_v13  ;;  %v6993_v21 = vsel %vm3543_vm1, %v6976_v30, -1e+30 }
 0x681   : > { %3624 = vmax.xlane.f32.xlu0 %v6987_v28 }
 0x683   : > { %3626 = vmax.xlane.f32.xlu1 %v6993_v21 }
 0x689   : > { %v4692_v27 = vpop.f32.mrb[144].mxu1 }
 0x68a   : > { %v3526_v32 = vpop.f32.mrb[145].mxu1  ;;  %v7003_v48 = vadd.f32 %v4692_v27, %v6741_v10 }
 0x68b   : > { %v6997_v14 = vadd.f32 %v6741_v10, %v3526_v32  ;;  %v4693_v59 = vpop.f32.mrb[146].mxu1 }
 0x68c   : > { %v3529_v44 = vpop.f32.mrb[147].mxu1  ;;  %7603 = vst [vmem:[#allocation32_spill] sm:$0xff] %v7003_v48  ;;  %v7012_v62 = vadd.f32 %v4693_v59, %v6741_v10  ;;  %v7023_v27 = vsel %vm3543_vm1, %v7003_v48, -1e+30 }
 0x68d   : > { %7601 = vst [vmem:[#allocation26_spill] sm:$0xff] %v6997_v14  ;;  %v7000_v1 = vadd.f32 %v6741_v10, %v3529_v44  ;;  %v7008_v30 = vsel %vm3543_vm1, %v6997_v14, -1e+30 }
 0x68e   : > { %3632 = vmax.xlane.f32.xlu0 %v7008_v30  ;;  %7604 = vst [vmem:[#allocation31_spill] sm:$0xff] %v7012_v62  ;;  %v7029_v44 = vsel %vm3543_vm1, %v7012_v62, -1e+30 }
 0x68f   : > { %7602 = vst [vmem:[#allocation33_spill] sm:$0xff] %v7000_v1  ;;  %v7017_v32 = vsel %vm3543_vm1, %v7000_v1, -1e+30 }
 0x690   : > { %3634 = vmax.xlane.f32.xlu1 %v7017_v32 }
 0x692   : > { %3636 = vmax.xlane.f32.xlu0 %v7023_v27 }
 0x694   : > { %3638 = vmax.xlane.f32.xlu1 %v7029_v44 }
 0x6aa   : > { %v3581_v10 = vpop.xlane.xlu1 %3580 }
 0x6ab   : > { %v3642_v59 = vsub.f32 %v6756_v4, %v3581_v10  ;;  %v3577_v1 = vpop.xlane.xlu0 %3576 }
 0x6ac   : > { %v3640_v14 = vsub.f32 %v6765_v45, %v3577_v1 }
 0x6ad   : > { %v3676_v26 = vmul.f32 1.442695, %v3642_v59 }
 0x6ae   : > { %v3672_v38 = vmul.f32 1.442695, %v3640_v14  ;;  %v3583_v31 = vpop.xlane.xlu1 %3582 }
 0x6af   : > { %5157 = vpow2.f32 %v3676_v26  ;;  %v3643_v48 = vsub.f32 %v6771_v35, %v3583_v31  ;;  %v3579_v2 = vpop.xlane.xlu0 %3578 }
 0x6b0   : > { %v3641_v43 = vsub.f32 %v6777_v36, %v3579_v2  ;;  %5159 = vpow2.f32 %v3672_v38 }
 0x6b1   : > { %v3678_v5 = vmul.f32 1.442695, %v3643_v48 }
 0x6b2   : > { %v3674_v62 = vmul.f32 1.442695, %v3641_v43 }
 0x6b3   : > { %5161 = vpow2.f32 %v3678_v5 }
 0x6b4   : > { %5163 = vpow2.f32 %v3674_v62 }
 0x6b9   : > { %v7036_v58 = vpop.eup %5157 }
 0x6ba   : > { %3740 = vadd.xlane.f32.xlu0 %v7036_v58  ;;  %v3589_v4 = vpop.xlane.xlu0 %3588  ;;  %v7040_v14 = vpop.eup %5159 }
 0x6bb   : > { %v3646_v45 = vsub.f32 %v6789_v47, %v3589_v4 }
 0x6bc   : > { %v3591_v31 = vpop.xlane.xlu1 %3590 }
 0x6bd   : > { %v7042_v26 = vpop.eup %5161  ;;  %v3684_v35 = vmul.f32 1.442695, %v3646_v45  ;;  %v3647_v36 = vsub.f32 %v6801_v61, %v3591_v31 }
 0x6be   : > { %3742 = vadd.xlane.f32.xlu1 %v7042_v26  ;;  %3736 = vadd.xlane.f32.xlu0 %v7040_v14  ;;  %v3585_v5 = vpop.xlane.xlu0 %3584  ;;  %v7048_v2 = vpop.eup %5163 }
 0x6bf   : > { %5165 = vpow2.f32 %v3684_v35  ;;  %v3644_v43 = vsub.f32 %v6807_v63, %v3585_v5  ;;  %v3686_v38 = vmul.f32 1.442695, %v3647_v36 }
 0x6c0   : > { %v3587_v62 = vpop.xlane.xlu1 %3586 }
 0x6c1   : > { %v3680_v47 = vmul.f32 1.442695, %v3644_v43  ;;  %5167 = vpow2.f32 %v3686_v38  ;;  %v3645_v48 = vsub.f32 %v6813_v54, %v3587_v62 }
 0x6c2   : > { %3738 = vadd.xlane.f32.xlu1 %v7048_v2 }
 0x6c3   : > { %5169 = vpow2.f32 %v3680_v47  ;;  %v3682_v1 = vmul.f32 1.442695, %v3645_v48 }
 0x6c5   : > { %5171 = vpow2.f32 %v3682_v1 }
 0x6c9   : > { %v7052_v10 = vpop.eup %5165 }
 0x6ca   : > { %3748 = vadd.xlane.f32.xlu0 %v7052_v10  ;;  %v3597_v61 = vpop.xlane.xlu0 %3596 }
 0x6cb   : > { %v3650_v63 = vsub.f32 %v6825_v57, %v3597_v61  ;;  %v7056_v4 = vpop.eup %5167 }
 0x6cc   : > { %v3599_v59 = vpop.xlane.xlu1 %3598  ;;  %3750 = vadd.xlane.f32.xlu1 %v7056_v4 }
 0x6cd   : > { %v3692_v45 = vmul.f32 1.442695, %v3650_v63  ;;  %v3651_v35 = vsub.f32 %v6837_v34, %v3599_v59  ;;  %v7059_v31 = vpop.eup %5169 }
 0x6ce   : > { %3744 = vadd.xlane.f32.xlu0 %v7059_v31  ;;  %v3593_v36 = vpop.xlane.xlu0 %3592 }
 0x6cf   : > { %5173 = vpow2.f32 %v3692_v45  ;;  %v3694_v54 = vmul.f32 1.442695, %v3651_v35  ;;  %v3648_v5 = vsub.f32 %v6843_v50, %v3593_v36  ;;  %v7064_v38 = vpop.eup %5171 }
 0x6d0   : > { %v3595_v43 = vpop.xlane.xlu1 %3594  ;;  %3746 = vadd.xlane.f32.xlu1 %v7064_v38 }
 0x6d1   : > { %5175 = vpow2.f32 %v3694_v54  ;;  %v3649_v57 = vsub.f32 %v6849_v56, %v3595_v43  ;;  %v3688_v47 = vmul.f32 1.442695, %v3648_v5 }
 0x6d3   : > { %v3690_v34 = vmul.f32 1.442695, %v3649_v57  ;;  %5177 = vpow2.f32 %v3688_v47 }
 0x6d5   : > { %5179 = vpow2.f32 %v3690_v34 }
 0x6d9   : > { %v7068_v62 = vpop.eup %5173 }
 0x6da   : > { %3756 = vadd.xlane.f32.xlu0 %v7068_v62  ;;  %v3605_v48 = vpop.xlane.xlu0 %3604 }
 0x6db   : > { %v7071_v1 = vpop.eup %5175  ;;  %v3654_v50 = vsub.f32 %v6864_v37, %v3605_v48 }
 0x6dc   : > { %v3607_v61 = vpop.xlane.xlu1 %3606  ;;  %3758 = vadd.xlane.f32.xlu1 %v7071_v1 }
 0x6dd   : > { %v3700_v63 = vmul.f32 1.442695, %v3654_v50  ;;  %v3655_v56 = vsub.f32 %v6873_v49, %v3607_v61  ;;  %v7076_v59 = vpop.eup %5177 }
 0x6de   : > { %v3601_v45 = vpop.xlane.xlu0 %3600  ;;  %3752 = vadd.xlane.f32.xlu0 %v7076_v59 }
 0x6df   : > { %v7078_v35 = vpop.eup %5179  ;;  %5181 = vpow2.f32 %v3700_v63  ;;  %v3702_v54 = vmul.f32 1.442695, %v3655_v56  ;;  %v3652_v36 = vsub.f32 %v6879_v60, %v3601_v45 }
 0x6e0   : > { %v3603_v5 = vpop.xlane.xlu1 %3602  ;;  %3754 = vadd.xlane.f32.xlu1 %v7078_v35 }
 0x6e1   : > { %5183 = vpow2.f32 %v3702_v54  ;;  %v3696_v37 = vmul.f32 1.442695, %v3652_v36  ;;  %v3653_v43 = vsub.f32 %v6885_v39, %v3603_v5 }
 0x6e3   : > { %5185 = vpow2.f32 %v3696_v37  ;;  %v3698_v49 = vmul.f32 1.442695, %v3653_v43 }
 0x6e5   : > { %5187 = vpow2.f32 %v3698_v49 }
 0x6e9   : > { %v7084_v57 = vpop.eup %5181 }
 0x6ea   : > { %3764 = vadd.xlane.f32.xlu0 %v7084_v57  ;;  %v3613_v47 = vpop.xlane.xlu0 %3612 }
 0x6eb   : > { %v7087_v34 = vpop.eup %5183  ;;  %v3658_v48 = vsub.f32 %v6900_v17, %v3613_v47 }
 0x6ec   : > { %v3615_v60 = vpop.xlane.xlu1 %3614  ;;  %3766 = vadd.xlane.f32.xlu1 %v7087_v34 }
 0x6ed   : > { %v7091_v50 = vpop.eup %5185  ;;  %v3708_v61 = vmul.f32 1.442695, %v3658_v48  ;;  %v3659_v39 = vsub.f32 %v6909_v24, %v3615_v60 }
 0x6ee   : > { %3760 = vadd.xlane.f32.xlu0 %v7091_v50  ;;  %v3609_v63 = vpop.xlane.xlu0 %3608 }
 0x6ef   : > { %v7095_v56 = vpop.eup %5187  ;;  %5189 = vpow2.f32 %v3708_v61  ;;  %v3710_v45 = vmul.f32 1.442695, %v3659_v39  ;;  %v3656_v54 = vsub.f32 %v6915_v23, %v3609_v63 }
 0x6f0   : > { %v3611_v36 = vpop.xlane.xlu1 %3610  ;;  %3762 = vadd.xlane.f32.xlu1 %v7095_v56 }
 0x6f1   : > { %5191 = vpow2.f32 %v3710_v45  ;;  %v3704_v17 = vmul.f32 1.442695, %v3656_v54  ;;  %v3657_v5 = vsub.f32 %v6921_v11, %v3611_v36 }
 0x6f3   : > { %5193 = vpow2.f32 %v3704_v17  ;;  %v3706_v37 = vmul.f32 1.442695, %v3657_v5 }
 0x6f5   : > { %5195 = vpow2.f32 %v3706_v37 }
 0x6f9   : > { %v7100_v24 = vpop.eup %5189 }
 0x6fa   : > { %3772 = vadd.xlane.f32.xlu0 %v7100_v24  ;;  %v3621_v43 = vpop.xlane.xlu0 %3620 }
 0x6fb   : > { %v7103_v49 = vpop.eup %5191  ;;  %v3662_v47 = vsub.f32 %v6936_v33, %v3621_v43 }
 0x6fc   : > { %v3623_v23 = vpop.xlane.xlu1 %3622  ;;  %3774 = vadd.xlane.f32.xlu1 %v7103_v49 }
 0x6fd   : > { %v7107_v48 = vpop.eup %5193  ;;  %v3716_v60 = vmul.f32 1.442695, %v3662_v47  ;;  %v3663_v11 = vsub.f32 %v6945_v18, %v3623_v23 }
 0x6fe   : > { %3768 = vadd.xlane.f32.xlu0 %v7107_v48  ;;  %v3617_v61 = vpop.xlane.xlu0 %3616 }
 0x6ff   : > { %v7111_v39 = vpop.eup %5195  ;;  %5197 = vpow2.f32 %v3716_v60  ;;  %v3718_v63 = vmul.f32 1.442695, %v3663_v11  ;;  %v3660_v45 = vsub.f32 %v6951_v16, %v3617_v61 }
 0x700   : > { %v3619_v54 = vpop.xlane.xlu1 %3618  ;;  %3770 = vadd.xlane.f32.xlu1 %v7111_v39 }
 0x701   : > { %5199 = vpow2.f32 %v3718_v63  ;;  %v3712_v33 = vmul.f32 1.442695, %v3660_v45  ;;  %v3661_v36 = vsub.f32 %v6957_v53, %v3619_v54 }
 0x703   : > { %5201 = vpow2.f32 %v3712_v33  ;;  %v3714_v17 = vmul.f32 1.442695, %v3661_v36 }
 0x705   : > { %5203 = vpow2.f32 %v3714_v17 }
 0x709   : > { %v7116_v18 = vpop.eup %5197 }
 0x70a   : > { %3780 = vadd.xlane.f32.xlu0 %v7116_v18  ;;  %v3629_v5 = vpop.xlane.xlu0 %3628 }
 0x70b   : > { %v7119_v37 = vpop.eup %5199  ;;  %v3666_v43 = vsub.f32 %v6972_v22, %v3629_v5 }
 0x70c   : > { %v3631_v16 = vpop.xlane.xlu1 %3630  ;;  %3782 = vadd.xlane.f32.xlu1 %v7119_v37 }
 0x70d   : > { %v7123_v47 = vpop.eup %5201  ;;  %v3724_v23 = vmul.f32 1.442695, %v3666_v43  ;;  %v3667_v53 = vsub.f32 %v6981_v13, %v3631_v16 }
 0x70e   : > { %3776 = vadd.xlane.f32.xlu0 %v7123_v47  ;;  %v3625_v60 = vpop.xlane.xlu0 %3624 }
 0x70f   : > { %v7127_v11 = vpop.eup %5203  ;;  %5205 = vpow2.f32 %v3724_v23  ;;  %v3726_v61 = vmul.f32 1.442695, %v3667_v53  ;;  %v3664_v63 = vsub.f32 %v6987_v28, %v3625_v60 }
 0x710   : > { %v3627_v45 = vpop.xlane.xlu1 %3626  ;;  %3778 = vadd.xlane.f32.xlu1 %v7127_v11 }
 0x711   : > { %5207 = vpow2.f32 %v3726_v61  ;;  %v3720_v22 = vmul.f32 1.442695, %v3664_v63  ;;  %v3665_v54 = vsub.f32 %v6993_v21, %v3627_v45 }
 0x713   : > { %5209 = vpow2.f32 %v3720_v22  ;;  %v3722_v33 = vmul.f32 1.442695, %v3665_v54 }
 0x715   : > { %5211 = vpow2.f32 %v3722_v33  ;;  %v3866_v33 = vsel %vm3543_vm1, 0.0, %v6745_v19 }
 0x719   : > { %v7132_v13 = vpop.eup %5205 }
 0x71a   : > { %3788 = vadd.xlane.f32.xlu0 %v7132_v13 }
 0x71b   : > { %v7135_v36 = vpop.eup %5207  ;;  %v3633_v17 = vpop.xlane.xlu0 %3632 }
 0x71c   : > { %3790 = vadd.xlane.f32.xlu1 %v7135_v36  ;;  %v3668_v5 = vsub.f32 %v7008_v30, %v3633_v17  ;;  %v3898_v17 = vsub.f32 0.0, %v3866_v33 }
 0x71d   : > { %v7138_v28 = vpop.eup %5209  ;;  %v3635_v43 = vpop.xlane.xlu1 %3634 }
 0x71e   : > { %3784 = vadd.xlane.f32.xlu0 %v7138_v28  ;;  %v3728_v16 = vmul.f32 1.442695, %v3668_v5  ;;  %v3669_v23 = vsub.f32 %v7017_v32, %v3635_v43  ;;  %v3867_v5 = vsel %vm3543_vm1, 0.0, %v6751_v29  ;;  %v3864_v43 = vsel %vm3543_vm1, 0.0, %v6748_v3 }
 0x71f   : > { %v7142_v21 = vpop.eup %5211  ;;  %v3637_v53 = vpop.xlane.xlu0 %3636  ;;  %v3932_v19 = vmul.f32 1.442695, %v3898_v17  ;;  %v3870_v29 = vsel %vm3543_vm1, 0.0, %v6781_v12  ;;  %v3868_v3 = vsel %vm3543_vm1, 0.0, %v6792_v6  ;;  %v3869_v12 = vsel %vm3543_vm1, 0.0, %v6796_v9 }
 0x720   : > { %3786 = vadd.xlane.f32.xlu1 %v7142_v21  ;;  %5213 = vpow2.f32 %v3728_v16  ;;  %v3730_v60 = vmul.f32 1.442695, %v3669_v23  ;;  %v3670_v61 = vsub.f32 %v7023_v27, %v3637_v53  ;;  %v3899_v16 = vsub.f32 0.0, %v3867_v5 }
 0x721   : > { %v3639_v63 = vpop.xlane.xlu1 %3638  ;;  %v3896_v23 = vsub.f32 0.0, %v3864_v43  ;;  %v3865_v53 = vsel %vm3543_vm1, 0.0, %v6759_v42  ;;  %v3871_v42 = vsel %vm3543_vm1, 0.0, %v6784_v15  ;;  %v3900_v33 = vsub.f32 0.0, %v3868_v3 }
 0x722   : > { %5215 = vpow2.f32 %v3730_v60  ;;  %v3732_v45 = vmul.f32 1.442695, %v3670_v61  ;;  %v3671_v30 = vsub.f32 %v7029_v44, %v3639_v63  ;;  %v3934_v60 = vmul.f32 1.442695, %v3899_v16 }
 0x723   : > { %v3897_v61 = vsub.f32 0.0, %v3865_v53  ;;  %v3928_v63 = vmul.f32 1.442695, %v3896_v23  ;;  %v3903_v5 = vsub.f32 0.0, %v3871_v42  ;;  %v3901_v15 = vsub.f32 0.0, %v3869_v12 }
 0x724   : > { %5217 = vpow2.f32 %v3732_v45  ;;  %v3734_v22 = vmul.f32 1.442695, %v3671_v30  ;;  %v3902_v30 = vsub.f32 0.0, %v3870_v29  ;;  %v3872_v3 = vsel %vm3543_vm1, 0.0, %v6828_v52 }
 0x725   : > { %v3930_v45 = vmul.f32 1.442695, %v3897_v61  ;;  %v3942_v23 = vmul.f32 1.442695, %v3903_v5  ;;  %v3938_v42 = vmul.f32 1.442695, %v3901_v15 }
 0x726   : > { %5219 = vpow2.f32 %v3734_v22  ;;  %v3940_v17 = vmul.f32 1.442695, %v3902_v30 }
 0x727   : > { %5221 = vpow2.f32 %v3932_v19  ;;  %v3936_v19 = vmul.f32 1.442695, %v3900_v33  ;;  %v3875_v33 = vsel %vm3543_vm1, 0.0, %v6820_v0  ;;  %v3873_v0 = vsel %vm3543_vm1, 0.0, %v6832_v25 }
 0x728   : > { %5223 = vpow2.f32 %v3934_v60  ;;  %v3874_v60 = vsel %vm3543_vm1, 0.0, %v6817_v55  ;;  %v3904_v55 = vsub.f32 0.0, %v3872_v3 }
 0x729   : > { %5225 = vpow2.f32 %v3928_v63  ;;  %v3906_v30 = vsub.f32 0.0, %v3874_v60 }
 0x72a   : > { %v7148_v54 = vpop.eup %5213  ;;  %5227 = vpow2.f32 %v3930_v45 }
 0x72b   : > { %3792 = vadd.xlane.f32.xlu0 %v7148_v54  ;;  %5229 = vpow2.f32 %v3940_v17  ;;  %v3948_v5 = vmul.f32 1.442695, %v3906_v30 }
 0x72c   : > { %v7151_v32 = vpop.eup %5215 }
 0x72d   : > { %3794 = vadd.xlane.f32.xlu1 %v7151_v32 }
 0x72e   : > { %v7157_v27 = vpop.eup %5217 }
 0x72f   : > { %3796 = vadd.xlane.f32.xlu0 %v7157_v27 }
 0x730   : > { %v7160_v44 = vpop.eup %5219 }
 0x731   : > { %3798 = vadd.xlane.f32.xlu1 %v7160_v44  ;;  %v5222_v22 = vpop.eup %5221 }
 0x732   : > { %v3994_v43 = vadd.f32 1.0, %v5222_v22  ;;  %v5224_v16 = vpop.eup %5223 }
 0x733   : > { %v5226_v6 = vpop.eup %5225  ;;  %v3995_v61 = vadd.f32 1.0, %v5224_v16  ;;  %v3944_v16 = vmul.f32 1.442695, %v3904_v55 }
 0x734   : > { %v5228_v63 = vpop.eup %5227  ;;  %v3992_v29 = vadd.f32 1.0, %v5226_v6 }
 0x735   : > { %v3993_v22 = vadd.f32 1.0, %v5228_v63 }
 0x747   : > { %v3741_v53 = vpop.xlane.xlu0 %3740 }
 0x748   : > { %5231 = vrcp.f32 %v3741_v53 }
 0x749   : > { %5233 = vrcp.f32 %v3994_v43  ;;  %v5230_v43 = vpop.eup %5229 }
 0x74a   : > { %5235 = vpow2.f32 %v3936_v19  ;;  %v3907_v19 = vsub.f32 0.0, %v3875_v33  ;;  %v3998_v15 = vadd.f32 1.0, %v5230_v43 }
 0x74b   : > { %5237 = vpow2.f32 %v3942_v23  ;;  %v3743_v9 = vpop.xlane.xlu1 %3742  ;;  %v3737_v45 = vpop.xlane.xlu0 %3736 }
 0x74c   : > { %5239 = vrcp.f32 %v3743_v9  ;;  %v3950_v63 = vmul.f32 1.442695, %v3907_v19  ;;  %v3905_v9 = vsub.f32 0.0, %v3873_v0 }
 0x74d   : > { %5241 = vrcp.f32 %v3737_v45 }
 0x74e   : > { %5243 = vrcp.f32 %v3995_v61 }
 0x74f   : > { %5245 = vrcp.f32 %v3992_v29  ;;  %v3739_v17 = vpop.xlane.xlu1 %3738 }
 0x750   : > { %5247 = vrcp.f32 %v3739_v17 }
 0x751   : > { %5249 = vpow2.f32 %v3938_v42 }
 0x752   : > { %v5232_v52 = vpop.eup %5231  ;;  %5251 = vrcp.f32 %v3993_v22 }
 0x753   : > { %v5234_v12 = vpop.eup %5233  ;;  %v3805_v23 = vmul.f32 %v5232_v52, %v7036_v58  ;;  %5253 = vpow2.f32 %v3948_v5 }
 0x754   : > { %v5236_v53 = vpop.eup %5235  ;;  %5255 = vpow2.f32 %v3944_v16 }
 0x755   : > { %v5238_v6 = vpop.eup %5237  ;;  %v4058_v60 = vsel %vm3543_vm1, %v3805_v23, %v5234_v12  ;;  %v3996_v58 = vadd.f32 1.0, %v5236_v53  ;;  %v3879_v12 = vsel %vm3543_vm1, 0.0, %v6859_v41  ;;  %v3876_v41 = vsel %vm3543_vm1, 0.0, %v6856_v7 }
 0x756   : > { %v5240_v61 = vpop.eup %5239  ;;  %4090 = vst [vmem:[%s7202_s24 + $0x10] sm:$0xff] %v4058_v60  ;;  %v3999_v33 = vadd.f32 1.0, %v5238_v6 }
 0x757   : > { %v5242_v29 = vpop.eup %5241  ;;  %v3807_v45 = vmul.f32 %v5240_v61, %v7042_v26  ;;  %v3749_v30 = vpop.xlane.xlu0 %3748  ;;  %v3946_v26 = vmul.f32 1.442695, %v3905_v9 }
 0x758   : > { %v5244_v25 = vpop.eup %5243  ;;  %v3801_v3 = vmul.f32 %v5242_v29, %v7040_v14  ;;  %5257 = vrcp.f32 %v3749_v30  ;;  %v3878_v14 = vsel %vm3543_vm1, 0.0, %v6853_v40  ;;  %v3911_v40 = vsub.f32 0.0, %v3879_v12 }
 0x759   : > { %v5246_v42 = vpop.eup %5245  ;;  %5259 = vrcp.f32 %v3998_v15  ;;  %v4059_v22 = vsel %vm3543_vm1, %v3807_v45, %v5244_v25  ;;  %v3751_v52 = vpop.xlane.xlu1 %3750  ;;  %v3910_v6 = vsub.f32 0.0, %v3878_v14  ;;  %v3908_v30 = vsub.f32 0.0, %v3876_v41 }
 0x75a   : > { %v5248_v55 = vpop.eup %5247  ;;  %5261 = vpow2.f32 %v3950_v63  ;;  %4091 = vst [vmem:[%s7202_s24 + $0x18] sm:$0xff] %v4059_v22  ;;  %v4056_v17 = vsel %vm3543_vm1, %v3801_v3, %v5246_v42  ;;  %v3877_v25 = vsel %vm3543_vm1, 0.0, %v6868_v20 }
 0x75b   : > { %v5250_v5 = vpop.eup %5249  ;;  %5263 = vrcp.f32 %v3996_v58  ;;  %4088 = vst [vmem:[%s7202_s24] sm:$0xff] %v4056_v17  ;;  %v3803_v43 = vmul.f32 %v5248_v55, %v7048_v2  ;;  %v3745_v16 = vpop.xlane.xlu0 %3744  ;;  %v3956_v63 = vmul.f32 1.442695, %v3910_v6  ;;  %v3958_v58 = vmul.f32 1.442695, %v3911_v40 }
 0x75c   : > { %v5252_v19 = vpop.eup %5251  ;;  %5265 = vrcp.f32 %v3751_v52  ;;  %v3997_v0 = vadd.f32 1.0, %v5250_v5  ;;  %v3952_v20 = vmul.f32 1.442695, %v3908_v30 }
 0x75d   : > { %v4057_v23 = vsel %vm3543_vm1, %v3803_v43, %v5252_v19  ;;  %5267 = vrcp.f32 %v3745_v16  ;;  %v5254_v53 = vpop.eup %5253  ;;  %v3747_v2 = vpop.xlane.xlu1 %3746  ;;  %v3882_v16 = vsel %vm3543_vm1, 0.0, %v6889_v46 }
 0x75e   : > { %5269 = vrcp.f32 %v3999_v33  ;;  %4089 = vst [vmem:[%s7202_s24 + $0x8] sm:$0xff] %v4057_v23  ;;  %v5256_v15 = vpop.eup %5255  ;;  %v4002_v60 = vadd.f32 1.0, %v5254_v53  ;;  %v3883_v23 = vsel %vm3543_vm1, 0.0, %v6895_v51  ;;  %v3914_v46 = vsub.f32 0.0, %v3882_v16  ;;  %v7605_v51 = vld [vmem:[#allocation21_spill] sm:$0xff] }
 0x75f   : > { %5271 = vpow2.f32 %v3946_v26  ;;  %v4000_v42 = vadd.f32 1.0, %v5256_v15 }
 0x760   : > { %5273 = vrcp.f32 %v3747_v2 }
 0x761   : > { %5275 = vrcp.f32 %v3997_v0 }
 0x762   : > { %v5258_v61 = vpop.eup %5257  ;;  %5277 = vrcp.f32 %v4002_v60  ;;  %v3915_v60 = vsub.f32 0.0, %v3883_v23  ;;  %v7607_v23 = vld [vmem:[#allocation19_spill] sm:$0xff] }
 0x763   : > { %v5260_v29 = vpop.eup %5259  ;;  %v3813_v9 = vmul.f32 %v5258_v61, %v7052_v10  ;;  %5279 = vpow2.f32 %v3956_v63  ;;  %v3909_v10 = vsub.f32 0.0, %v3877_v25 }
 0x764   : > { %v5262_v45 = vpop.eup %5261  ;;  %5281 = vpow2.f32 %v3958_v58 }
 0x765   : > { %v5264_v3 = vpop.eup %5263  ;;  %v4062_v7 = vsel %vm3543_vm1, %v3813_v9, %v5260_v29  ;;  %v4003_v33 = vadd.f32 1.0, %v5262_v45  ;;  %v3964_v29 = vmul.f32 1.442695, %v3914_v46  ;;  %v3966_v9 = vmul.f32 1.442695, %v3915_v60 }
 0x766   : > { %v5266_v22 = vpop.eup %5265  ;;  %4094 = vst [vmem:[%s7202_s24 + $0x30] sm:$0xff] %v4062_v7  ;;  %v7606_v7 = vld [vmem:[#allocation20_spill] sm:$0xff] }
 0x767   : > { %v5268_v55 = vpop.eup %5267  ;;  %v3815_v17 = vmul.f32 %v5266_v22, %v7056_v4  ;;  %v3757_v5 = vpop.xlane.xlu0 %3756  ;;  %v3881_v22 = vsel %vm3543_vm1, 0.0, %v7606_v7 }
 0x768   : > { %v5270_v26 = vpop.eup %5269  ;;  %v3809_v14 = vmul.f32 %v5268_v55, %v7059_v31  ;;  %5283 = vrcp.f32 %v3757_v5  ;;  %v3954_v31 = vmul.f32 1.442695, %v3909_v10 }
 0x769   : > { %v5272_v43 = vpop.eup %5271  ;;  %5285 = vrcp.f32 %v4000_v42  ;;  %v4063_v52 = vsel %vm3543_vm1, %v3815_v17, %v5270_v26  ;;  %v3759_v19 = vpop.xlane.xlu1 %3758 }
 0x76a   : > { %v5274_v12 = vpop.eup %5273  ;;  %4095 = vst [vmem:[%s7202_s24 + $0x38] sm:$0xff] %v4063_v52  ;;  %v4060_v4 = vsel %vm3543_vm1, %v3809_v14, %v5264_v3  ;;  %5287 = vrcp.f32 %v3759_v19  ;;  %v4001_v6 = vadd.f32 1.0, %v5272_v43 }
 0x76b   : > { %5289 = vrcp.f32 %v4003_v33  ;;  %4092 = vst [vmem:[%s7202_s24 + $0x20] sm:$0xff] %v4060_v4  ;;  %v3811_v53 = vmul.f32 %v5274_v12, %v7064_v38  ;;  %v5276_v0 = vpop.eup %5275  ;;  %v3753_v40 = vpop.xlane.xlu0 %3752  ;;  %v3880_v38 = vsel %vm3543_vm1, 0.0, %v7605_v51 }
 0x76c   : > { %5291 = vpow2.f32 %v3952_v20  ;;  %v5278_v41 = vpop.eup %5277  ;;  %v3912_v25 = vsub.f32 0.0, %v3880_v38  ;;  %v3913_v20 = vsub.f32 0.0, %v3881_v22  ;;  %v7610_v22 = vld [vmem:[#allocation23_spill] sm:$0xff] }
 0x76d   : > { %v4061_v2 = vsel %vm3543_vm1, %v3811_v53, %v5276_v0  ;;  %5293 = vrcp.f32 %v3753_v40  ;;  %v3755_v15 = vpop.xlane.xlu1 %3754  ;;  %v5280_v61 = vpop.eup %5279  ;;  %v3886_v53 = vsel %vm3543_vm1, 0.0, %v7607_v23 }
 0x76e   : > { %4093 = vst [vmem:[%s7202_s24 + $0x28] sm:$0xff] %v4061_v2  ;;  %5295 = vrcp.f32 %v3755_v15  ;;  %v5282_v63 = vpop.eup %5281  ;;  %v4006_v30 = vadd.f32 1.0, %v5280_v61  ;;  %v7608_v15 = vld [vmem:[#allocation24_spill] sm:$0xff]  ;;  %v7609_v61 = vld [vmem:[#allocation25_spill] sm:$0xff] }
 0x76f   : > { %5297 = vpow2.f32 %v3954_v31  ;;  %v4007_v33 = vadd.f32 1.0, %v5282_v63  ;;  %v3887_v60 = vsel %vm3543_vm1, 0.0, %v7608_v15  ;;  %v3884_v51 = vsel %vm3543_vm1, 0.0, %v7609_v61 }
 0x770   : > { %5299 = vrcp.f32 %v4001_v6  ;;  %v3962_v6 = vmul.f32 1.442695, %v3913_v20 }
 0x771   : > { %5301 = vpow2.f32 %v3964_v29 }
 0x772   : > { %v5284_v58 = vpop.eup %5283  ;;  %5303 = vpow2.f32 %v3966_v9 }
 0x773   : > { %v5286_v45 = vpop.eup %5285  ;;  %v3821_v3 = vmul.f32 %v5284_v58, %v7068_v62  ;;  %5305 = vrcp.f32 %v4006_v30  ;;  %v3960_v62 = vmul.f32 1.442695, %v3912_v25  ;;  %v3919_v58 = vsub.f32 0.0, %v3887_v60 }
 0x774   : > { %v5288_v42 = vpop.eup %5287  ;;  %v3916_v30 = vsub.f32 0.0, %v3884_v51 }
 0x775   : > { %v5290_v55 = vpop.eup %5289  ;;  %v4066_v10 = vsel %vm3543_vm1, %v3821_v3, %v5278_v41  ;;  %v3823_v17 = vmul.f32 %v5288_v42, %v7071_v1 }
 0x776   : > { %v5292_v5 = vpop.eup %5291  ;;  %4098 = vst [vmem:[%s7202_s24 + $0x50] sm:$0xff] %v4066_v10  ;;  %v3974_v10 = vmul.f32 1.442695, %v3919_v58 }
 0x777   : > { %v5294_v26 = vpop.eup %5293  ;;  %v4067_v14 = vsel %vm3543_vm1, %v3823_v17, %v5290_v55  ;;  %v3765_v43 = vpop.xlane.xlu0 %3764  ;;  %v4004_v1 = vadd.f32 1.0, %v5292_v5  ;;  %v3885_v55 = vsel %vm3543_vm1, 0.0, %v7610_v22 }
 0x778   : > { %v5296_v52 = vpop.eup %5295  ;;  %4099 = vst [vmem:[%s7202_s24 + $0x58] sm:$0xff] %v4067_v14  ;;  %v3817_v19 = vmul.f32 %v5294_v26, %v7076_v59  ;;  %5307 = vrcp.f32 %v3765_v43 }
 0x779   : > { %v5298_v12 = vpop.eup %5297  ;;  %5309 = vrcp.f32 %v4007_v33  ;;  %v3819_v16 = vmul.f32 %v5296_v52, %v7078_v35  ;;  %v3767_v4 = vpop.xlane.xlu1 %3766  ;;  %v3918_v35 = vsub.f32 0.0, %v3886_v53 }
 0x77a   : > { %v5300_v31 = vpop.eup %5299  ;;  %v4064_v0 = vsel %vm3543_vm1, %v3817_v19, %v5286_v45  ;;  %5311 = vrcp.f32 %v3767_v4  ;;  %v4005_v46 = vadd.f32 1.0, %v5298_v12 }
 0x77b   : > { %5313 = vpow2.f32 %v3960_v62  ;;  %4096 = vst [vmem:[%s7202_s24 + $0x40] sm:$0xff] %v4064_v0  ;;  %v4065_v59 = vsel %vm3543_vm1, %v3819_v16, %v5300_v31  ;;  %v3761_v40 = vpop.xlane.xlu0 %3760  ;;  %v5302_v41 = vpop.eup %5301  ;;  %v3972_v29 = vmul.f32 1.442695, %v3918_v35  ;;  %v3968_v62 = vmul.f32 1.442695, %v3916_v30  ;;  %v7614_v30 = vld [vmem:[#allocation27_spill] sm:$0xff] }
 0x77c   : > { %4097 = vst [vmem:[%s7202_s24 + $0x48] sm:$0xff] %v4065_v59  ;;  %5315 = vrcp.f32 %v3761_v40  ;;  %v5304_v38 = vpop.eup %5303  ;;  %v4010_v45 = vadd.f32 1.0, %v5302_v41 }
 0x77d   : > { %5317 = vrcp.f32 %v4004_v1  ;;  %v3763_v2 = vpop.xlane.xlu1 %3762  ;;  %v5306_v63 = vpop.eup %5305  ;;  %v4011_v3 = vadd.f32 1.0, %v5304_v38 }
 0x77e   : > { %5319 = vrcp.f32 %v3763_v2  ;;  %v7613_v2 = vld [vmem:[#allocation28_spill] sm:$0xff] }
 0x77f   : > { %5321 = vpow2.f32 %v3962_v6 }
 0x780   : > { %5323 = vrcp.f32 %v4005_v46 }
 0x781   : > { %5325 = vpow2.f32 %v3972_v29 }
 0x782   : > { %v5308_v9 = vpop.eup %5307  ;;  %5327 = vrcp.f32 %v4010_v45 }
 0x783   : > { %v5310_v25 = vpop.eup %5309  ;;  %v3829_v42 = vmul.f32 %v5308_v9, %v7084_v57  ;;  %5329 = vrcp.f32 %v4011_v3  ;;  %v3917_v57 = vsub.f32 0.0, %v3885_v55 }
 0x784   : > { %v5312_v7 = vpop.eup %5311 }
 0x785   : > { %v5314_v33 = vpop.eup %5313  ;;  %v4070_v17 = vsel %vm3543_vm1, %v3829_v42, %v5306_v63  ;;  %v3831_v5 = vmul.f32 %v5312_v7, %v7087_v34  ;;  %v7611_v34 = vld [vmem:[#allocation22_spill] sm:$0xff]  ;;  %v3970_v6 = vmul.f32 1.442695, %v3917_v57 }
 0x786   : > { %v5316_v26 = vpop.eup %5315  ;;  %4102 = vst [vmem:[%s7202_s24 + $0x70] sm:$0xff] %v4070_v17  ;;  %v4008_v12 = vadd.f32 1.0, %v5314_v33  ;;  %v3890_v16 = vsel %vm3543_vm1, 0.0, %v7611_v34 }
 0x787   : > { %v5318_v20 = vpop.eup %5317  ;;  %v4071_v14 = vsel %vm3543_vm1, %v3831_v5, %v5310_v25  ;;  %v3825_v43 = vmul.f32 %v5316_v26, %v7091_v50  ;;  %v3773_v52 = vpop.xlane.xlu0 %3772  ;;  %v7612_v50 = vld [vmem:[#allocation29_spill] sm:$0xff]  ;;  %v3922_v35 = vsub.f32 0.0, %v3890_v16  ;;  %v3889_v25 = vsel %vm3543_vm1, 0.0, %v7614_v30  ;;  %v7618_v30 = vld [vmem:[#allocation31_spill] sm:$0xff] }
 0x788   : > { %v5320_v19 = vpop.eup %5319  ;;  %4103 = vst [vmem:[%s7202_s24 + $0x78] sm:$0xff] %v4071_v14  ;;  %5331 = vrcp.f32 %v3773_v52  ;;  %v3888_v0 = vsel %vm3543_vm1, 0.0, %v7612_v50  ;;  %v3921_v17 = vsub.f32 0.0, %v3889_v25  ;;  %v3895_v25 = vsel %vm3543_vm1, 0.0, %v7618_v30 }
 0x789   : > { %v5322_v1 = vpop.eup %5321  ;;  %5333 = vpow2.f32 %v3974_v10  ;;  %v4068_v4 = vsel %vm3543_vm1, %v3825_v43, %v5318_v20  ;;  %v3827_v31 = vmul.f32 %v5320_v19, %v7095_v56  ;;  %v3775_v23 = vpop.xlane.xlu1 %3774  ;;  %v3891_v56 = vsel %vm3543_vm1, 0.0, %v7613_v2 }
 0x78a   : > { %v5324_v53 = vpop.eup %5323  ;;  %4100 = vst [vmem:[%s7202_s24 + $0x60] sm:$0xff] %v4068_v4  ;;  %5335 = vrcp.f32 %v3775_v23  ;;  %v4009_v46 = vadd.f32 1.0, %v5322_v1  ;;  %v3920_v15 = vsub.f32 0.0, %v3888_v0  ;;  %v3923_v61 = vsub.f32 0.0, %v3891_v56  ;;  %v7615_v4 = vld [vmem:[#allocation26_spill] sm:$0xff]  ;;  %v7616_v0 = vld [vmem:[#allocation33_spill] sm:$0xff] }
 0x78b   : > { %5337 = vpow2.f32 %v3968_v62  ;;  %v4069_v59 = vsel %vm3543_vm1, %v3827_v31, %v5324_v53  ;;  %v3769_v40 = vpop.xlane.xlu0 %3768  ;;  %v5326_v41 = vpop.eup %5325  ;;  %v3980_v38 = vmul.f32 1.442695, %v3922_v35  ;;  %v3978_v1 = vmul.f32 1.442695, %v3921_v17 }
 0x78c   : > { %4101 = vst [vmem:[%s7202_s24 + $0x68] sm:$0xff] %v4069_v59  ;;  %5339 = vrcp.f32 %v3769_v40  ;;  %v5328_v51 = vpop.eup %5327  ;;  %v3976_v29 = vmul.f32 1.442695, %v3920_v15  ;;  %v3982_v45 = vmul.f32 1.442695, %v3923_v61  ;;  %v4014_v22 = vadd.f32 1.0, %v5326_v41 }
 0x78d   : > { %5341 = vrcp.f32 %v4008_v12  ;;  %v3771_v60 = vpop.xlane.xlu1 %3770  ;;  %v5330_v63 = vpop.eup %5329  ;;  %v3892_v31 = vsel %vm3543_vm1, 0.0, %v7615_v4 }
 0x78e   : > { %5343 = vrcp.f32 %v3771_v60  ;;  %v3924_v50 = vsub.f32 0.0, %v3892_v31 }
 0x78f   : > { %5345 = vpow2.f32 %v3970_v6  ;;  %v3893_v6 = vsel %vm3543_vm1, 0.0, %v7616_v0 }
 0x790   : > { %5347 = vrcp.f32 %v4009_v46  ;;  %v7617_v46 = vld [vmem:[#allocation32_spill] sm:$0xff]  ;;  %v3984_v60 = vmul.f32 1.442695, %v3924_v50  ;;  %v3925_v41 = vsub.f32 0.0, %v3893_v6 }
 0x791   : > { %5349 = vpow2.f32 %v3980_v38  ;;  %v3894_v35 = vsel %vm3543_vm1, 0.0, %v7617_v46 }
 0x792   : > { %v5332_v58 = vpop.eup %5331  ;;  %5351 = vpow2.f32 %v3976_v29  ;;  %v3926_v38 = vsub.f32 0.0, %v3894_v35 }
 0x793   : > { %v5334_v9 = vpop.eup %5333  ;;  %v3837_v3 = vmul.f32 %v5332_v58, %v7100_v24  ;;  %5353 = vpow2.f32 %v3982_v45 }
 0x794   : > { %v5336_v42 = vpop.eup %5335  ;;  %v4015_v26 = vadd.f32 1.0, %v5334_v9 }
 0x795   : > { %v5338_v7 = vpop.eup %5337  ;;  %v4074_v55 = vsel %vm3543_vm1, %v3837_v3, %v5328_v51  ;;  %v3839_v33 = vmul.f32 %v5336_v42, %v7103_v49 }
 0x796   : > { %v5340_v10 = vpop.eup %5339  ;;  %4106 = vst [vmem:[%s7202_s24 + $0x90] sm:$0xff] %v4074_v55  ;;  %v4012_v49 = vadd.f32 1.0, %v5338_v7 }
 0x797   : > { %v5342_v5 = vpop.eup %5341  ;;  %v4075_v24 = vsel %vm3543_vm1, %v3839_v33, %v5330_v63  ;;  %v3833_v62 = vmul.f32 %v5340_v10, %v7107_v48  ;;  %v3781_v20 = vpop.xlane.xlu0 %3780  ;;  %v3988_v33 = vmul.f32 1.442695, %v3926_v38  ;;  %v3927_v10 = vsub.f32 0.0, %v3895_v25 }
 0x798   : > { %v5344_v57 = vpop.eup %5343  ;;  %4107 = vst [vmem:[%s7202_s24 + $0x98] sm:$0xff] %v4075_v24  ;;  %5355 = vrcp.f32 %v3781_v20 }
 0x799   : > { %v5346_v14 = vpop.eup %5345  ;;  %5357 = vrcp.f32 %v4014_v22  ;;  %v4072_v43 = vsel %vm3543_vm1, %v3833_v62, %v5342_v5  ;;  %v3835_v52 = vmul.f32 %v5344_v57, %v7111_v39  ;;  %v3783_v19 = vpop.xlane.xlu1 %3782  ;;  %v3990_v57 = vmul.f32 1.442695, %v3927_v10 }
 0x79a   : > { %v5348_v12 = vpop.eup %5347  ;;  %4104 = vst [vmem:[%s7202_s24 + $0x80] sm:$0xff] %v4072_v43  ;;  %5359 = vrcp.f32 %v3783_v19  ;;  %v4013_v16 = vadd.f32 1.0, %v5346_v14 }
 0x79b   : > { %5361 = vrcp.f32 %v4015_v26  ;;  %v4073_v48 = vsel %vm3543_vm1, %v3835_v52, %v5348_v12  ;;  %v3777_v34 = vpop.xlane.xlu0 %3776  ;;  %v5350_v39 = vpop.eup %5349 }
 0x79c   : > { %4105 = vst [vmem:[%s7202_s24 + $0x88] sm:$0xff] %v4073_v48  ;;  %5363 = vrcp.f32 %v3777_v34  ;;  %v5352_v53 = vpop.eup %5351  ;;  %v4018_v40 = vadd.f32 1.0, %v5350_v39 }
 0x79d   : > { %5365 = vrcp.f32 %v4012_v49  ;;  %v3779_v23 = vpop.xlane.xlu1 %3778  ;;  %v5354_v59 = vpop.eup %5353  ;;  %v4016_v56 = vadd.f32 1.0, %v5352_v53 }
 0x79e   : > { %5367 = vrcp.f32 %v3779_v23  ;;  %v4019_v29 = vadd.f32 1.0, %v5354_v59 }
 0x79f   : > { %5369 = vpow2.f32 %v3978_v1 }
 0x7a0   : > { %5371 = vrcp.f32 %v4013_v16 }
 0x7a1   : > { %5373 = vrcp.f32 %v4018_v40 }
 0x7a2   : > { %v5356_v2 = vpop.eup %5355  ;;  %5375 = vrcp.f32 %v4016_v56 }
 0x7a3   : > { %v5358_v15 = vpop.eup %5357  ;;  %v3845_v61 = vmul.f32 %v5356_v2, %v7116_v18  ;;  %5377 = vpow2.f32 %v3984_v60  ;;  %v3986_v18 = vmul.f32 1.442695, %v3925_v41 }
 0x7a4   : > { %v5360_v51 = vpop.eup %5359 }
 0x7a5   : > { %v5362_v63 = vpop.eup %5361  ;;  %v4078_v58 = vsel %vm3543_vm1, %v3845_v61, %v5358_v15  ;;  %v3847_v9 = vmul.f32 %v5360_v51, %v7119_v37 }
 0x7a6   : > { %v5364_v45 = vpop.eup %5363  ;;  %4110 = vst [vmem:[%s7202_s24 + $0xb0] sm:$0xff] %v4078_v58 }
 0x7a7   : > { %v5366_v3 = vpop.eup %5365  ;;  %v4079_v42 = vsel %vm3543_vm1, %v3847_v9, %v5362_v63  ;;  %v3841_v7 = vmul.f32 %v5364_v45, %v7123_v47  ;;  %v3789_v22 = vpop.xlane.xlu0 %3788 }
 0x7a8   : > { %v5368_v55 = vpop.eup %5367  ;;  %4111 = vst [vmem:[%s7202_s24 + $0xb8] sm:$0xff] %v4079_v42  ;;  %5379 = vrcp.f32 %v3789_v22 }
 0x7a9   : > { %v5370_v37 = vpop.eup %5369  ;;  %5381 = vrcp.f32 %v4019_v29  ;;  %v4076_v17 = vsel %vm3543_vm1, %v3841_v7, %v5366_v3  ;;  %v3843_v5 = vmul.f32 %v5368_v55, %v7127_v11  ;;  %v3791_v26 = vpop.xlane.xlu1 %3790 }
 0x7aa   : > { %v5372_v24 = vpop.eup %5371  ;;  %4108 = vst [vmem:[%s7202_s24 + $0xa0] sm:$0xff] %v4076_v17  ;;  %5383 = vrcp.f32 %v3791_v26  ;;  %v4017_v20 = vadd.f32 1.0, %v5370_v37 }
 0x7ab   : > { %5385 = vpow2.f32 %v3986_v18  ;;  %v4077_v47 = vsel %vm3543_vm1, %v3843_v5, %v5372_v24  ;;  %v3785_v62 = vpop.xlane.xlu0 %3784  ;;  %v5374_v49 = vpop.eup %5373 }
 0x7ac   : > { %4109 = vst [vmem:[%s7202_s24 + $0xa8] sm:$0xff] %v4077_v47  ;;  %5387 = vrcp.f32 %v3785_v62  ;;  %v5376_v43 = vpop.eup %5375 }
 0x7ad   : > { %5389 = vpow2.f32 %v3988_v33  ;;  %v3787_v14 = vpop.xlane.xlu1 %3786  ;;  %v5378_v11 = vpop.eup %5377 }
 0x7ae   : > { %5391 = vrcp.f32 %v3787_v14  ;;  %v4020_v23 = vadd.f32 1.0, %v5378_v11 }
 0x7af   : > { %5393 = vrcp.f32 %v4017_v20 }
 0x7b0   : > { %5395 = vpow2.f32 %v3990_v57 }
 0x7b2   : > { %v5380_v52 = vpop.eup %5379 }
 0x7b3   : > { %v5382_v19 = vpop.eup %5381  ;;  %v3853_v12 = vmul.f32 %v5380_v52, %v7132_v13 }
 0x7b4   : > { %v5384_v1 = vpop.eup %5383 }
 0x7b5   : > { %v5386_v48 = vpop.eup %5385  ;;  %v4082_v34 = vsel %vm3543_vm1, %v3853_v12, %v5374_v49  ;;  %v3855_v16 = vmul.f32 %v5384_v1, %v7135_v36 }
 0x7b6   : > { %v5388_v4 = vpop.eup %5387  ;;  %4114 = vst [vmem:[%s7202_s24 + $0xd0] sm:$0xff] %v4082_v34  ;;  %v4021_v13 = vadd.f32 1.0, %v5386_v48 }
 0x7b7   : > { %v5390_v31 = vpop.eup %5389  ;;  %v4083_v39 = vsel %vm3543_vm1, %v3855_v16, %v5382_v19  ;;  %v3849_v53 = vmul.f32 %v5388_v4, %v7138_v28 }
 0x7b8   : > { %v5392_v50 = vpop.eup %5391  ;;  %4115 = vst [vmem:[%s7202_s24 + $0xd8] sm:$0xff] %v4083_v39  ;;  %v3793_v59 = vpop.xlane.xlu0 %3792  ;;  %v4022_v46 = vadd.f32 1.0, %v5390_v31 }
 0x7b9   : > { %v4080_v0 = vsel %vm3543_vm1, %v3849_v53, %v5376_v43  ;;  %v3851_v6 = vmul.f32 %v5392_v50, %v7142_v21  ;;  %v5394_v36 = vpop.eup %5393  ;;  %5397 = vrcp.f32 %v3793_v59 }
 0x7ba   : > { %4112 = vst [vmem:[%s7202_s24 + $0xc0] sm:$0xff] %v4080_v0  ;;  %v5396_v40 = vpop.eup %5395  ;;  %5399 = vrcp.f32 %v4020_v23  ;;  %v3795_v2 = vpop.xlane.xlu1 %3794 }
 0x7bb   : > { %v4081_v35 = vsel %vm3543_vm1, %v3851_v6, %v5394_v36  ;;  %5401 = vrcp.f32 %v3795_v2  ;;  %v4023_v56 = vadd.f32 1.0, %v5396_v40 }
 0x7bc   : > { %4113 = vst [vmem:[%s7202_s24 + $0xc8] sm:$0xff] %v4081_v35  ;;  %5403 = vrcp.f32 %v4021_v13  ;;  %v3797_v28 = vpop.xlane.xlu0 %3796 }
 0x7bd   : > { %5405 = vrcp.f32 %v3797_v28 }
 0x7be   : > { %5407 = vrcp.f32 %v4022_v46  ;;  %v3799_v21 = vpop.xlane.xlu1 %3798 }
 0x7bf   : > { %5409 = vrcp.f32 %v3799_v21 }
 0x7c0   : > { %5411 = vrcp.f32 %v4023_v56 }
 0x7c3   : > { %v5398_v15 = vpop.eup %5397 }
 0x7c4   : > { %v5400_v60 = vpop.eup %5399  ;;  %v3857_v41 = vmul.f32 %v5398_v15, %v7148_v54 }
 0x7c5   : > { %v5402_v61 = vpop.eup %5401 }
 0x7c6   : > { %v5404_v51 = vpop.eup %5403  ;;  %v4084_v38 = vsel %vm3543_vm1, %v3857_v41, %v5400_v60  ;;  %v3859_v63 = vmul.f32 %v5402_v61, %v7151_v32 }
 0x7c7   : > { %v5406_v29 = vpop.eup %5405  ;;  %4116 = vst [vmem:[%s7202_s24 + $0xe0] sm:$0xff] %v4084_v38 }
 0x7c8   : > { %v5408_v58 = vpop.eup %5407  ;;  %v4085_v9 = vsel %vm3543_vm1, %v3859_v63, %v5404_v51  ;;  %v3861_v54 = vmul.f32 %v5406_v29, %v7157_v27 }
 0x7c9   : > { %v5410_v45 = vpop.eup %5409  ;;  %4117 = vst [vmem:[%s7202_s24 + $0xe8] sm:$0xff] %v4085_v9 }
 0x7ca   : > { %v4086_v30 = vsel %vm3543_vm1, %v3861_v54, %v5408_v58  ;;  %v3863_v32 = vmul.f32 %v5410_v45, %v7160_v44  ;;  %v5412_v25 = vpop.eup %5411 }
 0x7cb   : > { %4118 = vst [vmem:[%s7202_s24 + $0xf0] sm:$0xff] %v4086_v30 }
 0x7cc   : > { %v4087_v27 = vsel %vm3543_vm1, %v3863_v32, %v5412_v25 }
 0x7cd   : > { %4119 = vst [vmem:[%s7202_s24 + $0xf8] sm:$0xff] %v4087_v27 }
 0x7ce   : > { %5482 = shalt.err (!%p5479_p11)
}
 0x7cf   : > { %s5483_s17 = scalar_lea.hbm %s7390_s20, 4096  ;;  %s5487_s24 = scalar_lea.hbm %s7620_s23, 8192 }
 0x7d0   : > { %p5484_p13 = scmp.ne.s32.totalorder %s7390_s20, %s5483_s17  ;;  %p5488_p6 = scmp.lt.u32.totalorder %s7390_s20, %s7620_s23 }
 0x7d1   : > { %p5489_p9 = scmp.lt.u32.totalorder %s5487_s24, %s5483_s17  ;;  %p5491_p10 = scmp.lt.u32.totalorder %s5483_s17, %s7390_s20 }
 0x7d2   : > { %p5485_p0 = pnand %p5484_p13, %p7621_p1 }
 0x7d3   : > { %p5490_p12 = por %p5489_p9, %p5488_p6 }
 0x7d4   : > { %p5486_p5 = pneg %p5485_p0 }
 0x7d5   : > { %p5492_p2 = por %p5491_p10, %p5490_p12 }
 0x7d7   : > { %p5493_p3 = pnand %p5492_p2, %p5486_p5 }
 0x7d9   : > { %5496 = shalt.err (!%p5493_p3)
}
 0x7da   : > { %s5549_s28 = smov 128   ;;  %s5550_s27 = smov 8  }
 0x7db   : > { %4846 = dma.vmem_to_hbm [thread:$0]  (%p7621_p1), %s7392_s13, 4096, %s7390_s20, %s7400_s29, %s5549_s28, %s5549_s28, %s5550_s27  }
 0x7dc PF: > { %s7622_s30 = sld [smem:[#allocation13_spill]]  ;;  %s7623_s15 = sld [smem:[#allocation11_spill]] }
 0x7dd   : > { %s7624_s14 = sld [smem:[#allocation16_spill]] }
 0x7e2   : > { %p4863_p4 = scmp.ge.s32.totalorder %s7622_s30, 2  ;;  %s4149_s19 = sand.u32 1, %s7623_s15  }
 0x7e3   : > { %p7625_p7 = scmp.ne.s32.totalorder %s7624_s14, 0  ;;  %s4150_s17 = scalar_lea.sflag [#allocation4], %s4149_s19 }
 0x7e5   : > { %p4856_p8 = pnand %p4863_p4, %p7625_p7 }
 0x7e7   : > { %5522 = dma.done.wait (!%p4856_p8), %s4150_s17, 4096  }
 0x7e8   : > { %5524 = vsyncadd (!%p4856_p8), %s4150_s17, 4294963200  ;;  %s7626_s28 = sld [smem:[#allocation14_spill]]  ;;  %s7627_s16 = sld [smem:[#allocation12_spill]] }
 0x7e9   : > { %s7628_s27 = sld [smem:[#allocation15_spill]]  ;;  %s7629_s25 = smov %s5531_s26 }
 0x7ee   : > { %p25_p11 = scmp.ge.s32.totalorder %s7626_s28, 4   ;;  %s7630_s26 = smov %s7627_s16 }
 0x7f0   :  { %27 = sbr.rel (!%p25_p11) target bundleno = 7 (0x7), region = 116 }
 0x7f7   :  { %4155 = vsyncpa [#allocation3], 1 }
 0x7f8   :  { %4157 = vsyncpa [#allocation3 + $0x1], 1 }
 0x7f9   :  { %4158 = vsyncpa [#allocation6], 1 }
 0x7fa   :  { %4159 = vsyncpa [#allocation4], 1 }
 0x7fb   :  { %4161 = vsyncpa [#allocation4 + $0x1], 1 }

</bundles_post_ra>
